<compile_context>
chip_gen: v7x
topology: tpu7x:2x2x1
jax: 0.10.0
libtpu: 0.0.40
codegen_flags: <defaults>
</compile_context>

<pallas_src>
import functools

import jax
import jax.numpy as jnp
from jax.experimental import pallas as pl
from jax.experimental.pallas import tpu as pltpu

HIDDEN = 64
NUM_LAYERS = 3
INPUT_DIM = 28
NUM_CLASSES = 10
BP = 8  # batch rows padded to one 8-sublane tile per time step


def _lstm_cell(z, c):
    """One LSTM cell update. z: (BP, 4H) f32 pre-activation, columns in (i,f,o,g) order."""
    H = HIDDEN
    # Full-vreg nonlinearities: sigmoid over all 4H (i,f,o halves valid) and tanh over the
    # lane-aligned [2H:4H] half (g half valid) — same EUP op count, no 192-col masked slice.
    sg = jax.nn.sigmoid(z)
    tg = jnp.tanh(z[:, 2 * H:])
    i = sg[:, 0 * H:1 * H]
    f = sg[:, 1 * H:2 * H]
    o = sg[:, 2 * H:3 * H]
    g = tg[:, H:]
    c_new = f * c + i * g
    h_new = o * jnp.tanh(c_new)
    return h_new, c_new


def lstm_kernel(x_ref,
                wih0_ref, whh0_ref, b0_ref,
                w1_ref, b1_ref,
                w2_ref, b2_ref,
                fcw_ref, fcb_ref,
                out_ref,
                *, T):
    H = HIDDEN

    # Hoist all recurrent weights out of the unrolled steps (loaded once).
    whh0 = whh0_ref[...]          # (H, 4H)   bf16
    w1 = w1_ref[...]              # (2H, 4H)  bf16, stacked [W_ih; W_hh]
    b1 = b1_ref[...]              # (1, 4H)   f32
    w2 = w2_ref[...]              # (2H, 4H)  bf16
    b2 = b2_ref[...]              # (1, 4H)   f32

    # Layer 0: hoisted input-to-hidden projection over the whole padded time-major
    # sequence — one lane-dense (T*BP, D) x (D, 4H) MXU matmul + fused bias.
    zx0 = jnp.dot(x_ref[...], wih0_ref[...],
                  preferred_element_type=jnp.float32) + b0_ref[...]

    zero = jnp.zeros((BP, H), jnp.float32)
    h = [zero, zero, zero]
    c = [zero, zero, zero]

    # Wavefront-interleaved recurrence: at wave w, cell (l, t = w - l) executes.
    # Layers are visited in decreasing order within a wave so layer l reads h[l-1]
    # (= h_{l-1, t}, produced in the previous wave) before layer l-1 advances to t+1.
    for w in range(T + NUM_LAYERS - 1):
        for l in range(NUM_LAYERS - 1, -1, -1):
            t = w - l
            if not (0 <= t < T):
                continue
            if l == 0:
                z = zx0[t * BP:(t + 1) * BP, :] + jnp.dot(
                    h[0].astype(jnp.bfloat16), whh0,
                    preferred_element_type=jnp.float32)
            else:
                # Fused input + recurrent projection: K-concat [h_{l-1,t}, h_{l,t-1}]
                # against the stacked [W_ih; W_hh] weight (one MXU pass, K=128).
                lhs = jnp.concatenate([h[l - 1], h[l]], axis=-1).astype(jnp.bfloat16)
                wl, bl = (w1, b1) if l == 1 else (w2, b2)
                z = jnp.dot(lhs, wl, preferred_element_type=jnp.float32) + bl
            h[l], c[l] = _lstm_cell(z, c[l])

    # out = fc(out[:, -1, :]) — h[2] is the top layer's last hidden state.
    out_ref[...] = (jnp.dot(h[2].astype(jnp.bfloat16), fcw_ref[...],
                            preferred_element_type=jnp.float32)
                    + fcb_ref[...]).astype(out_ref.dtype)


def init_torch_params(key, num_classes=NUM_CLASSES):
    """PyTorch-layout parameters: W_ih (4H, D_in), W_hh (4H, H), b_ih, b_hh per layer
    in gate order (i, f, g, o); fc_w (C, H), fc_b (C,). uniform(-1/sqrt(H), 1/sqrt(H))."""
    k = 1.0 / jnp.sqrt(jnp.float32(HIDDEN))
    keys = jax.random.split(key, NUM_LAYERS * 4 + 2)
    ki = 0
    layers = []
    for layer in range(NUM_LAYERS):
        d_in = INPUT_DIM if layer == 0 else HIDDEN
        w_ih = jax.random.uniform(keys[ki], (4 * HIDDEN, d_in), jnp.float32, -k, k); ki += 1
        w_hh = jax.random.uniform(keys[ki], (4 * HIDDEN, HIDDEN), jnp.float32, -k, k); ki += 1
        b_ih = jax.random.uniform(keys[ki], (4 * HIDDEN,), jnp.float32, -k, k); ki += 1
        b_hh = jax.random.uniform(keys[ki], (4 * HIDDEN,), jnp.float32, -k, k); ki += 1
        layers.append((w_ih, w_hh, b_ih, b_hh))
    fc_w = jax.random.uniform(keys[ki], (num_classes, HIDDEN), jnp.float32, -k, k); ki += 1
    fc_b = jax.random.uniform(keys[ki], (num_classes,), jnp.float32, -k, k); ki += 1
    return {"layers": layers, "fc_w": fc_w, "fc_b": fc_b}


def _permute_ifgo_to_ifog(a):
    """Reorder the leading 4H gate axis from PyTorch (i,f,g,o) to kernel (i,f,o,g)."""
    H = HIDDEN
    return jnp.concatenate([a[:2 * H], a[3 * H:4 * H], a[2 * H:3 * H]], axis=0)


def prepare_kernel_params(torch_params):
    """Wrapper-side plumbing: permute gate blocks, transpose, fuse biases, stack the
    input+recurrent weights for layers 1/2, cast matmul operands to bf16 (biases f32)."""
    (w_ih0, w_hh0, b_ih0, b_hh0) = torch_params["layers"][0]
    out = [
        _permute_ifgo_to_ifog(w_ih0).T.astype(jnp.bfloat16),          # (D, 4H)
        _permute_ifgo_to_ifog(w_hh0).T.astype(jnp.bfloat16),          # (H, 4H)
        _permute_ifgo_to_ifog(b_ih0 + b_hh0)[None, :],                # (1, 4H) f32
    ]
    for (w_ih, w_hh, b_ih, b_hh) in torch_params["layers"][1:]:
        w_stack = jnp.concatenate(
            [_permute_ifgo_to_ifog(w_ih).T, _permute_ifgo_to_ifog(w_hh).T], axis=0)
        out.append(w_stack.astype(jnp.bfloat16))                       # (2H, 4H)
        out.append(_permute_ifgo_to_ifog(b_ih + b_hh)[None, :])        # (1, 4H) f32
    out.append(torch_params["fc_w"].T.astype(jnp.bfloat16))            # (H, C)
    out.append(torch_params["fc_b"][None, :])                          # (1, C) f32
    return out


def lstm_forward(x, kernel_params, num_classes=NUM_CLASSES):
    B, T, D = x.shape
    assert B <= BP
    # Time-major, padded to the 8-sublane tile: rows [t*BP : t*BP + B] are the valid
    # batch rows of step t; padded rows carry zeros and never affect valid rows
    # (batch rows are independent in an LSTM).
    x_tm = jnp.transpose(x, (1, 0, 2)).astype(jnp.float32)             # (T, B, D)
    x_pad = jnp.zeros((T, BP, D), jnp.float32).at[:, :B, :].set(x_tm)
    x_flat = x_pad.reshape(T * BP, D).astype(jnp.bfloat16)

    vmem = pl.BlockSpec(memory_space=pltpu.MemorySpace.VMEM)
    kernel = functools.partial(lstm_kernel, T=T)
    out = pl.pallas_call(
        kernel,
        out_shape=jax.ShapeDtypeStruct((BP, num_classes), jnp.float32),
        in_specs=[vmem] * (1 + len(kernel_params)),
        out_specs=vmem,
    )(x_flat, *kernel_params)
    return out[:B]


def lstm_reference(x, torch_params):
    """Independent pure-JAX f32 re-implementation of the PyTorch forward (i,f,g,o order,
    untransposed weights) — shares no code or layout tricks with the kernel."""
    H = HIDDEN
    B, T, _ = x.shape
    seq = x.astype(jnp.float32)
    h = None
    for (w_ih, w_hh, b_ih, b_hh) in torch_params["layers"]:
        h = jnp.zeros((B, H), jnp.float32)
        c = jnp.zeros((B, H), jnp.float32)
        outs = []
        for t in range(T):
            z = seq[:, t, :] @ w_ih.T + h @ w_hh.T + b_ih + b_hh
            i = jax.nn.sigmoid(z[:, 0 * H:1 * H])
            f = jax.nn.sigmoid(z[:, 1 * H:2 * H])
            g = jnp.tanh(z[:, 2 * H:3 * H])
            o = jax.nn.sigmoid(z[:, 3 * H:4 * H])
            c = f * c + i * g
            h = o * jnp.tanh(c)
            outs.append(h)
        seq = jnp.stack(outs, axis=1)
    return h @ torch_params["fc_w"].T + torch_params["fc_b"]


if __name__ == "__main__":
    key = jax.random.PRNGKey(0)
    k_x, k_p = jax.random.split(key)

    B, T = 2, 8
    x = jax.random.normal(k_x, (B, T, INPUT_DIM), jnp.float32)

    torch_params = init_torch_params(k_p, NUM_CLASSES)
    kernel_params = prepare_kernel_params(torch_params)

    out = jax.block_until_ready(lstm_forward(x, kernel_params, NUM_CLASSES))
    ref = jax.block_until_ready(lstm_reference(x, torch_params))

    assert out.shape == (B, NUM_CLASSES)
    max_err = float(jnp.max(jnp.abs(out - ref)))
    # bf16 matmul operands (f32 accumulation): tolerance loosened beyond the f32 1e-4.
    assert jnp.allclose(out, ref, rtol=3e-2, atol=3e-2), max_err

    print("KERNEL_OK")
</pallas_src>

<mosaic_0001>
module attributes {stable_mosaic.version = 11 : i64} {
  func.func @lstm_kernel(%arg0: memref<64x28xbf16, #tpu.memory_space<vmem>>, %arg1: memref<28x256xbf16, #tpu.memory_space<vmem>>, %arg2: memref<64x256xbf16, #tpu.memory_space<vmem>>, %arg3: memref<1x256xf32, #tpu.memory_space<vmem>>, %arg4: memref<128x256xbf16, #tpu.memory_space<vmem>>, %arg5: memref<1x256xf32, #tpu.memory_space<vmem>>, %arg6: memref<128x256xbf16, #tpu.memory_space<vmem>>, %arg7: memref<1x256xf32, #tpu.memory_space<vmem>>, %arg8: memref<64x10xbf16, #tpu.memory_space<vmem>>, %arg9: memref<1x10xf32, #tpu.memory_space<vmem>>, %arg10: memref<8x10xf32, #tpu.memory_space<vmem>>) attributes {dimension_semantics = [], scalar_prefetch = 0 : i64, scratch_operands = 0 : i64, tpu.core_type = #tpu.core_type<tc>} {
    %c0 = arith.constant 0 : index
    %c0_0 = arith.constant 0 : index
    %0 = vector.load %arg2[%c0, %c0_0] : memref<64x256xbf16, #tpu.memory_space<vmem>>, vector<64x256xbf16>
    %c0_1 = arith.constant 0 : index
    %c0_2 = arith.constant 0 : index
    %1 = vector.load %arg4[%c0_1, %c0_2] : memref<128x256xbf16, #tpu.memory_space<vmem>>, vector<128x256xbf16>
    %c0_3 = arith.constant 0 : index
    %c0_4 = arith.constant 0 : index
    %2 = vector.load %arg5[%c0_3, %c0_4] : memref<1x256xf32, #tpu.memory_space<vmem>>, vector<1x256xf32>
    %c0_5 = arith.constant 0 : index
    %c0_6 = arith.constant 0 : index
    %3 = vector.load %arg6[%c0_5, %c0_6] : memref<128x256xbf16, #tpu.memory_space<vmem>>, vector<128x256xbf16>
    %c0_7 = arith.constant 0 : index
    %c0_8 = arith.constant 0 : index
    %4 = vector.load %arg7[%c0_7, %c0_8] : memref<1x256xf32, #tpu.memory_space<vmem>>, vector<1x256xf32>
    %c0_9 = arith.constant 0 : index
    %c0_10 = arith.constant 0 : index
    %5 = vector.load %arg0[%c0_9, %c0_10] : memref<64x28xbf16, #tpu.memory_space<vmem>>, vector<64x28xbf16>
    %c0_11 = arith.constant 0 : index
    %c0_12 = arith.constant 0 : index
    %6 = vector.load %arg1[%c0_11, %c0_12] : memref<28x256xbf16, #tpu.memory_space<vmem>>, vector<28x256xbf16>
    %cst = arith.constant dense<0.000000e+00> : vector<64x256xf32>
    %7 = tpu.matmul %5, %6, %cst {dimension_numbers = #tpu.dot_dimension_numbers<[1], [0], [0], [1], [0, 0, 1, 1], [], []>} : vector<64x28xbf16>, vector<28x256xbf16>, vector<64x256xf32> -> vector<64x256xf32>
    %c0_13 = arith.constant 0 : index
    %c0_14 = arith.constant 0 : index
    %8 = vector.load %arg3[%c0_13, %c0_14] : memref<1x256xf32, #tpu.memory_space<vmem>>, vector<1x256xf32>
    %9 = vector.broadcast %8 : vector<1x256xf32> to vector<64x256xf32>
    %10 = arith.addf %7, %9 : vector<64x256xf32>
    %cst_15 = arith.constant 0.000000e+00 : f32
    %11 = vector.broadcast %cst_15 : f32 to vector<8x64xf32>
    %12 = vector.extract_strided_slice %10 {offsets = [0, 0], sizes = [8, 256], strides = [1, 1]} : vector<64x256xf32> to vector<8x256xf32>
    %13 = arith.truncf %11 : vector<8x64xf32> to vector<8x64xbf16>
    %cst_16 = arith.constant dense<0.000000e+00> : vector<8x256xf32>
    %14 = tpu.matmul %13, %0, %cst_16 {dimension_numbers = #tpu.dot_dimension_numbers<[1], [0], [0], [1], [0, 0, 1, 1], [], []>} : vector<8x64xbf16>, vector<64x256xbf16>, vector<8x256xf32> -> vector<8x256xf32>
    %15 = arith.addf %12, %14 : vector<8x256xf32>
    %16 = arith.negf %15 : vector<8x256xf32>
    %17 = math.exp %16 : vector<8x256xf32>
    %cst_17 = arith.constant 1.000000e+00 : f32
    %18 = vector.broadcast %cst_17 : f32 to vector<8x256xf32>
    %19 = arith.addf %18, %17 : vector<8x256xf32>
    %20 = arith.divf %18, %19 : vector<8x256xf32>
    %21 = vector.extract_strided_slice %15 {offsets = [0, 128], sizes = [8, 128], strides = [1, 1]} : vector<8x256xf32> to vector<8x128xf32>
    %22 = math.tanh %21 : vector<8x128xf32>
    %23 = vector.extract_strided_slice %20 {offsets = [0, 0], sizes = [8, 64], strides = [1, 1]} : vector<8x256xf32> to vector<8x64xf32>
    %24 = vector.extract_strided_slice %20 {offsets = [0, 64], sizes = [8, 64], strides = [1, 1]} : vector<8x256xf32> to vector<8x64xf32>
    %25 = vector.extract_strided_slice %20 {offsets = [0, 128], sizes = [8, 64], strides = [1, 1]} : vector<8x256xf32> to vector<8x64xf32>
    %26 = vector.extract_strided_slice %22 {offsets = [0, 64], sizes = [8, 64], strides = [1, 1]} : vector<8x128xf32> to vector<8x64xf32>
    %27 = arith.mulf %24, %11 : vector<8x64xf32>
    %28 = arith.mulf %23, %26 : vector<8x64xf32>
    %29 = arith.addf %27, %28 : vector<8x64xf32>
    %30 = math.tanh %29 : vector<8x64xf32>
    %31 = arith.mulf %25, %30 : vector<8x64xf32>
    %32 = tpu.concatenate %31, %11 in 1 : vector<8x64xf32>, vector<8x64xf32> -> vector<8x128xf32>
    %33 = arith.truncf %32 : vector<8x128xf32> to vector<8x128xbf16>
    %cst_18 = arith.constant dense<0.000000e+00> : vector<8x256xf32>
    %34 = tpu.matmul %33, %1, %cst_18 {dimension_numbers = #tpu.dot_dimension_numbers<[1], [0], [0], [1], [0, 0, 1, 1], [], []>} : vector<8x128xbf16>, vector<128x256xbf16>, vector<8x256xf32> -> vector<8x256xf32>
    %35 = vector.broadcast %2 : vector<1x256xf32> to vector<8x256xf32>
    %36 = arith.addf %34, %35 : vector<8x256xf32>
    %37 = arith.negf %36 : vector<8x256xf32>
    %38 = math.exp %37 : vector<8x256xf32>
    %cst_19 = arith.constant 1.000000e+00 : f32
    %39 = vector.broadcast %cst_19 : f32 to vector<8x256xf32>
    %40 = arith.addf %39, %38 : vector<8x256xf32>
    %41 = arith.divf %39, %40 : vector<8x256xf32>
    %42 = vector.extract_strided_slice %36 {offsets = [0, 128], sizes = [8, 128], strides = [1, 1]} : vector<8x256xf32> to vector<8x128xf32>
    %43 = math.tanh %42 : vector<8x128xf32>
    %44 = vector.extract_strided_slice %41 {offsets = [0, 0], sizes = [8, 64], strides = [1, 1]} : vector<8x256xf32> to vector<8x64xf32>
    %45 = vector.extract_strided_slice %41 {offsets = [0, 64], sizes = [8, 64], strides = [1, 1]} : vector<8x256xf32> to vector<8x64xf32>
    %46 = vector.extract_strided_slice %41 {offsets = [0, 128], sizes = [8, 64], strides = [1, 1]} : vector<8x256xf32> to vector<8x64xf32>
    %47 = vector.extract_strided_slice %43 {offsets = [0, 64], sizes = [8, 64], strides = [1, 1]} : vector<8x128xf32> to vector<8x64xf32>
    %48 = arith.mulf %45, %11 : vector<8x64xf32>
    %49 = arith.mulf %44, %47 : vector<8x64xf32>
    %50 = arith.addf %48, %49 : vector<8x64xf32>
    %51 = math.tanh %50 : vector<8x64xf32>
    %52 = arith.mulf %46, %51 : vector<8x64xf32>
    %53 = vector.extract_strided_slice %10 {offsets = [8, 0], sizes = [8, 256], strides = [1, 1]} : vector<64x256xf32> to vector<8x256xf32>
    %54 = arith.truncf %31 : vector<8x64xf32> to vector<8x64xbf16>
    %cst_20 = arith.constant dense<0.000000e+00> : vector<8x256xf32>
    %55 = tpu.matmul %54, %0, %cst_20 {dimension_numbers = #tpu.dot_dimension_numbers<[1], [0], [0], [1], [0, 0, 1, 1], [], []>} : vector<8x64xbf16>, vector<64x256xbf16>, vector<8x256xf32> -> vector<8x256xf32>
    %56 = arith.addf %53, %55 : vector<8x256xf32>
    %57 = arith.negf %56 : vector<8x256xf32>
    %58 = math.exp %57 : vector<8x256xf32>
    %cst_21 = arith.constant 1.000000e+00 : f32
    %59 = vector.broadcast %cst_21 : f32 to vector<8x256xf32>
    %60 = arith.addf %59, %58 : vector<8x256xf32>
    %61 = arith.divf %59, %60 : vector<8x256xf32>
    %62 = vector.extract_strided_slice %56 {offsets = [0, 128], sizes = [8, 128], strides = [1, 1]} : vector<8x256xf32> to vector<8x128xf32>
    %63 = math.tanh %62 : vector<8x128xf32>
    %64 = vector.extract_strided_slice %61 {offsets = [0, 0], sizes = [8, 64], strides = [1, 1]} : vector<8x256xf32> to vector<8x64xf32>
    %65 = vector.extract_strided_slice %61 {offsets = [0, 64], sizes = [8, 64], strides = [1, 1]} : vector<8x256xf32> to vector<8x64xf32>
    %66 = vector.extract_strided_slice %61 {offsets = [0, 128], sizes = [8, 64], strides = [1, 1]} : vector<8x256xf32> to vector<8x64xf32>
    %67 = vector.extract_strided_slice %63 {offsets = [0, 64], sizes = [8, 64], strides = [1, 1]} : vector<8x128xf32> to vector<8x64xf32>
    %68 = arith.mulf %65, %29 : vector<8x64xf32>
    %69 = arith.mulf %64, %67 : vector<8x64xf32>
    %70 = arith.addf %68, %69 : vector<8x64xf32>
    %71 = math.tanh %70 : vector<8x64xf32>
    %72 = arith.mulf %66, %71 : vector<8x64xf32>
    %73 = tpu.concatenate %52, %11 in 1 : vector<8x64xf32>, vector<8x64xf32> -> vector<8x128xf32>
    %74 = arith.truncf %73 : vector<8x128xf32> to vector<8x128xbf16>
    %cst_22 = arith.constant dense<0.000000e+00> : vector<8x256xf32>
    %75 = tpu.matmul %74, %3, %cst_22 {dimension_numbers = #tpu.dot_dimension_numbers<[1], [0], [0], [1], [0, 0, 1, 1], [], []>} : vector<8x128xbf16>, vector<128x256xbf16>, vector<8x256xf32> -> vector<8x256xf32>
    %76 = vector.broadcast %4 : vector<1x256xf32> to vector<8x256xf32>
    %77 = arith.addf %75, %76 : vector<8x256xf32>
    %78 = arith.negf %77 : vector<8x256xf32>
    %79 = math.exp %78 : vector<8x256xf32>
    %cst_23 = arith.constant 1.000000e+00 : f32
    %80 = vector.broadcast %cst_23 : f32 to vector<8x256xf32>
    %81 = arith.addf %80, %79 : vector<8x256xf32>
    %82 = arith.divf %80, %81 : vector<8x256xf32>
    %83 = vector.extract_strided_slice %77 {offsets = [0, 128], sizes = [8, 128], strides = [1, 1]} : vector<8x256xf32> to vector<8x128xf32>
    %84 = math.tanh %83 : vector<8x128xf32>
    %85 = vector.extract_strided_slice %82 {offsets = [0, 0], sizes = [8, 64], strides = [1, 1]} : vector<8x256xf32> to vector<8x64xf32>
    %86 = vector.extract_strided_slice %82 {offsets = [0, 64], sizes = [8, 64], strides = [1, 1]} : vector<8x256xf32> to vector<8x64xf32>
    %87 = vector.extract_strided_slice %82 {offsets = [0, 128], sizes = [8, 64], strides = [1, 1]} : vector<8x256xf32> to vector<8x64xf32>
    %88 = vector.extract_strided_slice %84 {offsets = [0, 64], sizes = [8, 64], strides = [1, 1]} : vector<8x128xf32> to vector<8x64xf32>
    %89 = arith.mulf %86, %11 : vector<8x64xf32>
    %90 = arith.mulf %85, %88 : vector<8x64xf32>
    %91 = arith.addf %89, %90 : vector<8x64xf32>
    %92 = math.tanh %91 : vector<8x64xf32>
    %93 = arith.mulf %87, %92 : vector<8x64xf32>
    %94 = tpu.concatenate %72, %52 in 1 : vector<8x64xf32>, vector<8x64xf32> -> vector<8x128xf32>
    %95 = arith.truncf %94 : vector<8x128xf32> to vector<8x128xbf16>
    %cst_24 = arith.constant dense<0.000000e+00> : vector<8x256xf32>
    %96 = tpu.matmul %95, %1, %cst_24 {dimension_numbers = #tpu.dot_dimension_numbers<[1], [0], [0], [1], [0, 0, 1, 1], [], []>} : vector<8x128xbf16>, vector<128x256xbf16>, vector<8x256xf32> -> vector<8x256xf32>
    %97 = vector.broadcast %2 : vector<1x256xf32> to vector<8x256xf32>
    %98 = arith.addf %96, %97 : vector<8x256xf32>
    %99 = arith.negf %98 : vector<8x256xf32>
    %100 = math.exp %99 : vector<8x256xf32>
    %cst_25 = arith.constant 1.000000e+00 : f32
    %101 = vector.broadcast %cst_25 : f32 to vector<8x256xf32>
    %102 = arith.addf %101, %100 : vector<8x256xf32>
    %103 = arith.divf %101, %102 : vector<8x256xf32>
    %104 = vector.extract_strided_slice %98 {offsets = [0, 128], sizes = [8, 128], strides = [1, 1]} : vector<8x256xf32> to vector<8x128xf32>
    %105 = math.tanh %104 : vector<8x128xf32>
    %106 = vector.extract_strided_slice %103 {offsets = [0, 0], sizes = [8, 64], strides = [1, 1]} : vector<8x256xf32> to vector<8x64xf32>
    %107 = vector.extract_strided_slice %103 {offsets = [0, 64], sizes = [8, 64], strides = [1, 1]} : vector<8x256xf32> to vector<8x64xf32>
    %108 = vector.extract_strided_slice %103 {offsets = [0, 128], sizes = [8, 64], strides = [1, 1]} : vector<8x256xf32> to vector<8x64xf32>
    %109 = vector.extract_strided_slice %105 {offsets = [0, 64], sizes = [8, 64], strides = [1, 1]} : vector<8x128xf32> to vector<8x64xf32>
    %110 = arith.mulf %107, %50 : vector<8x64xf32>
    %111 = arith.mulf %106, %109 : vector<8x64xf32>
    %112 = arith.addf %110, %111 : vector<8x64xf32>
    %113 = math.tanh %112 : vector<8x64xf32>
    %114 = arith.mulf %108, %113 : vector<8x64xf32>
    %115 = vector.extract_strided_slice %10 {offsets = [16, 0], sizes = [8, 256], strides = [1, 1]} : vector<64x256xf32> to vector<8x256xf32>
    %116 = arith.truncf %72 : vector<8x64xf32> to vector<8x64xbf16>
    %cst_26 = arith.constant dense<0.000000e+00> : vector<8x256xf32>
    %117 = tpu.matmul %116, %0, %cst_26 {dimension_numbers = #tpu.dot_dimension_numbers<[1], [0], [0], [1], [0, 0, 1, 1], [], []>} : vector<8x64xbf16>, vector<64x256xbf16>, vector<8x256xf32> -> vector<8x256xf32>
    %118 = arith.addf %115, %117 : vector<8x256xf32>
    %119 = arith.negf %118 : vector<8x256xf32>
    %120 = math.exp %119 : vector<8x256xf32>
    %cst_27 = arith.constant 1.000000e+00 : f32
    %121 = vector.broadcast %cst_27 : f32 to vector<8x256xf32>
    %122 = arith.addf %121, %120 : vector<8x256xf32>
    %123 = arith.divf %121, %122 : vector<8x256xf32>
    %124 = vector.extract_strided_slice %118 {offsets = [0, 128], sizes = [8, 128], strides = [1, 1]} : vector<8x256xf32> to vector<8x128xf32>
    %125 = math.tanh %124 : vector<8x128xf32>
    %126 = vector.extract_strided_slice %123 {offsets = [0, 0], sizes = [8, 64], strides = [1, 1]} : vector<8x256xf32> to vector<8x64xf32>
    %127 = vector.extract_strided_slice %123 {offsets = [0, 64], sizes = [8, 64], strides = [1, 1]} : vector<8x256xf32> to vector<8x64xf32>
    %128 = vector.extract_strided_slice %123 {offsets = [0, 128], sizes = [8, 64], strides = [1, 1]} : vector<8x256xf32> to vector<8x64xf32>
    %129 = vector.extract_strided_slice %125 {offsets = [0, 64], sizes = [8, 64], strides = [1, 1]} : vector<8x128xf32> to vector<8x64xf32>
    %130 = arith.mulf %127, %70 : vector<8x64xf32>
    %131 = arith.mulf %126, %129 : vector<8x64xf32>
    %132 = arith.addf %130, %131 : vector<8x64xf32>
    %133 = math.tanh %132 : vector<8x64xf32>
    %134 = arith.mulf %128, %133 : vector<8x64xf32>
    %135 = tpu.concatenate %114, %93 in 1 : vector<8x64xf32>, vector<8x64xf32> -> vector<8x128xf32>
    %136 = arith.truncf %135 : vector<8x128xf32> to vector<8x128xbf16>
    %cst_28 = arith.constant dense<0.000000e+00> : vector<8x256xf32>
    %137 = tpu.matmul %136, %3, %cst_28 {dimension_numbers = #tpu.dot_dimension_numbers<[1], [0], [0], [1], [0, 0, 1, 1], [], []>} : vector<8x128xbf16>, vector<128x256xbf16>, vector<8x256xf32> -> vector<8x256xf32>
    %138 = vector.broadcast %4 : vector<1x256xf32> to vector<8x256xf32>
    %139 = arith.addf %137, %138 : vector<8x256xf32>
    %140 = arith.negf %139 : vector<8x256xf32>
    %141 = math.exp %140 : vector<8x256xf32>
    %cst_29 = arith.constant 1.000000e+00 : f32
    %142 = vector.broadcast %cst_29 : f32 to vector<8x256xf32>
    %143 = arith.addf %142, %141 : vector<8x256xf32>
    %144 = arith.divf %142, %143 : vector<8x256xf32>
    %145 = vector.extract_strided_slice %139 {offsets = [0, 128], sizes = [8, 128], strides = [1, 1]} : vector<8x256xf32> to vector<8x128xf32>
    %146 = math.tanh %145 : vector<8x128xf32>
    %147 = vector.extract_strided_slice %144 {offsets = [0, 0], sizes = [8, 64], strides = [1, 1]} : vector<8x256xf32> to vector<8x64xf32>
    %148 = vector.extract_strided_slice %144 {offsets = [0, 64], sizes = [8, 64], strides = [1, 1]} : vector<8x256xf32> to vector<8x64xf32>
    %149 = vector.extract_strided_slice %144 {offsets = [0, 128], sizes = [8, 64], strides = [1, 1]} : vector<8x256xf32> to vector<8x64xf32>
    %150 = vector.extract_strided_slice %146 {offsets = [0, 64], sizes = [8, 64], strides = [1, 1]} : vector<8x128xf32> to vector<8x64xf32>
    %151 = arith.mulf %148, %91 : vector<8x64xf32>
    %152 = arith.mulf %147, %150 : vector<8x64xf32>
    %153 = arith.addf %151, %152 : vector<8x64xf32>
    %154 = math.tanh %153 : vector<8x64xf32>
    %155 = arith.mulf %149, %154 : vector<8x64xf32>
    %156 = tpu.concatenate %134, %114 in 1 : vector<8x64xf32>, vector<8x64xf32> -> vector<8x128xf32>
    %157 = arith.truncf %156 : vector<8x128xf32> to vector<8x128xbf16>
    %cst_30 = arith.constant dense<0.000000e+00> : vector<8x256xf32>
    %158 = tpu.matmul %157, %1, %cst_30 {dimension_numbers = #tpu.dot_dimension_numbers<[1], [0], [0], [1], [0, 0, 1, 1], [], []>} : vector<8x128xbf16>, vector<128x256xbf16>, vector<8x256xf32> -> vector<8x256xf32>
    %159 = vector.broadcast %2 : vector<1x256xf32> to vector<8x256xf32>
    %160 = arith.addf %158, %159 : vector<8x256xf32>
    %161 = arith.negf %160 : vector<8x256xf32>
    %162 = math.exp %161 : vector<8x256xf32>
    %cst_31 = arith.constant 1.000000e+00 : f32
    %163 = vector.broadcast %cst_31 : f32 to vector<8x256xf32>
    %164 = arith.addf %163, %162 : vector<8x256xf32>
    %165 = arith.divf %163, %164 : vector<8x256xf32>
    %166 = vector.extract_strided_slice %160 {offsets = [0, 128], sizes = [8, 128], strides = [1, 1]} : vector<8x256xf32> to vector<8x128xf32>
    %167 = math.tanh %166 : vector<8x128xf32>
    %168 = vector.extract_strided_slice %165 {offsets = [0, 0], sizes = [8, 64], strides = [1, 1]} : vector<8x256xf32> to vector<8x64xf32>
    %169 = vector.extract_strided_slice %165 {offsets = [0, 64], sizes = [8, 64], strides = [1, 1]} : vector<8x256xf32> to vector<8x64xf32>
    %170 = vector.extract_strided_slice %165 {offsets = [0, 128], sizes = [8, 64], strides = [1, 1]} : vector<8x256xf32> to vector<8x64xf32>
    %171 = vector.extract_strided_slice %167 {offsets = [0, 64], sizes = [8, 64], strides = [1, 1]} : vector<8x128xf32> to vector<8x64xf32>
    %172 = arith.mulf %169, %112 : vector<8x64xf32>
    %173 = arith.mulf %168, %171 : vector<8x64xf32>
    %174 = arith.addf %172, %173 : vector<8x64xf32>
    %175 = math.tanh %174 : vector<8x64xf32>
    %176 = arith.mulf %170, %175 : vector<8x64xf32>
    %177 = vector.extract_strided_slice %10 {offsets = [24, 0], sizes = [8, 256], strides = [1, 1]} : vector<64x256xf32> to vector<8x256xf32>
    %178 = arith.truncf %134 : vector<8x64xf32> to vector<8x64xbf16>
    %cst_32 = arith.constant dense<0.000000e+00> : vector<8x256xf32>
    %179 = tpu.matmul %178, %0, %cst_32 {dimension_numbers = #tpu.dot_dimension_numbers<[1], [0], [0], [1], [0, 0, 1, 1], [], []>} : vector<8x64xbf16>, vector<64x256xbf16>, vector<8x256xf32> -> vector<8x256xf32>
    %180 = arith.addf %177, %179 : vector<8x256xf32>
    %181 = arith.negf %180 : vector<8x256xf32>
    %182 = math.exp %181 : vector<8x256xf32>
    %cst_33 = arith.constant 1.000000e+00 : f32
    %183 = vector.broadcast %cst_33 : f32 to vector<8x256xf32>
    %184 = arith.addf %183, %182 : vector<8x256xf32>
    %185 = arith.divf %183, %184 : vector<8x256xf32>
    %186 = vector.extract_strided_slice %180 {offsets = [0, 128], sizes = [8, 128], strides = [1, 1]} : vector<8x256xf32> to vector<8x128xf32>
    %187 = math.tanh %186 : vector<8x128xf32>
    %188 = vector.extract_strided_slice %185 {offsets = [0, 0], sizes = [8, 64], strides = [1, 1]} : vector<8x256xf32> to vector<8x64xf32>
    %189 = vector.extract_strided_slice %185 {offsets = [0, 64], sizes = [8, 64], strides = [1, 1]} : vector<8x256xf32> to vector<8x64xf32>
    %190 = vector.extract_strided_slice %185 {offsets = [0, 128], sizes = [8, 64], strides = [1, 1]} : vector<8x256xf32> to vector<8x64xf32>
    %191 = vector.extract_strided_slice %187 {offsets = [0, 64], sizes = [8, 64], strides = [1, 1]} : vector<8x128xf32> to vector<8x64xf32>
    %192 = arith.mulf %189, %132 : vector<8x64xf32>
    %193 = arith.mulf %188, %191 : vector<8x64xf32>
    %194 = arith.addf %192, %193 : vector<8x64xf32>
    %195 = math.tanh %194 : vector<8x64xf32>
    %196 = arith.mulf %190, %195 : vector<8x64xf32>
    %197 = tpu.concatenate %176, %155 in 1 : vector<8x64xf32>, vector<8x64xf32> -> vector<8x128xf32>
    %198 = arith.truncf %197 : vector<8x128xf32> to vector<8x128xbf16>
    %cst_34 = arith.constant dense<0.000000e+00> : vector<8x256xf32>
    %199 = tpu.matmul %198, %3, %cst_34 {dimension_numbers = #tpu.dot_dimension_numbers<[1], [0], [0], [1], [0, 0, 1, 1], [], []>} : vector<8x128xbf16>, vector<128x256xbf16>, vector<8x256xf32> -> vector<8x256xf32>
    %200 = vector.broadcast %4 : vector<1x256xf32> to vector<8x256xf32>
    %201 = arith.addf %199, %200 : vector<8x256xf32>
    %202 = arith.negf %201 : vector<8x256xf32>
    %203 = math.exp %202 : vector<8x256xf32>
    %cst_35 = arith.constant 1.000000e+00 : f32
    %204 = vector.broadcast %cst_35 : f32 to vector<8x256xf32>
    %205 = arith.addf %204, %203 : vector<8x256xf32>
    %206 = arith.divf %204, %205 : vector<8x256xf32>
    %207 = vector.extract_strided_slice %201 {offsets = [0, 128], sizes = [8, 128], strides = [1, 1]} : vector<8x256xf32> to vector<8x128xf32>
    %208 = math.tanh %207 : vector<8x128xf32>
    %209 = vector.extract_strided_slice %206 {offsets = [0, 0], sizes = [8, 64], strides = [1, 1]} : vector<8x256xf32> to vector<8x64xf32>
    %210 = vector.extract_strided_slice %206 {offsets = [0, 64], sizes = [8, 64], strides = [1, 1]} : vector<8x256xf32> to vector<8x64xf32>
    %211 = vector.extract_strided_slice %206 {offsets = [0, 128], sizes = [8, 64], strides = [1, 1]} : vector<8x256xf32> to vector<8x64xf32>
    %212 = vector.extract_strided_slice %208 {offsets = [0, 64], sizes = [8, 64], strides = [1, 1]} : vector<8x128xf32> to vector<8x64xf32>
    %213 = arith.mulf %210, %153 : vector<8x64xf32>
    %214 = arith.mulf %209, %212 : vector<8x64xf32>
    %215 = arith.addf %213, %214 : vector<8x64xf32>
    %216 = math.tanh %215 : vector<8x64xf32>
    %217 = arith.mulf %211, %216 : vector<8x64xf32>
    %218 = tpu.concatenate %196, %176 in 1 : vector<8x64xf32>, vector<8x64xf32> -> vector<8x128xf32>
    %219 = arith.truncf %218 : vector<8x128xf32> to vector<8x128xbf16>
    %cst_36 = arith.constant dense<0.000000e+00> : vector<8x256xf32>
    %220 = tpu.matmul %219, %1, %cst_36 {dimension_numbers = #tpu.dot_dimension_numbers<[1], [0], [0], [1], [0, 0, 1, 1], [], []>} : vector<8x128xbf16>, vector<128x256xbf16>, vector<8x256xf32> -> vector<8x256xf32>
    %221 = vector.broadcast %2 : vector<1x256xf32> to vector<8x256xf32>
    %222 = arith.addf %220, %221 : vector<8x256xf32>
    %223 = arith.negf %222 : vector<8x256xf32>
    %224 = math.exp %223 : vector<8x256xf32>
    %cst_37 = arith.constant 1.000000e+00 : f32
    %225 = vector.broadcast %cst_37 : f32 to vector<8x256xf32>
    %226 = arith.addf %225, %224 : vector<8x256xf32>
    %227 = arith.divf %225, %226 : vector<8x256xf32>
    %228 = vector.extract_strided_slice %222 {offsets = [0, 128], sizes = [8, 128], strides = [1, 1]} : vector<8x256xf32> to vector<8x128xf32>
    %229 = math.tanh %228 : vector<8x128xf32>
    %230 = vector.extract_strided_slice %227 {offsets = [0, 0], sizes = [8, 64], strides = [1, 1]} : vector<8x256xf32> to vector<8x64xf32>
    %231 = vector.extract_strided_slice %227 {offsets = [0, 64], sizes = [8, 64], strides = [1, 1]} : vector<8x256xf32> to vector<8x64xf32>
    %232 = vector.extract_strided_slice %227 {offsets = [0, 128], sizes = [8, 64], strides = [1, 1]} : vector<8x256xf32> to vector<8x64xf32>
    %233 = vector.extract_strided_slice %229 {offsets = [0, 64], sizes = [8, 64], strides = [1, 1]} : vector<8x128xf32> to vector<8x64xf32>
    %234 = arith.mulf %231, %174 : vector<8x64xf32>
    %235 = arith.mulf %230, %233 : vector<8x64xf32>
    %236 = arith.addf %234, %235 : vector<8x64xf32>
    %237 = math.tanh %236 : vector<8x64xf32>
    %238 = arith.mulf %232, %237 : vector<8x64xf32>
    %239 = vector.extract_strided_slice %10 {offsets = [32, 0], sizes = [8, 256], strides = [1, 1]} : vector<64x256xf32> to vector<8x256xf32>
    %240 = arith.truncf %196 : vector<8x64xf32> to vector<8x64xbf16>
    %cst_38 = arith.constant dense<0.000000e+00> : vector<8x256xf32>
    %241 = tpu.matmul %240, %0, %cst_38 {dimension_numbers = #tpu.dot_dimension_numbers<[1], [0], [0], [1], [0, 0, 1, 1], [], []>} : vector<8x64xbf16>, vector<64x256xbf16>, vector<8x256xf32> -> vector<8x256xf32>
    %242 = arith.addf %239, %241 : vector<8x256xf32>
    %243 = arith.negf %242 : vector<8x256xf32>
    %244 = math.exp %243 : vector<8x256xf32>
    %cst_39 = arith.constant 1.000000e+00 : f32
    %245 = vector.broadcast %cst_39 : f32 to vector<8x256xf32>
    %246 = arith.addf %245, %244 : vector<8x256xf32>
    %247 = arith.divf %245, %246 : vector<8x256xf32>
    %248 = vector.extract_strided_slice %242 {offsets = [0, 128], sizes = [8, 128], strides = [1, 1]} : vector<8x256xf32> to vector<8x128xf32>
    %249 = math.tanh %248 : vector<8x128xf32>
    %250 = vector.extract_strided_slice %247 {offsets = [0, 0], sizes = [8, 64], strides = [1, 1]} : vector<8x256xf32> to vector<8x64xf32>
    %251 = vector.extract_strided_slice %247 {offsets = [0, 64], sizes = [8, 64], strides = [1, 1]} : vector<8x256xf32> to vector<8x64xf32>
    %252 = vector.extract_strided_slice %247 {offsets = [0, 128], sizes = [8, 64], strides = [1, 1]} : vector<8x256xf32> to vector<8x64xf32>
    %253 = vector.extract_strided_slice %249 {offsets = [0, 64], sizes = [8, 64], strides = [1, 1]} : vector<8x128xf32> to vector<8x64xf32>
    %254 = arith.mulf %251, %194 : vector<8x64xf32>
    %255 = arith.mulf %250, %253 : vector<8x64xf32>
    %256 = arith.addf %254, %255 : vector<8x64xf32>
    %257 = math.tanh %256 : vector<8x64xf32>
    %258 = arith.mulf %252, %257 : vector<8x64xf32>
    %259 = tpu.concatenate %238, %217 in 1 : vector<8x64xf32>, vector<8x64xf32> -> vector<8x128xf32>
    %260 = arith.truncf %259 : vector<8x128xf32> to vector<8x128xbf16>
    %cst_40 = arith.constant dense<0.000000e+00> : vector<8x256xf32>
    %261 = tpu.matmul %260, %3, %cst_40 {dimension_numbers = #tpu.dot_dimension_numbers<[1], [0], [0], [1], [0, 0, 1, 1], [], []>} : vector<8x128xbf16>, vector<128x256xbf16>, vector<8x256xf32> -> vector<8x256xf32>
    %262 = vector.broadcast %4 : vector<1x256xf32> to vector<8x256xf32>
    %263 = arith.addf %261, %262 : vector<8x256xf32>
    %264 = arith.negf %263 : vector<8x256xf32>
    %265 = math.exp %264 : vector<8x256xf32>
    %cst_41 = arith.constant 1.000000e+00 : f32
    %266 = vector.broadcast %cst_41 : f32 to vector<8x256xf32>
    %267 = arith.addf %266, %265 : vector<8x256xf32>
    %268 = arith.divf %266, %267 : vector<8x256xf32>
    %269 = vector.extract_strided_slice %263 {offsets = [0, 128], sizes = [8, 128], strides = [1, 1]} : vector<8x256xf32> to vector<8x128xf32>
    %270 = math.tanh %269 : vector<8x128xf32>
    %271 = vector.extract_strided_slice %268 {offsets = [0, 0], sizes = [8, 64], strides = [1, 1]} : vector<8x256xf32> to vector<8x64xf32>
    %272 = vector.extract_strided_slice %268 {offsets = [0, 64], sizes = [8, 64], strides = [1, 1]} : vector<8x256xf32> to vector<8x64xf32>
    %273 = vector.extract_strided_slice %268 {offsets = [0, 128], sizes = [8, 64], strides = [1, 1]} : vector<8x256xf32> to vector<8x64xf32>
    %274 = vector.extract_strided_slice %270 {offsets = [0, 64], sizes = [8, 64], strides = [1, 1]} : vector<8x128xf32> to vector<8x64xf32>
    %275 = arith.mulf %272, %215 : vector<8x64xf32>
    %276 = arith.mulf %271, %274 : vector<8x64xf32>
    %277 = arith.addf %275, %276 : vector<8x64xf32>
    %278 = math.tanh %277 : vector<8x64xf32>
    %279 = arith.mulf %273, %278 : vector<8x64xf32>
    %280 = tpu.concatenate %258, %238 in 1 : vector<8x64xf32>, vector<8x64xf32> -> vector<8x128xf32>
    %281 = arith.truncf %280 : vector<8x128xf32> to vector<8x128xbf16>
    %cst_42 = arith.constant dense<0.000000e+00> : vector<8x256xf32>
    %282 = tpu.matmul %281, %1, %cst_42 {dimension_numbers = #tpu.dot_dimension_numbers<[1], [0], [0], [1], [0, 0, 1, 1], [], []>} : vector<8x128xbf16>, vector<128x256xbf16>, vector<8x256xf32> -> vector<8x256xf32>
    %283 = vector.broadcast %2 : vector<1x256xf32> to vector<8x256xf32>
    %284 = arith.addf %282, %283 : vector<8x256xf32>
    %285 = arith.negf %284 : vector<8x256xf32>
    %286 = math.exp %285 : vector<8x256xf32>
    %cst_43 = arith.constant 1.000000e+00 : f32
    %287 = vector.broadcast %cst_43 : f32 to vector<8x256xf32>
    %288 = arith.addf %287, %286 : vector<8x256xf32>
    %289 = arith.divf %287, %288 : vector<8x256xf32>
    %290 = vector.extract_strided_slice %284 {offsets = [0, 128], sizes = [8, 128], strides = [1, 1]} : vector<8x256xf32> to vector<8x128xf32>
    %291 = math.tanh %290 : vector<8x128xf32>
    %292 = vector.extract_strided_slice %289 {offsets = [0, 0], sizes = [8, 64], strides = [1, 1]} : vector<8x256xf32> to vector<8x64xf32>
    %293 = vector.extract_strided_slice %289 {offsets = [0, 64], sizes = [8, 64], strides = [1, 1]} : vector<8x256xf32> to vector<8x64xf32>
    %294 = vector.extract_strided_slice %289 {offsets = [0, 128], sizes = [8, 64], strides = [1, 1]} : vector<8x256xf32> to vector<8x64xf32>
    %295 = vector.extract_strided_slice %291 {offsets = [0, 64], sizes = [8, 64], strides = [1, 1]} : vector<8x128xf32> to vector<8x64xf32>
    %296 = arith.mulf %293, %236 : vector<8x64xf32>
    %297 = arith.mulf %292, %295 : vector<8x64xf32>
    %298 = arith.addf %296, %297 : vector<8x64xf32>
    %299 = math.tanh %298 : vector<8x64xf32>
    %300 = arith.mulf %294, %299 : vector<8x64xf32>
    %301 = vector.extract_strided_slice %10 {offsets = [40, 0], sizes = [8, 256], strides = [1, 1]} : vector<64x256xf32> to vector<8x256xf32>
    %302 = arith.truncf %258 : vector<8x64xf32> to vector<8x64xbf16>
    %cst_44 = arith.constant dense<0.000000e+00> : vector<8x256xf32>
    %303 = tpu.matmul %302, %0, %cst_44 {dimension_numbers = #tpu.dot_dimension_numbers<[1], [0], [0], [1], [0, 0, 1, 1], [], []>} : vector<8x64xbf16>, vector<64x256xbf16>, vector<8x256xf32> -> vector<8x256xf32>
    %304 = arith.addf %301, %303 : vector<8x256xf32>
    %305 = arith.negf %304 : vector<8x256xf32>
    %306 = math.exp %305 : vector<8x256xf32>
    %cst_45 = arith.constant 1.000000e+00 : f32
    %307 = vector.broadcast %cst_45 : f32 to vector<8x256xf32>
    %308 = arith.addf %307, %306 : vector<8x256xf32>
    %309 = arith.divf %307, %308 : vector<8x256xf32>
    %310 = vector.extract_strided_slice %304 {offsets = [0, 128], sizes = [8, 128], strides = [1, 1]} : vector<8x256xf32> to vector<8x128xf32>
    %311 = math.tanh %310 : vector<8x128xf32>
    %312 = vector.extract_strided_slice %309 {offsets = [0, 0], sizes = [8, 64], strides = [1, 1]} : vector<8x256xf32> to vector<8x64xf32>
    %313 = vector.extract_strided_slice %309 {offsets = [0, 64], sizes = [8, 64], strides = [1, 1]} : vector<8x256xf32> to vector<8x64xf32>
    %314 = vector.extract_strided_slice %309 {offsets = [0, 128], sizes = [8, 64], strides = [1, 1]} : vector<8x256xf32> to vector<8x64xf32>
    %315 = vector.extract_strided_slice %311 {offsets = [0, 64], sizes = [8, 64], strides = [1, 1]} : vector<8x128xf32> to vector<8x64xf32>
    %316 = arith.mulf %313, %256 : vector<8x64xf32>
    %317 = arith.mulf %312, %315 : vector<8x64xf32>
    %318 = arith.addf %316, %317 : vector<8x64xf32>
    %319 = math.tanh %318 : vector<8x64xf32>
    %320 = arith.mulf %314, %319 : vector<8x64xf32>
    %321 = tpu.concatenate %300, %279 in 1 : vector<8x64xf32>, vector<8x64xf32> -> vector<8x128xf32>
    %322 = arith.truncf %321 : vector<8x128xf32> to vector<8x128xbf16>
    %cst_46 = arith.constant dense<0.000000e+00> : vector<8x256xf32>
    %323 = tpu.matmul %322, %3, %cst_46 {dimension_numbers = #tpu.dot_dimension_numbers<[1], [0], [0], [1], [0, 0, 1, 1], [], []>} : vector<8x128xbf16>, vector<128x256xbf16>, vector<8x256xf32> -> vector<8x256xf32>
    %324 = vector.broadcast %4 : vector<1x256xf32> to vector<8x256xf32>
    %325 = arith.addf %323, %324 : vector<8x256xf32>
    %326 = arith.negf %325 : vector<8x256xf32>
    %327 = math.exp %326 : vector<8x256xf32>
    %cst_47 = arith.constant 1.000000e+00 : f32
    %328 = vector.broadcast %cst_47 : f32 to vector<8x256xf32>
    %329 = arith.addf %328, %327 : vector<8x256xf32>
    %330 = arith.divf %328, %329 : vector<8x256xf32>
    %331 = vector.extract_strided_slice %325 {offsets = [0, 128], sizes = [8, 128], strides = [1, 1]} : vector<8x256xf32> to vector<8x128xf32>
    %332 = math.tanh %331 : vector<8x128xf32>
    %333 = vector.extract_strided_slice %330 {offsets = [0, 0], sizes = [8, 64], strides = [1, 1]} : vector<8x256xf32> to vector<8x64xf32>
    %334 = vector.extract_strided_slice %330 {offsets = [0, 64], sizes = [8, 64], strides = [1, 1]} : vector<8x256xf32> to vector<8x64xf32>
    %335 = vector.extract_strided_slice %330 {offsets = [0, 128], sizes = [8, 64], strides = [1, 1]} : vector<8x256xf32> to vector<8x64xf32>
    %336 = vector.extract_strided_slice %332 {offsets = [0, 64], sizes = [8, 64], strides = [1, 1]} : vector<8x128xf32> to vector<8x64xf32>
    %337 = arith.mulf %334, %277 : vector<8x64xf32>
    %338 = arith.mulf %333, %336 : vector<8x64xf32>
    %339 = arith.addf %337, %338 : vector<8x64xf32>
    %340 = math.tanh %339 : vector<8x64xf32>
    %341 = arith.mulf %335, %340 : vector<8x64xf32>
    %342 = tpu.concatenate %320, %300 in 1 : vector<8x64xf32>, vector<8x64xf32> -> vector<8x128xf32>
    %343 = arith.truncf %342 : vector<8x128xf32> to vector<8x128xbf16>
    %cst_48 = arith.constant dense<0.000000e+00> : vector<8x256xf32>
    %344 = tpu.matmul %343, %1, %cst_48 {dimension_numbers = #tpu.dot_dimension_numbers<[1], [0], [0], [1], [0, 0, 1, 1], [], []>} : vector<8x128xbf16>, vector<128x256xbf16>, vector<8x256xf32> -> vector<8x256xf32>
    %345 = vector.broadcast %2 : vector<1x256xf32> to vector<8x256xf32>
    %346 = arith.addf %344, %345 : vector<8x256xf32>
    %347 = arith.negf %346 : vector<8x256xf32>
    %348 = math.exp %347 : vector<8x256xf32>
    %cst_49 = arith.constant 1.000000e+00 : f32
    %349 = vector.broadcast %cst_49 : f32 to vector<8x256xf32>
    %350 = arith.addf %349, %348 : vector<8x256xf32>
    %351 = arith.divf %349, %350 : vector<8x256xf32>
    %352 = vector.extract_strided_slice %346 {offsets = [0, 128], sizes = [8, 128], strides = [1, 1]} : vector<8x256xf32> to vector<8x128xf32>
    %353 = math.tanh %352 : vector<8x128xf32>
    %354 = vector.extract_strided_slice %351 {offsets = [0, 0], sizes = [8, 64], strides = [1, 1]} : vector<8x256xf32> to vector<8x64xf32>
    %355 = vector.extract_strided_slice %351 {offsets = [0, 64], sizes = [8, 64], strides = [1, 1]} : vector<8x256xf32> to vector<8x64xf32>
    %356 = vector.extract_strided_slice %351 {offsets = [0, 128], sizes = [8, 64], strides = [1, 1]} : vector<8x256xf32> to vector<8x64xf32>
    %357 = vector.extract_strided_slice %353 {offsets = [0, 64], sizes = [8, 64], strides = [1, 1]} : vector<8x128xf32> to vector<8x64xf32>
    %358 = arith.mulf %355, %298 : vector<8x64xf32>
    %359 = arith.mulf %354, %357 : vector<8x64xf32>
    %360 = arith.addf %358, %359 : vector<8x64xf32>
    %361 = math.tanh %360 : vector<8x64xf32>
    %362 = arith.mulf %356, %361 : vector<8x64xf32>
    %363 = vector.extract_strided_slice %10 {offsets = [48, 0], sizes = [8, 256], strides = [1, 1]} : vector<64x256xf32> to vector<8x256xf32>
    %364 = arith.truncf %320 : vector<8x64xf32> to vector<8x64xbf16>
    %cst_50 = arith.constant dense<0.000000e+00> : vector<8x256xf32>
    %365 = tpu.matmul %364, %0, %cst_50 {dimension_numbers = #tpu.dot_dimension_numbers<[1], [0], [0], [1], [0, 0, 1, 1], [], []>} : vector<8x64xbf16>, vector<64x256xbf16>, vector<8x256xf32> -> vector<8x256xf32>
    %366 = arith.addf %363, %365 : vector<8x256xf32>
    %367 = arith.negf %366 : vector<8x256xf32>
    %368 = math.exp %367 : vector<8x256xf32>
    %cst_51 = arith.constant 1.000000e+00 : f32
    %369 = vector.broadcast %cst_51 : f32 to vector<8x256xf32>
    %370 = arith.addf %369, %368 : vector<8x256xf32>
    %371 = arith.divf %369, %370 : vector<8x256xf32>
    %372 = vector.extract_strided_slice %366 {offsets = [0, 128], sizes = [8, 128], strides = [1, 1]} : vector<8x256xf32> to vector<8x128xf32>
    %373 = math.tanh %372 : vector<8x128xf32>
    %374 = vector.extract_strided_slice %371 {offsets = [0, 0], sizes = [8, 64], strides = [1, 1]} : vector<8x256xf32> to vector<8x64xf32>
    %375 = vector.extract_strided_slice %371 {offsets = [0, 64], sizes = [8, 64], strides = [1, 1]} : vector<8x256xf32> to vector<8x64xf32>
    %376 = vector.extract_strided_slice %371 {offsets = [0, 128], sizes = [8, 64], strides = [1, 1]} : vector<8x256xf32> to vector<8x64xf32>
    %377 = vector.extract_strided_slice %373 {offsets = [0, 64], sizes = [8, 64], strides = [1, 1]} : vector<8x128xf32> to vector<8x64xf32>
    %378 = arith.mulf %375, %318 : vector<8x64xf32>
    %379 = arith.mulf %374, %377 : vector<8x64xf32>
    %380 = arith.addf %378, %379 : vector<8x64xf32>
    %381 = math.tanh %380 : vector<8x64xf32>
    %382 = arith.mulf %376, %381 : vector<8x64xf32>
    %383 = tpu.concatenate %362, %341 in 1 : vector<8x64xf32>, vector<8x64xf32> -> vector<8x128xf32>
    %384 = arith.truncf %383 : vector<8x128xf32> to vector<8x128xbf16>
    %cst_52 = arith.constant dense<0.000000e+00> : vector<8x256xf32>
    %385 = tpu.matmul %384, %3, %cst_52 {dimension_numbers = #tpu.dot_dimension_numbers<[1], [0], [0], [1], [0, 0, 1, 1], [], []>} : vector<8x128xbf16>, vector<128x256xbf16>, vector<8x256xf32> -> vector<8x256xf32>
    %386 = vector.broadcast %4 : vector<1x256xf32> to vector<8x256xf32>
    %387 = arith.addf %385, %386 : vector<8x256xf32>
    %388 = arith.negf %387 : vector<8x256xf32>
    %389 = math.exp %388 : vector<8x256xf32>
    %cst_53 = arith.constant 1.000000e+00 : f32
    %390 = vector.broadcast %cst_53 : f32 to vector<8x256xf32>
    %391 = arith.addf %390, %389 : vector<8x256xf32>
    %392 = arith.divf %390, %391 : vector<8x256xf32>
    %393 = vector.extract_strided_slice %387 {offsets = [0, 128], sizes = [8, 128], strides = [1, 1]} : vector<8x256xf32> to vector<8x128xf32>
    %394 = math.tanh %393 : vector<8x128xf32>
    %395 = vector.extract_strided_slice %392 {offsets = [0, 0], sizes = [8, 64], strides = [1, 1]} : vector<8x256xf32> to vector<8x64xf32>
    %396 = vector.extract_strided_slice %392 {offsets = [0, 64], sizes = [8, 64], strides = [1, 1]} : vector<8x256xf32> to vector<8x64xf32>
    %397 = vector.extract_strided_slice %392 {offsets = [0, 128], sizes = [8, 64], strides = [1, 1]} : vector<8x256xf32> to vector<8x64xf32>
    %398 = vector.extract_strided_slice %394 {offsets = [0, 64], sizes = [8, 64], strides = [1, 1]} : vector<8x128xf32> to vector<8x64xf32>
    %399 = arith.mulf %396, %339 : vector<8x64xf32>
    %400 = arith.mulf %395, %398 : vector<8x64xf32>
    %401 = arith.addf %399, %400 : vector<8x64xf32>
    %402 = math.tanh %401 : vector<8x64xf32>
    %403 = arith.mulf %397, %402 : vector<8x64xf32>
    %404 = tpu.concatenate %382, %362 in 1 : vector<8x64xf32>, vector<8x64xf32> -> vector<8x128xf32>
    %405 = arith.truncf %404 : vector<8x128xf32> to vector<8x128xbf16>
    %cst_54 = arith.constant dense<0.000000e+00> : vector<8x256xf32>
    %406 = tpu.matmul %405, %1, %cst_54 {dimension_numbers = #tpu.dot_dimension_numbers<[1], [0], [0], [1], [0, 0, 1, 1], [], []>} : vector<8x128xbf16>, vector<128x256xbf16>, vector<8x256xf32> -> vector<8x256xf32>
    %407 = vector.broadcast %2 : vector<1x256xf32> to vector<8x256xf32>
    %408 = arith.addf %406, %407 : vector<8x256xf32>
    %409 = arith.negf %408 : vector<8x256xf32>
    %410 = math.exp %409 : vector<8x256xf32>
    %cst_55 = arith.constant 1.000000e+00 : f32
    %411 = vector.broadcast %cst_55 : f32 to vector<8x256xf32>
    %412 = arith.addf %411, %410 : vector<8x256xf32>
    %413 = arith.divf %411, %412 : vector<8x256xf32>
    %414 = vector.extract_strided_slice %408 {offsets = [0, 128], sizes = [8, 128], strides = [1, 1]} : vector<8x256xf32> to vector<8x128xf32>
    %415 = math.tanh %414 : vector<8x128xf32>
    %416 = vector.extract_strided_slice %413 {offsets = [0, 0], sizes = [8, 64], strides = [1, 1]} : vector<8x256xf32> to vector<8x64xf32>
    %417 = vector.extract_strided_slice %413 {offsets = [0, 64], sizes = [8, 64], strides = [1, 1]} : vector<8x256xf32> to vector<8x64xf32>
    %418 = vector.extract_strided_slice %413 {offsets = [0, 128], sizes = [8, 64], strides = [1, 1]} : vector<8x256xf32> to vector<8x64xf32>
    %419 = vector.extract_strided_slice %415 {offsets = [0, 64], sizes = [8, 64], strides = [1, 1]} : vector<8x128xf32> to vector<8x64xf32>
    %420 = arith.mulf %417, %360 : vector<8x64xf32>
    %421 = arith.mulf %416, %419 : vector<8x64xf32>
    %422 = arith.addf %420, %421 : vector<8x64xf32>
    %423 = math.tanh %422 : vector<8x64xf32>
    %424 = arith.mulf %418, %423 : vector<8x64xf32>
    %425 = vector.extract_strided_slice %10 {offsets = [56, 0], sizes = [8, 256], strides = [1, 1]} : vector<64x256xf32> to vector<8x256xf32>
    %426 = arith.truncf %382 : vector<8x64xf32> to vector<8x64xbf16>
    %cst_56 = arith.constant dense<0.000000e+00> : vector<8x256xf32>
    %427 = tpu.matmul %426, %0, %cst_56 {dimension_numbers = #tpu.dot_dimension_numbers<[1], [0], [0], [1], [0, 0, 1, 1], [], []>} : vector<8x64xbf16>, vector<64x256xbf16>, vector<8x256xf32> -> vector<8x256xf32>
    %428 = arith.addf %425, %427 : vector<8x256xf32>
    %429 = arith.negf %428 : vector<8x256xf32>
    %430 = math.exp %429 : vector<8x256xf32>
    %cst_57 = arith.constant 1.000000e+00 : f32
    %431 = vector.broadcast %cst_57 : f32 to vector<8x256xf32>
    %432 = arith.addf %431, %430 : vector<8x256xf32>
    %433 = arith.divf %431, %432 : vector<8x256xf32>
    %434 = vector.extract_strided_slice %428 {offsets = [0, 128], sizes = [8, 128], strides = [1, 1]} : vector<8x256xf32> to vector<8x128xf32>
    %435 = math.tanh %434 : vector<8x128xf32>
    %436 = vector.extract_strided_slice %433 {offsets = [0, 0], sizes = [8, 64], strides = [1, 1]} : vector<8x256xf32> to vector<8x64xf32>
    %437 = vector.extract_strided_slice %433 {offsets = [0, 64], sizes = [8, 64], strides = [1, 1]} : vector<8x256xf32> to vector<8x64xf32>
    %438 = vector.extract_strided_slice %433 {offsets = [0, 128], sizes = [8, 64], strides = [1, 1]} : vector<8x256xf32> to vector<8x64xf32>
    %439 = vector.extract_strided_slice %435 {offsets = [0, 64], sizes = [8, 64], strides = [1, 1]} : vector<8x128xf32> to vector<8x64xf32>
    %440 = arith.mulf %437, %380 : vector<8x64xf32>
    %441 = arith.mulf %436, %439 : vector<8x64xf32>
    %442 = arith.addf %440, %441 : vector<8x64xf32>
    %443 = math.tanh %442 : vector<8x64xf32>
    %444 = arith.mulf %438, %443 : vector<8x64xf32>
    %445 = tpu.concatenate %424, %403 in 1 : vector<8x64xf32>, vector<8x64xf32> -> vector<8x128xf32>
    %446 = arith.truncf %445 : vector<8x128xf32> to vector<8x128xbf16>
    %cst_58 = arith.constant dense<0.000000e+00> : vector<8x256xf32>
    %447 = tpu.matmul %446, %3, %cst_58 {dimension_numbers = #tpu.dot_dimension_numbers<[1], [0], [0], [1], [0, 0, 1, 1], [], []>} : vector<8x128xbf16>, vector<128x256xbf16>, vector<8x256xf32> -> vector<8x256xf32>
    %448 = vector.broadcast %4 : vector<1x256xf32> to vector<8x256xf32>
    %449 = arith.addf %447, %448 : vector<8x256xf32>
    %450 = arith.negf %449 : vector<8x256xf32>
    %451 = math.exp %450 : vector<8x256xf32>
    %cst_59 = arith.constant 1.000000e+00 : f32
    %452 = vector.broadcast %cst_59 : f32 to vector<8x256xf32>
    %453 = arith.addf %452, %451 : vector<8x256xf32>
    %454 = arith.divf %452, %453 : vector<8x256xf32>
    %455 = vector.extract_strided_slice %449 {offsets = [0, 128], sizes = [8, 128], strides = [1, 1]} : vector<8x256xf32> to vector<8x128xf32>
    %456 = math.tanh %455 : vector<8x128xf32>
    %457 = vector.extract_strided_slice %454 {offsets = [0, 0], sizes = [8, 64], strides = [1, 1]} : vector<8x256xf32> to vector<8x64xf32>
    %458 = vector.extract_strided_slice %454 {offsets = [0, 64], sizes = [8, 64], strides = [1, 1]} : vector<8x256xf32> to vector<8x64xf32>
    %459 = vector.extract_strided_slice %454 {offsets = [0, 128], sizes = [8, 64], strides = [1, 1]} : vector<8x256xf32> to vector<8x64xf32>
    %460 = vector.extract_strided_slice %456 {offsets = [0, 64], sizes = [8, 64], strides = [1, 1]} : vector<8x128xf32> to vector<8x64xf32>
    %461 = arith.mulf %458, %401 : vector<8x64xf32>
    %462 = arith.mulf %457, %460 : vector<8x64xf32>
    %463 = arith.addf %461, %462 : vector<8x64xf32>
    %464 = math.tanh %463 : vector<8x64xf32>
    %465 = arith.mulf %459, %464 : vector<8x64xf32>
    %466 = tpu.concatenate %444, %424 in 1 : vector<8x64xf32>, vector<8x64xf32> -> vector<8x128xf32>
    %467 = arith.truncf %466 : vector<8x128xf32> to vector<8x128xbf16>
    %cst_60 = arith.constant dense<0.000000e+00> : vector<8x256xf32>
    %468 = tpu.matmul %467, %1, %cst_60 {dimension_numbers = #tpu.dot_dimension_numbers<[1], [0], [0], [1], [0, 0, 1, 1], [], []>} : vector<8x128xbf16>, vector<128x256xbf16>, vector<8x256xf32> -> vector<8x256xf32>
    %469 = vector.broadcast %2 : vector<1x256xf32> to vector<8x256xf32>
    %470 = arith.addf %468, %469 : vector<8x256xf32>
    %471 = arith.negf %470 : vector<8x256xf32>
    %472 = math.exp %471 : vector<8x256xf32>
    %cst_61 = arith.constant 1.000000e+00 : f32
    %473 = vector.broadcast %cst_61 : f32 to vector<8x256xf32>
    %474 = arith.addf %473, %472 : vector<8x256xf32>
    %475 = arith.divf %473, %474 : vector<8x256xf32>
    %476 = vector.extract_strided_slice %470 {offsets = [0, 128], sizes = [8, 128], strides = [1, 1]} : vector<8x256xf32> to vector<8x128xf32>
    %477 = math.tanh %476 : vector<8x128xf32>
    %478 = vector.extract_strided_slice %475 {offsets = [0, 0], sizes = [8, 64], strides = [1, 1]} : vector<8x256xf32> to vector<8x64xf32>
    %479 = vector.extract_strided_slice %475 {offsets = [0, 64], sizes = [8, 64], strides = [1, 1]} : vector<8x256xf32> to vector<8x64xf32>
    %480 = vector.extract_strided_slice %475 {offsets = [0, 128], sizes = [8, 64], strides = [1, 1]} : vector<8x256xf32> to vector<8x64xf32>
    %481 = vector.extract_strided_slice %477 {offsets = [0, 64], sizes = [8, 64], strides = [1, 1]} : vector<8x128xf32> to vector<8x64xf32>
    %482 = arith.mulf %479, %422 : vector<8x64xf32>
    %483 = arith.mulf %478, %481 : vector<8x64xf32>
    %484 = arith.addf %482, %483 : vector<8x64xf32>
    %485 = math.tanh %484 : vector<8x64xf32>
    %486 = arith.mulf %480, %485 : vector<8x64xf32>
    %487 = tpu.concatenate %486, %465 in 1 : vector<8x64xf32>, vector<8x64xf32> -> vector<8x128xf32>
    %488 = arith.truncf %487 : vector<8x128xf32> to vector<8x128xbf16>
    %cst_62 = arith.constant dense<0.000000e+00> : vector<8x256xf32>
    %489 = tpu.matmul %488, %3, %cst_62 {dimension_numbers = #tpu.dot_dimension_numbers<[1], [0], [0], [1], [0, 0, 1, 1], [], []>} : vector<8x128xbf16>, vector<128x256xbf16>, vector<8x256xf32> -> vector<8x256xf32>
    %490 = vector.broadcast %4 : vector<1x256xf32> to vector<8x256xf32>
    %491 = arith.addf %489, %490 : vector<8x256xf32>
    %492 = arith.negf %491 : vector<8x256xf32>
    %493 = math.exp %492 : vector<8x256xf32>
    %cst_63 = arith.constant 1.000000e+00 : f32
    %494 = vector.broadcast %cst_63 : f32 to vector<8x256xf32>
    %495 = arith.addf %494, %493 : vector<8x256xf32>
    %496 = arith.divf %494, %495 : vector<8x256xf32>
    %497 = vector.extract_strided_slice %491 {offsets = [0, 128], sizes = [8, 128], strides = [1, 1]} : vector<8x256xf32> to vector<8x128xf32>
    %498 = math.tanh %497 : vector<8x128xf32>
    %499 = vector.extract_strided_slice %496 {offsets = [0, 0], sizes = [8, 64], strides = [1, 1]} : vector<8x256xf32> to vector<8x64xf32>
    %500 = vector.extract_strided_slice %496 {offsets = [0, 64], sizes = [8, 64], strides = [1, 1]} : vector<8x256xf32> to vector<8x64xf32>
    %501 = vector.extract_strided_slice %496 {offsets = [0, 128], sizes = [8, 64], strides = [1, 1]} : vector<8x256xf32> to vector<8x64xf32>
    %502 = vector.extract_strided_slice %498 {offsets = [0, 64], sizes = [8, 64], strides = [1, 1]} : vector<8x128xf32> to vector<8x64xf32>
    %503 = arith.mulf %500, %463 : vector<8x64xf32>
    %504 = arith.mulf %499, %502 : vector<8x64xf32>
    %505 = arith.addf %503, %504 : vector<8x64xf32>
    %506 = math.tanh %505 : vector<8x64xf32>
    %507 = arith.mulf %501, %506 : vector<8x64xf32>
    %508 = arith.truncf %507 : vector<8x64xf32> to vector<8x64xbf16>
    %c0_64 = arith.constant 0 : index
    %c0_65 = arith.constant 0 : index
    %509 = vector.load %arg8[%c0_64, %c0_65] : memref<64x10xbf16, #tpu.memory_space<vmem>>, vector<64x10xbf16>
    %cst_66 = arith.constant dense<0.000000e+00> : vector<8x10xf32>
    %510 = tpu.matmul %508, %509, %cst_66 {dimension_numbers = #tpu.dot_dimension_numbers<[1], [0], [0], [1], [0, 0, 1, 1], [], []>} : vector<8x64xbf16>, vector<64x10xbf16>, vector<8x10xf32> -> vector<8x10xf32>
    %c0_67 = arith.constant 0 : index
    %c0_68 = arith.constant 0 : index
    %511 = vector.load %arg9[%c0_67, %c0_68] : memref<1x10xf32, #tpu.memory_space<vmem>>, vector<1x10xf32>
    %512 = vector.broadcast %511 : vector<1x10xf32> to vector<8x10xf32>
    %513 = arith.addf %510, %512 : vector<8x10xf32>
    %c0_69 = arith.constant 0 : index
    %c0_70 = arith.constant 0 : index
    %514 = vector.load %arg10[%c0_69, %c0_70] : memref<8x10xf32, #tpu.memory_space<vmem>>, vector<8x10xf32>
    tpu.vector_store %arg10[%c0_69, %c0_70], %513 {strides = array<i32>} : memref<8x10xf32, #tpu.memory_space<vmem>>, vector<8x10xf32>,
    return
  }
}

</mosaic_0001>

<bundles_post_ra>
// kernel: tpu_custom_call.1
= control target key start
LH: loop header
LB: loop body
LE: loop exit
PB: predicated region body
PF: predicated region fallthrough
CT: control target
= control target key end

     0   :  { %15 = vsyncpa [#allocation3], 0  ;;  %s4153_s0 = inlined_call_operand.vmem [shape: bf16[64,28], index: 0, kind: input, shape index: {}]   ;;  %s4154_s1 = inlined_call_operand.hbm [shape: bf16[28,256], index: 1, kind: input, shape index: {}]   ;;  %s4155_s2 = inlined_call_operand.vmem [shape: bf16[64,256], index: 2, kind: input, shape index: {}]   ;;  %s4156_s3 = inlined_call_operand.vmem [shape: f32[1,256], index: 3, kind: input, shape index: {}]   ;;  %s4157_s4 = inlined_call_operand.hbm [shape: bf16[128,256], index: 4, kind: input, shape index: {}]   ;;  %s4158_s5 = inlined_call_operand.vmem [shape: f32[1,256], index: 5, kind: input, shape index: {}]   ;;  %s4159_s6 = inlined_call_operand.hbm [shape: bf16[128,256], index: 6, kind: input, shape index: {}]   ;;  %s4160_s7 = inlined_call_operand.vmem [shape: f32[1,256], index: 7, kind: input, shape index: {}]   ;;  %s4161_s8 = inlined_call_operand.vmem [shape: bf16[64,10], index: 8, kind: input, shape index: {}]   ;;  %s4162_s9 = inlined_call_operand.vmem [shape: f32[1,10], index: 9, kind: input, shape index: {}]   ;;  %s4163_s10 = inlined_call_operand.hbm [shape: f32[8,10], index: 10, kind: output, shape index: {}]  }
   0x1   :  { %16 = vsyncpa [#allocation6], 0 }
   0x2   :  { %17 = vsyncpa [#allocation4], 0  ;;  %s3081_s13 = smov [#allocation5]   ;;  %s3082_s15 = smov [#allocation2]  }
   0x3   :  { %s41_s14 = sshll.u32 %s3081_s13, 4  ;;  %s25_s16 = sshll.u32 %s3082_s15, 4  ;;  %s42_s14 = int_to_ptr.vmem [resolvable:$true] %s41_s14  ;;  %s3146_s16 = int_to_ptr.vmem [resolvable:$true] %s25_s16 }
   0x4   :  { %s2987_s19 = scalar_lea.hbm %s4157_s4, 2048 }
   0x5   :  { %p2988_p0 = scmp.ne.s32.totalorder %s4157_s4, %s2987_s19  ;;  %p2991_p1 = scmp.lt.u32.totalorder %s2987_s19, %s4157_s4 }
   0x7   :  { %p2993_p2 = pnand %p2991_p1, %p2988_p0 }
   0x9   :  { %2996 = shalt.err (!%p2993_p2)
}
   0xa   :  { %s2997_s24 = scalar_lea.vmem %s42_s14, 2048  ;;  %p3002_p4 = scmp.lt.s32.totalorder %s42_s14, %s42_s14 }
   0xb   :  { %p2998_p3 = scmp.ne.s32.totalorder %s42_s14, %s2997_s24  ;;  %p3003_p5 = scmp.lt.s32.totalorder %s2997_s24, %s2997_s24 }
   0xd   :  { %p3004_p6 = por %p3003_p5, %p3002_p4 }
   0xf   :  { %p3005_p7 = pnand %p3004_p6, %p2998_p3 }
  0x11   :  { %3008 = shalt.err (!%p3005_p7)
}
  0x12   :  { %s3083_s25 = smov 128   ;;  %s3084_s26 = smov 8  }
  0x13   :  { %47 = dma.hbm_to_vmem [thread:$0]  %s4157_s4, 2048, %s42_s14, [#allocation6], %s3083_s25, %s3083_s25, %s3084_s26  }
  0x14   :  { %s3009_s11 = scalar_lea.hbm %s4154_s1, 512 }
  0x15   :  { %p3010_p8 = scmp.ne.s32.totalorder %s4154_s1, %s3009_s11  ;;  %p3013_p9 = scmp.lt.u32.totalorder %s3009_s11, %s4154_s1 }
  0x17   :  { %p3015_p10 = pnand %p3013_p9, %p3010_p8 }
  0x19   :  { %3018 = shalt.err (!%p3015_p10)
}
  0x1a   :  { %s3019_s18 = scalar_lea.vmem %s3146_s16, 512  ;;  %p3024_p12 = scmp.lt.s32.totalorder %s3146_s16, %s3146_s16 }
  0x1b   :  { %p3020_p11 = scmp.ne.s32.totalorder %s3146_s16, %s3019_s18  ;;  %p3025_p13 = scmp.lt.s32.totalorder %s3019_s18, %s3019_s18 }
  0x1d   :  { %p3026_p0 = por %p3025_p13, %p3024_p12 }
  0x1f   :  { %p3027_p1 = pnand %p3026_p0, %p3020_p11 }
  0x21   :  { %3030 = shalt.err (!%p3027_p1)
}
  0x22   :  { %31 = dma.hbm_to_vmem [thread:$0]  %s4154_s1, 512, %s3146_s16, [#allocation3], %s3083_s25, %s3083_s25, %s3084_s26  }
  0x23   :  { %s3085_s19 = smov [#allocation7]   ;;  %s3031_s23 = scalar_lea.hbm %s4159_s6, 2048 }
  0x24   :  { %s55_s20 = sshll.u32 %s3085_s19, 4  ;;  %p3032_p2 = scmp.ne.s32.totalorder %s4159_s6, %s3031_s23  ;;  %s56_s20 = int_to_ptr.vmem [resolvable:$true] %s55_s20 }
  0x25   :  { %p3035_p3 = scmp.lt.u32.totalorder %s3031_s23, %s4159_s6 }
  0x27   :  { %p3037_p4 = pnand %p3035_p3, %p3032_p2 }
  0x29   :  { %3040 = shalt.err (!%p3037_p4)
}
  0x2a   :  { %s3041_s30 = scalar_lea.vmem %s56_s20, 2048  ;;  %p3046_p6 = scmp.lt.s32.totalorder %s56_s20, %s56_s20 }
  0x2b   :  { %p3042_p5 = scmp.ne.s32.totalorder %s56_s20, %s3041_s30  ;;  %p3047_p7 = scmp.lt.s32.totalorder %s3041_s30, %s3041_s30 }
  0x2d   :  { %p3048_p8 = por %p3047_p7, %p3046_p6 }
  0x2f   :  { %p3049_p9 = pnand %p3048_p8, %p3042_p5 }
  0x31   :  { %3052 = shalt.err (!%p3049_p9)
}
  0x32   :  { %61 = dma.hbm_to_vmem [thread:$0]  %s4159_s6, 2048, %s56_s20, [#allocation6], %s3083_s25, %s3083_s25, %s3084_s26  }
  0x33   :  { %3075 = dma.done.wait [#allocation3], 512  }
  0x34   :  { %3076 = vsyncadd [#allocation3], 4294966784 }
  0x35   :  { %3077 = dma.done.wait [#allocation6], 4096  }
  0x36   :  { %3078 = vsyncadd [#allocation6], 4294963200  ;;  %v4164_v0 = vmov 0   ;;  %v3203_v1 = vld [vmem:[%s4155_s2 + $0x4] ss:$8 sps:$4 sm:$0xff]   ;;  %vm195_vm0 = vcmask 1045504   ;;  %v134_v15 = vlaneseq }
  0x37   :  { %234 = vmatprep.mubr.bf16.mxu0 %v4164_v0  ;;  %351 = vmatprep.mubr.bf16.mxu1 %v4164_v0  ;;  %v3208_v2 = vld [vmem:[%s4155_s2] ss:$8 sps:$4 sm:$0xff]   ;;  %v2588_v3 = vld [vmem:[#allocation2 + $0x4] ss:$8 sps:$4 sm:$0xff]   ;;  %v3215_v5 = vld [vmem:[%s4155_s2 + $0x14] ss:$8 sps:$4 sm:$0xff]  }
  0x38   :  { %319 = vmatprep.subr.bf16.mxu1 %v3203_v1  ;;  %v2590_v4 = vld [vmem:[#allocation2] ss:$8 sps:$4 sm:$0xff]   ;;  %v3220_v6 = vld [vmem:[%s4155_s2 + $0x10] ss:$8 sps:$4 sm:$0xff]   ;;  %202 = vmatprep.subr.bf16.mxu0 %v2588_v3  ;;  %v3226_v9 = vld [vmem:[%s4155_s2 + $0x24] ss:$8 sps:$4 sm:$0xff]  }
  0x39   :  { %320 = vmatpush1.bf16.msra.mxu1 %v3208_v2  ;;  %v2594_v7 = vld [vmem:[#allocation2 + $0x14] ss:$8 sps:$4 sm:$0x3f]   ;;  %203 = vmatpush1.bf16.msra.mxu0 %v2590_v4  ;;  %v2596_v8 = vld [vmem:[#allocation2 + $0x10] ss:$8 sps:$4 sm:$0x3f]  }
  0x3a   :  { %321 = vmatprep.subr.bf16.mxu1 %v3215_v5  ;;  %2446 = vmatprep.subr.msk.bf16.mxu0 %vm195_vm0, %v2594_v7  ;;  %v197_v10 = vsel %vm195_vm0, %v2596_v8, 0  ;;  %v3232_v11 = vld [vmem:[%s4155_s2 + $0x20] ss:$8 sps:$4 sm:$0xff]   ;;  %v3241_v13 = vld [vmem:[%s4155_s2 + $0x34] ss:$8 sps:$4 sm:$0xff]   ;;  %vm182_vm1 = vcmask 228352  }
  0x3b   :  { %v2600_v12 = vld [vmem:[%s4153_s0] sm:$0xff]   ;;  %v3246_v14 = vld [vmem:[%s4155_s2 + $0x30] ss:$8 sps:$4 sm:$0xff]   ;;  %v135_v16 = vshrl.u32 %v134_v15, 7  ;;  %v3291_v43 = vld [vmem:[#allocation5 + $0x14] ss:$8 sps:$4 sm:$0xff]  }
  0x3c   :  { %v132_v18 = vld [vmem:[%s4156_s3] sm:$0x3]  ;;  %s3087_s3 = smov 64   ;;  %v3287_v41 = vld [vmem:[#allocation5 + $0x4] ss:$8 sps:$4 sm:$0xff]   ;;  %v2617_v49 = vld [vmem:[%s4153_s0 + $0x10] sm:$0xff]  }
  0x3d   :  { %322 = vmatpush1.bf16.msra.mxu1 %v3220_v6  ;;  %205 = vmatpush1.bf16.msra.mxu0 %v197_v10  ;;  %v3263_v17 = vsub.s32 0, %v135_v16  ;;  %v3268_v19 = vsub.s32 1, %v135_v16  ;;  %v3289_v42 = vld [vmem:[#allocation5] ss:$8 sps:$4 sm:$0xff]   ;;  %v3298_v45 = vld [vmem:[#allocation5 + $0x10] ss:$8 sps:$4 sm:$0xff]  }
  0x3e   :  { %323 = vmatprep.subr.bf16.mxu1 %v3226_v9  ;;  %v2610_v44 = vld [vmem:[%s4153_s0 + $0x8] sm:$0xff]   ;;  %485 = vmatprep.subr.bf16.mxu0 %v3287_v41  ;;  %v3309_v48 = vld [vmem:[#allocation5 + $0x34] ss:$8 sps:$4 sm:$0xff]   ;;  %v3315_v50 = vld [vmem:[#allocation5 + $0x30] ss:$8 sps:$4 sm:$0xff]   ;;  %vm315_vm2 = vcmask 523264  }
  0x3f   :  { %v3271_v20 = vrot.slane %v132_v18, %v3263_v17  ;;  %v3274_v22 = vrot.slane %v132_v18, %v3268_v19  ;;  %v3302_v46 = vld [vmem:[#allocation5 + $0x24] ss:$8 sps:$4 sm:$0xff]   ;;  %v3306_v47 = vld [vmem:[#allocation5 + $0x20] ss:$8 sps:$4 sm:$0xff]   ;;  %v3326_v53 = vld [vmem:[#allocation5 + $0x54] ss:$8 sps:$4 sm:$0xff]  }
  0x40   :  { %2447 = vmatmul.mubr.msk.bf16.vlgmr.msra.gmra.mrb[0].mxu0 %vm182_vm1, %v2600_v12  ;;  %v3319_v51 = vld [vmem:[#allocation5 + $0x44] ss:$8 sps:$4 sm:$0xff]   ;;  %v3323_v52 = vld [vmem:[#allocation5 + $0x40] ss:$8 sps:$4 sm:$0xff]   ;;  %v2624_v54 = vld [vmem:[%s4153_s0 + $0x18] sm:$0xff]   ;;  %vm3089_vm4 = vmmov 0  }
  0x41   :  { %324 = vmatpush1.bf16.msra.mxu1 %v3232_v11  ;;  %244 = vmatprep.mubr.bf16.mxu0 %v4164_v0  ;;  %4183 = vst [vmem:[#allocation12_spill] sm:$0xff] %v3271_v20  ;;  %4184 = vst [vmem:[#allocation13_spill] sm:$0xff] %v3274_v22  ;;  %v3332_v55 = vld [vmem:[#allocation5 + $0x50] ss:$8 sps:$4 sm:$0xff]   ;;  %v3336_v56 = vld [vmem:[#allocation5 + $0x64] ss:$8 sps:$4 sm:$0xff]  }
  0x42   :  { %325 = vmatprep.subr.bf16.mxu1 %v3241_v13  ;;  %486 = vmatpush1.bf16.msra.mxu0 %v3289_v42  ;;  %v3340_v57 = vld [vmem:[#allocation5 + $0x60] ss:$8 sps:$4 sm:$0xff]   ;;  %v3343_v58 = vld [vmem:[#allocation5 + $0x74] ss:$8 sps:$4 sm:$0xff]   ;;  %v3347_v61 = vld [vmem:[#allocation5 + $0x70] ss:$8 sps:$4 sm:$0xff]  }
  0x43   :  { %487 = vmatprep.subr.bf16.mxu0 %v3291_v43  ;;  %vm3382_vm3 = vmpackc.low %vm315_vm2, %vm315_vm2  ;;  %vm2420_vm5 = vcmask 80896  }
  0x45   :  { %326 = vmatpush1.bf16.msra.mxu1 %v3246_v14 }
  0x46   :  { %560 = vmatprep.subr.bf16.mxu1 %v3203_v1  ;;  %488 = vmatpush1.bf16.msra.mxu0 %v3298_v45 }
  0x47   :  { %489 = vmatprep.subr.bf16.mxu0 %v3302_v46 }
  0x48   :  { %352 = vmatmul.mubr.bf16.vlgmr.msra.gmra.mrb[0].mxu1 %v4164_v0  ;;  %2448 = vmatmul.mubr.msk.bf16.gmra.mrb[4].mxu0 %vm182_vm1, %v2610_v44 }
  0x49   :  { %561 = vmatpush1.bf16.msra.mxu1 %v3208_v2  ;;  %592 = vmatprep.mubr.bf16.mxu1 %v4164_v0 }
  0x4a   :  { %562 = vmatprep.subr.bf16.mxu1 %v3215_v5  ;;  %254 = vmatprep.mubr.bf16.mxu0 %v4164_v0 }
  0x4b   :  { %490 = vmatpush1.bf16.msra.mxu0 %v3306_v47 }
  0x4c   :  { %491 = vmatprep.subr.bf16.mxu0 %v3309_v48 }
  0x4d   :  { %563 = vmatpush1.bf16.msra.mxu1 %v3220_v6 }
  0x4e   :  { %564 = vmatprep.subr.bf16.mxu1 %v3226_v9 }
  0x4f   :  { %492 = vmatpush1.bf16.msra.mxu0 %v3315_v50 }
  0x50   :  { %2449 = vmatmul.mubr.msk.bf16.gmra.mrb[8].mxu0 %vm182_vm1, %v2617_v49  ;;  %493 = vmatprep.subr.bf16.mxu0 %v3319_v51 }
  0x51   :  { %565 = vmatpush1.bf16.msra.mxu1 %v3232_v11  ;;  %264 = vmatprep.mubr.bf16.mxu0 %v4164_v0 }
  0x52   :  { %566 = vmatprep.subr.bf16.mxu1 %v3241_v13 }
  0x53   :  { %494 = vmatpush1.bf16.msra.mxu0 %v3323_v52 }
  0x54   :  { %495 = vmatprep.subr.bf16.mxu0 %v3326_v53 }
  0x55   :  { %567 = vmatpush1.bf16.msra.mxu1 %v3246_v14 }
  0x57   :  { %496 = vmatpush1.bf16.msra.mxu0 %v3332_v55 }
  0x58   :  { %2450 = vmatmul.mubr.msk.bf16.gmra.mrb[12].mxu0 %vm182_vm1, %v2624_v54  ;;  %497 = vmatprep.subr.bf16.mxu0 %v3336_v56 }
  0x59   :  { %517 = vmatprep.mubr.bf16.mxu0 %v4164_v0 }
  0x5b   :  { %498 = vmatpush1.bf16.msra.mxu0 %v3340_v57 }
  0x5c   :  { %499 = vmatprep.subr.bf16.mxu0 %v3343_v58 }
  0x5f   :  { %500 = vmatpush1.bf16.msra.mxu0 %v3347_v61 }
  0x60   :  { %803 = vmatprep.subr.bf16.mxu0 %v3287_v41 }
 0x113   :  { %v236_v21 = vpop.f32.mrb[0].mxu0 }
 0x114   :  { %v238_v23 = vpop.f32.mrb[1].mxu0  ;;  %v237_v25 = vadd.f32 %v236_v21, %v3271_v20 }
 0x115   :  { %v3276_v24 = vpop.f32.mrb[2].mxu0  ;;  %v239_v27 = vadd.f32 %v238_v23, %v3274_v22 }
 0x116   :  { %v3279_v26 = vpop.f32.mrb[3].mxu0 }
 0x11b   :  { %v353_v28 = vpop.f32.mrb[0].mxu1  ;;  %v3356_v4 = vpop.f32.mrb[4].mxu0 }
 0x11c   :  { %v360_v29 = vadd.f32 %v353_v28, %v237_v25  ;;  %v355_v30 = vpop.f32.mrb[1].mxu1  ;;  %v3358_v7 = vpop.f32.mrb[5].mxu0 }
 0x11d   :  { %v3282_v31 = vadd.f32 %v355_v30, %v239_v27  ;;  %v357_v32 = vpop.f32.mrb[2].mxu1  ;;  %v3360_v8 = vpop.f32.mrb[6].mxu0 }
 0x11e   :  { %v358_v33 = vpop.f32.mrb[3].mxu1  ;;  %v2459_v35 = vmul.f32 -1.442695, %v360_v29  ;;  %4185 = vst [vmem:[#allocation14_spill] sm:$0xff] %v3360_v8  ;;  %v3362_v10 = vpop.f32.mrb[7].mxu0 }
 0x11f   :  { %2659 = vtanh.f32 %v3282_v31  ;;  %v2460_v3 = vmul.f32 -1.442695, %v3282_v31  ;;  %4186 = vst [vmem:[#allocation15_spill] sm:$0xff] %v3362_v10 }
 0x120   :  { %2661 = vpow2.f32 %v2459_v35  ;;  %v102_v35 = vld [vmem:[%s4158_s5] sm:$0x3] }
 0x123   :  { %v3364_v12 = vpop.f32.mrb[8].mxu0 }
 0x124   :  { %4187 = vst [vmem:[#allocation16_spill] sm:$0xff] %v3364_v12  ;;  %v3366_v15 = vpop.f32.mrb[9].mxu0 }
 0x125   :  { %4188 = vst [vmem:[#allocation17_spill] sm:$0xff] %v3366_v15  ;;  %v3368_v18 = vpop.f32.mrb[10].mxu0 }
 0x126   :  { %4189 = vst [vmem:[#allocation18_spill] sm:$0xff] %v3368_v18  ;;  %v3370_v21 = vpop.f32.mrb[11].mxu0 }
 0x127   :  { %4190 = vst [vmem:[#allocation19_spill] sm:$0xff] %v3370_v21 }
 0x129   :  { %v2660_v34 = vpop.eup %2659 }
 0x12a   :  { %377 = vrot.lane.b32.xlu0 %v2660_v34, %s3087_s3  ;;  %v2662_v36 = vpop.eup %2661 }
 0x12b   :  { %v368_v37 = vadd.f32 1.0, %v2662_v36  ;;  %v3372_v25 = vpop.f32.mrb[12].mxu0  ;;  %v3410_v36 = vrot.slane %v102_v35, %v3268_v19 }
 0x12c   :  { %4191 = vst [vmem:[#allocation20_spill] sm:$0xff] %v3372_v25  ;;  %v3374_v27 = vpop.f32.mrb[13].mxu0  ;;  %v3481_v25 = vld [vmem:[#allocation7 + $0x70] ss:$8 sps:$4 sm:$0xff]  }
 0x12d   :  { %2663 = vrcp.f32 %v368_v37  ;;  %4192 = vst [vmem:[#allocation21_spill] sm:$0xff] %v3374_v27  ;;  %v3376_v28 = vpop.f32.mrb[14].mxu0  ;;  %4197 = vst [vmem:[#allocation24_spill] sm:$0xff] %v3410_v36  ;;  %v241_v37 = vadd.f32 %v3276_v24, %v3271_v20 }
 0x12e   :  { %4193 = vst [vmem:[#allocation22_spill] sm:$0xff] %v3376_v28  ;;  %v3378_v29 = vpop.f32.mrb[15].mxu0 }
 0x12f   :  { %4194 = vst [vmem:[#allocation23_spill] sm:$0xff] %v3378_v29 }
 0x137   :  { %v2664_v38 = vpop.eup %2663 }
 0x138   :  { %v375_v59 = vmul.f32 0.0, %v2664_v38 }
 0x19c   :  { %v378_v39 = vpop.permute.xlu0 %377 }
 0x19d   :  { %v380_v40 = vmul.f32 %v2664_v38, %v378_v39  ;;  %v243_v38 = vadd.f32 %v3279_v26, %v3274_v22 }
 0x19f   :  { %382 = vrot.lane.b32.xlu0 %v380_v40, %s3087_s3 }
 0x211   :  { %v383_v60 = vpop.permute.xlu0 %382 }
 0x212   :  { %v3349_v62 = vadd.f32 %v383_v60, %v375_v59 }
 0x214   :  { %2665 = vtanh.f32 %v3349_v62 }
 0x215   :  { %2667 = vpow2.f32 %v2460_v3 }
 0x21e   :  { %v2666_v63 = vpop.eup %2665 }
 0x21f   :  { %388 = vrot.lane.b32.xlu1 %v2666_v63, %s3087_s3  ;;  %v2668_v16 = vpop.eup %2667 }
 0x220   :  { %v369_v23 = vadd.f32 1.0, %v2668_v16 }
 0x222   :  { %2669 = vrcp.f32 %v369_v23 }
 0x22c   :  { %v2670_v30 = vpop.eup %2669 }
 0x291   :  { %v389_v31 = vpop.permute.xlu1 %388 }
 0x292   :  { %v391_v32 = vmul.f32 %v2670_v30, %v389_v31  ;;  %v3426_v30 = vrot.slane %v102_v35, %v3263_v17 }
 0x294   :  { %v2478_v34 = vpack.c.bf16 %v391_v32, %v391_v32 }
 0x296   :  { %2479 = vmatmul.mubr.msk.bf16.vlgmr.msra.gmra.mrb[16].mxu0 %vm3382_vm3, %v2478_v34  ;;  %2482 = vmatmul.mubr.msk.bf16.vlgmr.msra.gmra.mrb[4].mxu1 %vm315_vm2, %v2478_v34 }
 0x297   :  { %758 = vmatprep.mubr.bf16.mxu1 %v4164_v0  ;;  %804 = vmatpush1.bf16.msra.mxu0 %v3289_v42 }
 0x298   :  { %805 = vmatprep.subr.bf16.mxu0 %v3291_v43  ;;  %835 = vmatprep.mubr.bf16.mxu0 %v4164_v0 }
 0x29b   :  { %806 = vmatpush1.bf16.msra.mxu0 %v3298_v45 }
 0x29c   :  { %807 = vmatprep.subr.bf16.mxu0 %v3302_v46 }
 0x29f   :  { %808 = vmatpush1.bf16.msra.mxu0 %v3306_v47 }
 0x2a0   :  { %809 = vmatprep.subr.bf16.mxu0 %v3309_v48 }
 0x2a3   :  { %810 = vmatpush1.bf16.msra.mxu0 %v3315_v50 }
 0x2a4   :  { %811 = vmatprep.subr.bf16.mxu0 %v3319_v51 }
 0x2a7   :  { %812 = vmatpush1.bf16.msra.mxu0 %v3323_v52 }
 0x2a8   :  { %813 = vmatprep.subr.bf16.mxu0 %v3326_v53 }
 0x2ab   :  { %814 = vmatpush1.bf16.msra.mxu0 %v3332_v55 }
 0x2ac   :  { %815 = vmatprep.subr.bf16.mxu0 %v3336_v56 }
 0x2af   :  { %816 = vmatpush1.bf16.msra.mxu0 %v3340_v57 }
 0x2b0   :  { %817 = vmatprep.subr.bf16.mxu0 %v3343_v58 }
 0x2b3   :  { %818 = vmatpush1.bf16.msra.mxu0 %v3347_v61 }
 0x369   :  { %v519_v39 = vpop.f32.mrb[16].mxu0  ;;  %v594_v40 = vpop.f32.mrb[4].mxu1 }
 0x36a   :  { %v601_v44 = vadd.f32 %v594_v40, %v241_v37  ;;  %v521_v49 = vpop.f32.mrb[17].mxu0  ;;  %v596_v54 = vpop.f32.mrb[5].mxu1  ;;  %v520_v31 = vadd.f32 %v519_v39, %v3426_v30  ;;  %v3431_v39 = vld [vmem:[#allocation7 + $0x4] ss:$8 sps:$4 sm:$0xff]  }
 0x36b   :  { %v3417_v59 = vadd.f32 %v521_v49, %v3410_v36  ;;  %v3419_v60 = vadd.f32 %v596_v54, %v243_v38  ;;  %v523_v63 = vpop.f32.mrb[18].mxu0  ;;  %v598_v3 = vpop.f32.mrb[6].mxu1  ;;  %726 = vmatprep.subr.bf16.mxu1 %v3431_v39  ;;  %957 = vmatprep.subr.bf16.mxu0 %v3431_v39 }
 0x36c   :  { %v524_v16 = vpop.f32.mrb[19].mxu0  ;;  %v599_v23 = vpop.f32.mrb[7].mxu1  ;;  %v2480_v32 = vmul.f32 -1.442695, %v520_v31  ;;  %v2483_v34 = vmul.f32 -1.442695, %v601_v44 }
 0x36d   :  { %2671 = vtanh.f32 %v3417_v59  ;;  %v3433_v44 = vld [vmem:[#allocation7] ss:$8 sps:$4 sm:$0xff]   ;;  %v3443_v31 = vld [vmem:[#allocation7 + $0x24] ss:$8 sps:$4 sm:$0xff]  }
 0x36e   :  { %2673 = vtanh.f32 %v3419_v60  ;;  %727 = vmatpush1.bf16.msra.mxu1 %v3433_v44 }
 0x36f   :  { %2675 = vpow2.f32 %v2480_v32  ;;  %v3446_v32 = vld [vmem:[#allocation7 + $0x20] ss:$8 sps:$4 sm:$0xff]  }
 0x370   :  { %2677 = vpow2.f32 %v2483_v34  ;;  %v3449_v34 = vld [vmem:[#allocation7 + $0x34] ss:$8 sps:$4 sm:$0xff]  }
 0x377   :  { %v2672_v24 = vpop.eup %2671 }
 0x378   :  { %541 = vrot.lane.b32.xlu1 %v2672_v24, %s3087_s3  ;;  %v2674_v26 = vpop.eup %2673  ;;  %v3435_v24 = vld [vmem:[#allocation7 + $0x14] ss:$8 sps:$4 sm:$0xff]  }
 0x379   :  { %618 = vrot.lane.b32.xlu0 %v2674_v26, %s3087_s3  ;;  %v2676_v37 = vpop.eup %2675  ;;  %v3440_v26 = vld [vmem:[#allocation7 + $0x10] ss:$8 sps:$4 sm:$0xff]   ;;  %728 = vmatprep.subr.bf16.mxu1 %v3435_v24 }
 0x37a   :  { %v532_v38 = vadd.f32 1.0, %v2676_v37  ;;  %v2678_v40 = vpop.eup %2677  ;;  %729 = vmatpush1.bf16.msra.mxu1 %v3440_v26  ;;  %v3452_v37 = vld [vmem:[#allocation7 + $0x30] ss:$8 sps:$4 sm:$0xff]  }
 0x37b   :  { %v609_v49 = vadd.f32 1.0, %v2678_v40  ;;  %730 = vmatprep.subr.bf16.mxu1 %v3443_v31  ;;  %v3458_v40 = vld [vmem:[#allocation7 + $0x40] ss:$8 sps:$4 sm:$0xff]  }
 0x37c   :  { %2679 = vrcp.f32 %v532_v38  ;;  %v3455_v38 = vld [vmem:[#allocation7 + $0x44] ss:$8 sps:$4 sm:$0xff]  }
 0x37d   :  { %2681 = vrcp.f32 %v609_v49  ;;  %v3461_v49 = vld [vmem:[#allocation7 + $0x54] ss:$8 sps:$4 sm:$0xff]  }
 0x37e   :  { %731 = vmatpush1.bf16.msra.mxu1 %v3446_v32 }
 0x37f   :  { %732 = vmatprep.subr.bf16.mxu1 %v3449_v34 }
 0x382   :  { %733 = vmatpush1.bf16.msra.mxu1 %v3452_v37 }
 0x383   :  { %734 = vmatprep.subr.bf16.mxu1 %v3455_v38 }
 0x386   :  { %v2680_v54 = vpop.eup %2679  ;;  %735 = vmatpush1.bf16.msra.mxu1 %v3458_v40 }
 0x387   :  { %v2682_v16 = vpop.eup %2681  ;;  %736 = vmatprep.subr.bf16.mxu1 %v3461_v49  ;;  %v539_v0 = vmul.f32 0.0, %v2680_v54 }
 0x388   :  { %v616_v27 = vmul.f32 %v2682_v16, %v3349_v62 }
 0x3ea   :  { %v542_v63 = vpop.permute.xlu1 %541 }
 0x3eb   :  { %v544_v3 = vmul.f32 %v2680_v54, %v542_v63  ;;  %v619_v35 = vpop.permute.xlu0 %618  ;;  %v3464_v63 = vld [vmem:[#allocation7 + $0x50] ss:$8 sps:$4 sm:$0xff]   ;;  %v2484_v54 = vmul.f32 -1.442695, %v3419_v60 }
 0x3ec   :  { %v621_v23 = vmul.f32 %v2682_v16, %v619_v35  ;;  %737 = vmatpush1.bf16.msra.mxu1 %v3464_v63  ;;  %v3470_v35 = vld [vmem:[#allocation7 + $0x60] ss:$8 sps:$4 sm:$0xff]  }
 0x3ed   :  { %546 = vrot.lane.b32.xlu1 %v544_v3, %s3087_s3  ;;  %v3467_v3 = vld [vmem:[#allocation7 + $0x64] ss:$8 sps:$4 sm:$0xff]  }
 0x3ee   :  { %623 = vrot.lane.b32.xlu0 %v621_v23, %s3087_s3  ;;  %738 = vmatprep.subr.bf16.mxu1 %v3467_v3  ;;  %v3473_v23 = vld [vmem:[#allocation7 + $0x74] ss:$8 sps:$4 sm:$0xff]  }
 0x3f0   :  { %739 = vmatpush1.bf16.msra.mxu1 %v3470_v35 }
 0x3f1   :  { %740 = vmatprep.subr.bf16.mxu1 %v3473_v23 }
 0x3f4   :  { %741 = vmatpush1.bf16.msra.mxu1 %v3481_v25 }
 0x3f5   :  { %878 = vmatprep.subr.bf16.mxu1 %v3203_v1 }
 0x45f   :  { %v547_v29 = vpop.permute.xlu1 %546 }
 0x460   :  { %v3477_v28 = vadd.f32 %v547_v29, %v539_v0  ;;  %v624_v21 = vpop.permute.xlu0 %623  ;;  %v2481_v29 = vmul.f32 -1.442695, %v3417_v59 }
 0x461   :  { %v3483_v18 = vadd.f32 %v624_v21, %v616_v27 }
 0x462   :  { %2683 = vtanh.f32 %v3477_v28 }
 0x463   :  { %4198 = vst [vmem:[#allocation25_spill] sm:$0xff] %v3483_v18  ;;  %2685 = vtanh.f32 %v3483_v18 }
 0x464   :  { %2687 = vpow2.f32 %v2481_v29 }
 0x465   :  { %2689 = vpow2.f32 %v2484_v54 }
 0x46c   :  { %v2684_v15 = vpop.eup %2683 }
 0x46d   :  { %552 = vrot.lane.b32.xlu1 %v2684_v15, %s3087_s3  ;;  %v2686_v0 = vpop.eup %2685  ;;  %v4199_v15 = vmov 0  }
 0x46e   :  { %629 = vrot.lane.b32.xlu0 %v2686_v0, %s3087_s3  ;;  %v2688_v62 = vpop.eup %2687  ;;  %v119_v0 = vld [vmem:[%s4160_s7] sm:$0x3] }
 0x46f   :  { %v533_v21 = vadd.f32 1.0, %v2688_v62  ;;  %v2690_v27 = vpop.eup %2689  ;;  %v3544_v29 = vrot.slane %v119_v0, %v3268_v19 }
 0x470   :  { %v610_v12 = vadd.f32 1.0, %v2690_v27 }
 0x471   :  { %2691 = vrcp.f32 %v533_v21  ;;  %4200 = vst [vmem:[#allocation26_spill] sm:$0xff] %v3544_v29 }
 0x472   :  { %2693 = vrcp.f32 %v610_v12 }
 0x47b   :  { %v2692_v16 = vpop.eup %2691 }
 0x47c   :  { %v2694_v60 = vpop.eup %2693 }
 0x4df   :  { %v553_v10 = vpop.permute.xlu1 %552 }
 0x4e0   :  { %v555_v8 = vmul.f32 %v2692_v16, %v553_v10  ;;  %v630_v59 = vpop.permute.xlu0 %629 }
 0x4e1   :  { %v632_v10 = vmul.f32 %v2694_v60, %v630_v59  ;;  %v247_v60 = vadd.f32 %v3356_v4, %v3271_v20 }
 0x4e2   :  { %v2502_v18 = vpack.c.bf16 %v555_v8, %v555_v8  ;;  %798 = vrot.lane.b32.xlu1 %v555_v8, %s3087_s3 }
 0x4e3   :  { %v874_v8 = vpack.c.bf16 %v632_v10, %v632_v10 }
 0x4e4   :  { %2503 = vmatmul.mubr.msk.bf16.vlgmr.msra.gmra.mrb[8].mxu1 %vm3382_vm3, %v2502_v18 }
 0x4e5   :  { %879 = vmatpush1.bf16.msra.mxu1 %v3208_v2  ;;  %910 = vmatprep.mubr.bf16.mxu1 %v4199_v15 }
 0x4e6   :  { %880 = vmatprep.subr.bf16.mxu1 %v3215_v5 }
 0x4e9   :  { %881 = vmatpush1.bf16.msra.mxu1 %v3220_v6 }
 0x4ea   :  { %882 = vmatprep.subr.bf16.mxu1 %v3226_v9 }
 0x4ed   :  { %883 = vmatpush1.bf16.msra.mxu1 %v3232_v11 }
 0x4ee   :  { %884 = vmatprep.subr.bf16.mxu1 %v3241_v13 }
 0x4f1   :  { %885 = vmatpush1.bf16.msra.mxu1 %v3246_v14 }
 0x4f2   :  { %1034 = vmatprep.subr.bf16.mxu1 %v3287_v41 }
 0x4f4   :  { %2508 = vmatmul.mubr.msk.bf16.vlgmr.msra.gmra.mrb[12].mxu1 %vm315_vm2, %v874_v8 }
 0x4f5   :  { %1035 = vmatpush1.bf16.msra.mxu1 %v3289_v42  ;;  %1066 = vmatprep.mubr.bf16.mxu1 %v4199_v15 }
 0x4f6   :  { %1036 = vmatprep.subr.bf16.mxu1 %v3291_v43 }
 0x4f9   :  { %1037 = vmatpush1.bf16.msra.mxu1 %v3298_v45 }
 0x4fa   :  { %1038 = vmatprep.subr.bf16.mxu1 %v3302_v46 }
 0x4fd   :  { %1039 = vmatpush1.bf16.msra.mxu1 %v3306_v47 }
 0x4fe   :  { %1040 = vmatprep.subr.bf16.mxu1 %v3309_v48 }
 0x501   :  { %1041 = vmatpush1.bf16.msra.mxu1 %v3315_v50 }
 0x502   :  { %1042 = vmatprep.subr.bf16.mxu1 %v3319_v51 }
 0x505   :  { %1043 = vmatpush1.bf16.msra.mxu1 %v3323_v52 }
 0x506   :  { %1044 = vmatprep.subr.bf16.mxu1 %v3326_v53 }
 0x509   :  { %1045 = vmatpush1.bf16.msra.mxu1 %v3332_v55 }
 0x50a   :  { %1046 = vmatprep.subr.bf16.mxu1 %v3336_v56 }
 0x50d   :  { %1047 = vmatpush1.bf16.msra.mxu1 %v3340_v57 }
 0x50e   :  { %1048 = vmatprep.subr.bf16.mxu1 %v3343_v58 }
 0x511   :  { %1049 = vmatpush1.bf16.msra.mxu1 %v3347_v61 }
 0x512   :  { %1188 = vmatprep.subr.bf16.mxu1 %v3431_v39 }
 0x554   :  { %v799_v12 = vpop.permute.xlu1 %798 }
 0x555   :  { %v801_v18 = vsel %vm315_vm2, %v632_v10, %v799_v12 }
 0x556   :  { %v802_v33 = vpack.c.bf16 %v801_v18, %v801_v18 }
 0x558   :  { %836 = vmatmul.mubr.bf16.vlgmr.msra.gmra.mrb[20].mxu0 %v802_v33 }
 0x559   :  { %958 = vmatpush1.bf16.msra.mxu0 %v3433_v44  ;;  %989 = vmatprep.mubr.bf16.mxu0 %v4199_v15 }
 0x55a   :  { %959 = vmatprep.subr.bf16.mxu0 %v3435_v24 }
 0x55d   :  { %960 = vmatpush1.bf16.msra.mxu0 %v3440_v26 }
 0x55e   :  { %961 = vmatprep.subr.bf16.mxu0 %v3443_v31 }
 0x561   :  { %962 = vmatpush1.bf16.msra.mxu0 %v3446_v32 }
 0x562   :  { %963 = vmatprep.subr.bf16.mxu0 %v3449_v34 }
 0x565   :  { %964 = vmatpush1.bf16.msra.mxu0 %v3452_v37 }
 0x566   :  { %965 = vmatprep.subr.bf16.mxu0 %v3455_v38 }
 0x569   :  { %966 = vmatpush1.bf16.msra.mxu0 %v3458_v40 }
 0x56a   :  { %967 = vmatprep.subr.bf16.mxu0 %v3461_v49 }
 0x56d   :  { %968 = vmatpush1.bf16.msra.mxu0 %v3464_v63 }
 0x56e   :  { %969 = vmatprep.subr.bf16.mxu0 %v3467_v3 }
 0x571   :  { %970 = vmatpush1.bf16.msra.mxu0 %v3470_v35 }
 0x572   :  { %971 = vmatprep.subr.bf16.mxu0 %v3473_v23 }
 0x575   :  { %972 = vmatpush1.bf16.msra.mxu0 %v3481_v25 }
 0x576   :  { %1109 = vmatprep.subr.bf16.mxu0 %v3203_v1  ;;  %v249_v1 = vadd.f32 %v3358_v7, %v3274_v22 }
 0x5b7   :  { %v760_v62 = vpop.f32.mrb[8].mxu1 }
 0x5b8   :  { %v762_v54 = vpop.f32.mrb[9].mxu1 }
 0x5b9   :  { %v763_v21 = vadd.f32 %v762_v54, %v3544_v29  ;;  %v764_v27 = vpop.f32.mrb[10].mxu1  ;;  %v3555_v54 = vrot.slane %v119_v0, %v3263_v17 }
 0x5ba   :  { %v765_v16 = vpop.f32.mrb[11].mxu1 }
 0x5bb   :  { %2695 = vtanh.f32 %v763_v21  ;;  %v761_v27 = vadd.f32 %v760_v62, %v3555_v54 }
 0x5bd   :  { %v2504_v16 = vmul.f32 -1.442695, %v761_v27 }
 0x5bf   :  { %2697 = vpow2.f32 %v2504_v16 }
 0x5c5   :  { %v2696_v59 = vpop.eup %2695 }
 0x5c6   :  { %782 = vrot.lane.b32.xlu0 %v2696_v59, %s3087_s3 }
 0x5c7   :  { %v912_v10 = vpop.f32.mrb[12].mxu1 }
 0x5c8   :  { %v919_v8 = vadd.f32 %v912_v10, %v247_v60  ;;  %v914_v19 = vpop.f32.mrb[13].mxu1 }
 0x5c9   :  { %v3552_v12 = vadd.f32 %v914_v19, %v249_v1  ;;  %v916_v18 = vpop.f32.mrb[14].mxu1  ;;  %v2698_v4 = vpop.eup %2697 }
 0x5ca   :  { %v917_v33 = vpop.f32.mrb[15].mxu1  ;;  %v773_v20 = vadd.f32 1.0, %v2698_v4 }
 0x5cc   :  { %2699 = vrcp.f32 %v773_v20 }
 0x5d6   :  { %v2700_v1 = vpop.eup %2699 }
 0x62b   :  { %v837_v59 = vpop.f32.mrb[20].mxu0 }
 0x62c   :  { %v839_v29 = vpop.f32.mrb[21].mxu0  ;;  %v838_v19 = vadd.f32 %v837_v59, %v3426_v30 }
 0x62d   :  { %v840_v7 = vadd.f32 %v839_v29, %v3410_v36  ;;  %v841_v22 = vpop.f32.mrb[22].mxu0 }
 0x62e   :  { %v842_v60 = vpop.f32.mrb[23].mxu0  ;;  %v2506_v29 = vmul.f32 -1.442695, %v838_v19  ;;  %v2509_v22 = vmul.f32 -1.442695, %v919_v8 }
 0x62f   :  { %2701 = vtanh.f32 %v840_v7  ;;  %v780_v60 = vmul.f32 0.0, %v2700_v1 }
 0x630   :  { %2703 = vtanh.f32 %v3552_v12 }
 0x631   :  { %2705 = vpow2.f32 %v2506_v29  ;;  %v2505_v29 = vmul.f32 -1.442695, %v763_v21 }
 0x632   :  { %2707 = vpow2.f32 %v2509_v22 }
 0x638   :  { %v783_v10 = vpop.permute.xlu0 %782 }
 0x639   :  { %v2702_v17 = vpop.eup %2701  ;;  %v785_v0 = vmul.f32 %v2700_v1, %v783_v10 }
 0x63a   :  { %859 = vrot.lane.b32.xlu1 %v2702_v17, %s3087_s3  ;;  %v2704_v62 = vpop.eup %2703 }
 0x63b   :  { %787 = vrot.lane.b32.xlu0 %v785_v0, %s3087_s3  ;;  %v2706_v20 = vpop.eup %2705 }
 0x63c   :  { %v850_v18 = vadd.f32 1.0, %v2706_v20  ;;  %v2708_v33 = vpop.eup %2707 }
 0x63d   :  { %v927_v27 = vadd.f32 1.0, %v2708_v33 }
 0x63e   :  { %936 = vrot.lane.b32.xlu1 %v2704_v62, %s3087_s3  ;;  %2709 = vrcp.f32 %v850_v18 }
 0x63f   :  { %2711 = vrcp.f32 %v927_v27  ;;  %v4201_v27 = vld [vmem:[#allocation25_spill] sm:$0xff] }
 0x648   :  { %v2710_v16 = vpop.eup %2709 }
 0x649   :  { %v2712_v59 = vpop.eup %2711  ;;  %v857_v20 = vmul.f32 %v2710_v16, %v3477_v28 }
 0x6ac   :  { %v860_v4 = vpop.permute.xlu1 %859 }
 0x6ad   :  { %v862_v10 = vmul.f32 %v2710_v16, %v860_v4  ;;  %v788_v17 = vpop.permute.xlu0 %787  ;;  %v934_v4 = vmul.f32 %v2712_v59, %v4201_v27  ;;  %v2507_v16 = vmul.f32 -1.442695, %v840_v7 }
 0x6ae   :  { %v3564_v0 = vadd.f32 %v788_v17, %v780_v60 }
 0x6af   :  { %864 = vrot.lane.b32.xlu0 %v862_v10, %s3087_s3 }
 0x6b0   :  { %2713 = vtanh.f32 %v3564_v0  ;;  %v937_v8 = vpop.permute.xlu1 %936 }
 0x6b1   :  { %v939_v62 = vmul.f32 %v2712_v59, %v937_v8  ;;  %2715 = vpow2.f32 %v2505_v29  ;;  %v2510_v59 = vmul.f32 -1.442695, %v3552_v12 }
 0x6b3   :  { %941 = vrot.lane.b32.xlu0 %v939_v62, %s3087_s3 }
 0x6ba   :  { %v2714_v19 = vpop.eup %2713 }
 0x6bb   :  { %793 = vrot.lane.b32.xlu1 %v2714_v19, %s3087_s3  ;;  %v2716_v22 = vpop.eup %2715 }
 0x6bc   :  { %v774_v1 = vadd.f32 1.0, %v2716_v22 }
 0x6be   :  { %2717 = vrcp.f32 %v774_v1 }
 0x6c8   :  { %v2718_v17 = vpop.eup %2717 }
 0x721   :  { %v865_v18 = vpop.permute.xlu0 %864 }
 0x722   :  { %v3571_v33 = vadd.f32 %v865_v18, %v857_v20 }
 0x724   :  { %2719 = vtanh.f32 %v3571_v33 }
 0x725   :  { %v942_v60 = vpop.permute.xlu0 %941 }
 0x726   :  { %v3575_v10 = vadd.f32 %v942_v60, %v934_v4 }
 0x728   :  { %2721 = vtanh.f32 %v3575_v10 }
 0x729   :  { %2723 = vpow2.f32 %v2507_v16 }
 0x72a   :  { %2725 = vpow2.f32 %v2510_v59  ;;  %v4207_v59 = vld [vmem:[#allocation15_spill] sm:$0xff] }
 0x72d   :  { %v794_v21 = vpop.permute.xlu1 %793 }
 0x72e   :  { %v2720_v8 = vpop.eup %2719  ;;  %v796_v62 = vmul.f32 %v2718_v17, %v794_v21 }
 0x72f   :  { %870 = vrot.lane.b32.xlu1 %v2720_v8, %s3087_s3 }
 0x730   :  { %952 = vrot.lane.b32.xlu0 %v796_v62, %s3087_s3  ;;  %v4204_v62 = vld [vmem:[#allocation12_spill] sm:$0xff] }
 0x732   :  { %v2722_v28 = vpop.eup %2721 }
 0x733   :  { %947 = vrot.lane.b32.xlu1 %v2722_v28, %s3087_s3  ;;  %v2724_v19 = vpop.eup %2723  ;;  %v4205_v28 = vld [vmem:[#allocation14_spill] sm:$0xff] }
 0x734   :  { %v851_v29 = vadd.f32 1.0, %v2724_v19  ;;  %v2726_v22 = vpop.eup %2725  ;;  %v251_v16 = vadd.f32 %v4205_v28, %v4204_v62  ;;  %v4206_v19 = vld [vmem:[#allocation13_spill] sm:$0xff] }
 0x735   :  { %v928_v18 = vadd.f32 1.0, %v2726_v22 }
 0x736   :  { %2727 = vrcp.f32 %v851_v29  ;;  %v253_v29 = vadd.f32 %v4207_v59, %v4206_v19 }
 0x737   :  { %2729 = vrcp.f32 %v928_v18 }
 0x740   :  { %v2728_v1 = vpop.eup %2727 }
 0x741   :  { %v2730_v7 = vpop.eup %2729 }
 0x7a1   :  { %v871_v20 = vpop.permute.xlu1 %870 }
 0x7a2   :  { %v873_v27 = vmul.f32 %v2728_v1, %v871_v20  ;;  %v953_v4 = vpop.permute.xlu0 %952 }
 0x7a4   :  { %v955_v60 = vsel %vm315_vm2, %v873_v27, %v953_v4  ;;  %1029 = vrot.lane.b32.xlu0 %v873_v27, %s3087_s3 }
 0x7a5   :  { %v956_v17 = vpack.c.bf16 %v955_v60, %v955_v60  ;;  %v948_v12 = vpop.permute.xlu1 %947 }
 0x7a6   :  { %v950_v21 = vmul.f32 %v2730_v7, %v948_v12 }
 0x7a7   :  { %990 = vmatmul.mubr.bf16.vlgmr.msra.gmra.mrb[24].mxu0 %v956_v17 }
 0x7a8   :  { %1110 = vmatpush1.bf16.msra.mxu0 %v3208_v2  ;;  %1141 = vmatprep.mubr.bf16.mxu0 %v4199_v15  ;;  %v1105_v8 = vpack.c.bf16 %v950_v21, %v950_v21 }
 0x7a9   :  { %1111 = vmatprep.subr.bf16.mxu0 %v3215_v5 }
 0x7ac   :  { %1112 = vmatpush1.bf16.msra.mxu0 %v3220_v6 }
 0x7ad   :  { %1113 = vmatprep.subr.bf16.mxu0 %v3226_v9  ;;  %v3631_v9 = vld [vmem:[%s4155_s2 + $0x4] ss:$8 sps:$4 sm:$0xff]  }
 0x7ae   :  { %4202 = vst [vmem:[#allocation25_spill] sm:$0xff] %v3631_v9 }
 0x7b0   :  { %1114 = vmatpush1.bf16.msra.mxu0 %v3232_v11 }
 0x7b1   :  { %1115 = vmatprep.subr.bf16.mxu0 %v3241_v13 }
 0x7b4   :  { %1116 = vmatpush1.bf16.msra.mxu0 %v3246_v14  ;;  %v4203_v14 = vld [vmem:[#allocation26_spill] sm:$0xff] }
 0x7b5   :  { %1265 = vmatprep.subr.bf16.mxu0 %v3287_v41 }
 0x7b7   :  { %2515 = vmatmul.mubr.msk.bf16.vlgmr.msra.gmra.mrb[28].mxu0 %vm315_vm2, %v1105_v8 }
 0x7b8   :  { %1266 = vmatpush1.bf16.msra.mxu0 %v3289_v42  ;;  %1297 = vmatprep.mubr.bf16.mxu0 %v4199_v15 }
 0x7b9   :  { %1267 = vmatprep.subr.bf16.mxu0 %v3291_v43 }
 0x7bc   :  { %1268 = vmatpush1.bf16.msra.mxu0 %v3298_v45 }
 0x7bd   :  { %1269 = vmatprep.subr.bf16.mxu0 %v3302_v46 }
 0x7c0   :  { %1270 = vmatpush1.bf16.msra.mxu0 %v3306_v47 }
 0x7c1   :  { %1271 = vmatprep.subr.bf16.mxu0 %v3309_v48 }
 0x7c4   :  { %1272 = vmatpush1.bf16.msra.mxu0 %v3315_v50 }
 0x7c5   :  { %1273 = vmatprep.subr.bf16.mxu0 %v3319_v51 }
 0x7c8   :  { %1274 = vmatpush1.bf16.msra.mxu0 %v3323_v52 }
 0x7c9   :  { %1275 = vmatprep.subr.bf16.mxu0 %v3326_v53 }
 0x7cc   :  { %1276 = vmatpush1.bf16.msra.mxu0 %v3332_v55 }
 0x7cd   :  { %1277 = vmatprep.subr.bf16.mxu0 %v3336_v56 }
 0x7d0   :  { %1278 = vmatpush1.bf16.msra.mxu0 %v3340_v57 }
 0x7d1   :  { %1279 = vmatprep.subr.bf16.mxu0 %v3343_v58 }
 0x7d4   :  { %1280 = vmatpush1.bf16.msra.mxu0 %v3347_v61 }
 0x7d5   :  { %1419 = vmatprep.subr.bf16.mxu0 %v3431_v39 }
 0x816   :  { %v1030_v2 = vpop.permute.xlu0 %1029 }
 0x817   :  { %v1032_v5 = vsel %vm315_vm2, %v950_v21, %v1030_v2 }
 0x818   :  { %v1033_v6 = vpack.c.bf16 %v1032_v5, %v1032_v5 }
 0x81a   :  { %1067 = vmatmul.mubr.bf16.vlgmr.msra.gmra.mrb[16].mxu1 %v1033_v6 }
 0x81b   :  { %1189 = vmatpush1.bf16.msra.mxu1 %v3433_v44  ;;  %1220 = vmatprep.mubr.bf16.mxu1 %v4199_v15 }
 0x81c   :  { %1190 = vmatprep.subr.bf16.mxu1 %v3435_v24 }
 0x81f   :  { %1191 = vmatpush1.bf16.msra.mxu1 %v3440_v26 }
 0x820   :  { %1192 = vmatprep.subr.bf16.mxu1 %v3443_v31 }
 0x823   :  { %1193 = vmatpush1.bf16.msra.mxu1 %v3446_v32 }
 0x824   :  { %1194 = vmatprep.subr.bf16.mxu1 %v3449_v34 }
 0x827   :  { %1195 = vmatpush1.bf16.msra.mxu1 %v3452_v37 }
 0x828   :  { %1196 = vmatprep.subr.bf16.mxu1 %v3455_v38 }
 0x82b   :  { %1197 = vmatpush1.bf16.msra.mxu1 %v3458_v40 }
 0x82c   :  { %1198 = vmatprep.subr.bf16.mxu1 %v3461_v49 }
 0x82f   :  { %1199 = vmatpush1.bf16.msra.mxu1 %v3464_v63 }
 0x830   :  { %1200 = vmatprep.subr.bf16.mxu1 %v3467_v3 }
 0x833   :  { %1201 = vmatpush1.bf16.msra.mxu1 %v3470_v35 }
 0x834   :  { %1202 = vmatprep.subr.bf16.mxu1 %v3473_v23 }
 0x837   :  { %1203 = vmatpush1.bf16.msra.mxu1 %v3481_v25 }
 0x838   :  { %1340 = vmatprep.subr.bf16.mxu1 %v3631_v9 }
 0x87a   :  { %v991_v11 = vpop.f32.mrb[24].mxu0 }
 0x87b   :  { %v993_v13 = vpop.f32.mrb[25].mxu0  ;;  %v992_v60 = vadd.f32 %v991_v11, %v3555_v54 }
 0x87c   :  { %v994_v41 = vadd.f32 %v993_v13, %v4203_v14  ;;  %v995_v42 = vpop.f32.mrb[26].mxu0 }
 0x87d   :  { %v996_v43 = vpop.f32.mrb[27].mxu0  ;;  %v2511_v17 = vmul.f32 -1.442695, %v992_v60 }
 0x87e   :  { %2731 = vtanh.f32 %v994_v41 }
 0x87f   :  { %2733 = vpow2.f32 %v2511_v17 }
 0x888   :  { %v2732_v45 = vpop.eup %2731 }
 0x889   :  { %1013 = vrot.lane.b32.xlu1 %v2732_v45, %s3087_s3  ;;  %v2734_v12 = vpop.eup %2733 }
 0x88a   :  { %v1143_v22 = vpop.f32.mrb[28].mxu0  ;;  %v1004_v7 = vadd.f32 1.0, %v2734_v12 }
 0x88b   :  { %v1150_v1 = vadd.f32 %v1143_v22, %v251_v16  ;;  %v1145_v20 = vpop.f32.mrb[29].mxu0 }
 0x88c   :  { %v3640_v18 = vadd.f32 %v1145_v20, %v253_v29  ;;  %v1147_v27 = vpop.f32.mrb[30].mxu0  ;;  %2735 = vrcp.f32 %v1004_v7 }
 0x88d   :  { %v1148_v4 = vpop.f32.mrb[31].mxu0  ;;  %v2516_v59 = vmul.f32 -1.442695, %v1150_v1 }
 0x896   :  { %v2736_v13 = vpop.eup %2735 }
 0x897   :  { %v1011_v12 = vmul.f32 %v2736_v13, %v3564_v0 }
 0x8ed   :  { %v1068_v21 = vpop.f32.mrb[16].mxu1 }
 0x8ee   :  { %v1070_v8 = vpop.f32.mrb[17].mxu1  ;;  %v1069_v28 = vadd.f32 %v1068_v21, %v3426_v30 }
 0x8ef   :  { %v1071_v2 = vadd.f32 %v1070_v8, %v3410_v36  ;;  %v1072_v5 = vpop.f32.mrb[18].mxu1 }
 0x8f0   :  { %v1073_v6 = vpop.f32.mrb[19].mxu1  ;;  %v2513_v16 = vmul.f32 -1.442695, %v1069_v28 }
 0x8f1   :  { %2737 = vtanh.f32 %v1071_v2 }
 0x8f2   :  { %2739 = vtanh.f32 %v3640_v18 }
 0x8f3   :  { %2741 = vpow2.f32 %v2513_v16 }
 0x8f4   :  { %2743 = vpow2.f32 %v2516_v59 }
 0x8fb   :  { %v2738_v42 = vpop.eup %2737  ;;  %v1014_v43 = vpop.permute.xlu1 %1013 }
 0x8fc   :  { %v1016_v45 = vmul.f32 %v2736_v13, %v1014_v43  ;;  %1090 = vrot.lane.b32.xlu0 %v2738_v42, %s3087_s3  ;;  %v2740_v11 = vpop.eup %2739  ;;  %v2512_v42 = vmul.f32 -1.442695, %v994_v41 }
 0x8fd   :  { %v2742_v29 = vpop.eup %2741 }
 0x8fe   :  { %1018 = vrot.lane.b32.xlu1 %v1016_v45, %s3087_s3  ;;  %v1081_v22 = vadd.f32 1.0, %v2742_v29  ;;  %v2744_v20 = vpop.eup %2743 }
 0x8ff   :  { %v1158_v27 = vadd.f32 1.0, %v2744_v20 }
 0x900   :  { %1167 = vrot.lane.b32.xlu0 %v2740_v11, %s3087_s3  ;;  %2745 = vrcp.f32 %v1081_v22 }
 0x901   :  { %2747 = vrcp.f32 %v1158_v27  ;;  %v2514_v27 = vmul.f32 -1.442695, %v1071_v2  ;;  %v3680_v2 = vld [vmem:[%s4155_s2 + $0x14] ss:$8 sps:$4 sm:$0xff]  }
 0x90a   :  { %v2746_v4 = vpop.eup %2745 }
 0x90b   :  { %v2748_v21 = vpop.eup %2747  ;;  %v1088_v0 = vmul.f32 %v2746_v4, %v3571_v33 }
 0x90c   :  { %v1165_v28 = vmul.f32 %v2748_v21, %v3575_v10  ;;  %v2517_v10 = vmul.f32 -1.442695, %v3640_v18  ;;  %v3673_v18 = vld [vmem:[%s4155_s2] ss:$8 sps:$4 sm:$0xff]  }
 0x96e   :  { %v1091_v60 = vpop.permute.xlu0 %1090 }
 0x96f   :  { %v1093_v17 = vmul.f32 %v2746_v4, %v1091_v60 }
 0x970   :  { %v1019_v7 = vpop.permute.xlu1 %1018 }
 0x971   :  { %v3650_v8 = vadd.f32 %v1019_v7, %v1011_v12  ;;  %1095 = vrot.lane.b32.xlu1 %v1093_v17, %s3087_s3 }
 0x972   :  { %v1168_v1 = vpop.permute.xlu0 %1167 }
 0x973   :  { %2749 = vtanh.f32 %v3650_v8  ;;  %v1170_v5 = vmul.f32 %v2748_v21, %v1168_v1 }
 0x974   :  { %2751 = vpow2.f32 %v2512_v42 }
 0x975   :  { %1172 = vrot.lane.b32.xlu1 %v1170_v5, %s3087_s3 }
 0x97d   :  { %v2750_v6 = vpop.eup %2749 }
 0x97e   :  { %1024 = vrot.lane.b32.xlu0 %v2750_v6, %s3087_s3  ;;  %v2752_v43 = vpop.eup %2751 }
 0x97f   :  { %v1005_v45 = vadd.f32 1.0, %v2752_v43  ;;  %v3686_v43 = vld [vmem:[%s4155_s2 + $0x10] ss:$8 sps:$4 sm:$0xff]  }
 0x981   :  { %2753 = vrcp.f32 %v1005_v45  ;;  %v3692_v45 = vld [vmem:[%s4155_s2 + $0x24] ss:$8 sps:$4 sm:$0xff]  }
 0x98b   :  { %v2754_v29 = vpop.eup %2753 }
 0x9e3   :  { %v1096_v13 = vpop.permute.xlu1 %1095 }
 0x9e4   :  { %v3657_v11 = vadd.f32 %v1096_v13, %v1088_v0 }
 0x9e6   :  { %2755 = vtanh.f32 %v3657_v11 }
 0x9e7   :  { %v1173_v16 = vpop.permute.xlu1 %1172 }
 0x9e8   :  { %v3661_v59 = vadd.f32 %v1173_v16, %v1165_v28  ;;  %v3698_v28 = vld [vmem:[%s4155_s2 + $0x20] ss:$8 sps:$4 sm:$0xff]  }
 0x9ea   :  { %2757 = vtanh.f32 %v3661_v59 }
 0x9eb   :  { %2759 = vpow2.f32 %v2514_v27  ;;  %v3721_v27 = vld [vmem:[#allocation5 + $0x14] ss:$8 sps:$4 sm:$0xff]  }
 0x9ec   :  { %2761 = vpow2.f32 %v2517_v10 }
 0x9f0   :  { %v2756_v41 = vpop.eup %2755  ;;  %v1025_v22 = vpop.permute.xlu0 %1024 }
 0x9f1   :  { %v1027_v20 = vmul.f32 %v2754_v29, %v1025_v22  ;;  %1101 = vrot.lane.b32.xlu0 %v2756_v41, %s3087_s3  ;;  %v3704_v29 = vld [vmem:[%s4155_s2 + $0x34] ss:$8 sps:$4 sm:$0xff]   ;;  %v3710_v41 = vld [vmem:[%s4155_s2 + $0x30] ss:$8 sps:$4 sm:$0xff]  }
 0x9f3   :  { %1183 = vrot.lane.b32.xlu1 %v1027_v20, %s3087_s3  ;;  %v3713_v20 = vld [vmem:[#allocation5 + $0x4] ss:$8 sps:$4 sm:$0xff]  }
 0x9f4   :  { %v2758_v33 = vpop.eup %2757 }
 0x9f5   :  { %1178 = vrot.lane.b32.xlu0 %v2758_v33, %s3087_s3  ;;  %v2760_v4 = vpop.eup %2759  ;;  %v3717_v33 = vld [vmem:[#allocation5] ss:$8 sps:$4 sm:$0xff]  }
 0x9f6   :  { %v1082_v60 = vadd.f32 1.0, %v2760_v4  ;;  %v2762_v17 = vpop.eup %2761  ;;  %v3724_v4 = vld [vmem:[#allocation5 + $0x10] ss:$8 sps:$4 sm:$0xff]  }
 0x9f7   :  { %v1159_v21 = vadd.f32 1.0, %v2762_v17 }
 0x9f8   :  { %2763 = vrcp.f32 %v1082_v60 }
 0x9f9   :  { %2765 = vrcp.f32 %v1159_v21 }
 0xa02   :  { %v2764_v12 = vpop.eup %2763 }
 0xa03   :  { %v2766_v13 = vpop.eup %2765 }
 0xa63   :  { %v1102_v7 = vpop.permute.xlu0 %1101 }
 0xa64   :  { %v1104_v1 = vmul.f32 %v2764_v12, %v1102_v7 }
 0xa65   :  { %v1184_v5 = vpop.permute.xlu1 %1183 }
 0xa66   :  { %v1186_v6 = vsel %vm315_vm2, %v1104_v1, %v1184_v5  ;;  %1260 = vrot.lane.b32.xlu1 %v1104_v1, %s3087_s3 }
 0xa67   :  { %v1187_v42 = vpack.c.bf16 %v1186_v6, %v1186_v6  ;;  %v1179_v0 = vpop.permute.xlu0 %1178 }
 0xa68   :  { %v1181_v16 = vmul.f32 %v2766_v13, %v1179_v0 }
 0xa69   :  { %1221 = vmatmul.mubr.bf16.vlgmr.msra.gmra.mrb[20].mxu1 %v1187_v42 }
 0xa6a   :  { %1341 = vmatpush1.bf16.msra.mxu1 %v3673_v18  ;;  %1372 = vmatprep.mubr.bf16.mxu1 %v4199_v15  ;;  %v1336_v22 = vpack.c.bf16 %v1181_v16, %v1181_v16 }
 0xa6b   :  { %1342 = vmatprep.subr.bf16.mxu1 %v3680_v2 }
 0xa6e   :  { %1343 = vmatpush1.bf16.msra.mxu1 %v3686_v43 }
 0xa6f   :  { %1344 = vmatprep.subr.bf16.mxu1 %v3692_v45 }
 0xa72   :  { %1345 = vmatpush1.bf16.msra.mxu1 %v3698_v28 }
 0xa73   :  { %1346 = vmatprep.subr.bf16.mxu1 %v3704_v29 }
 0xa76   :  { %1347 = vmatpush1.bf16.msra.mxu1 %v3710_v41 }
 0xa77   :  { %1496 = vmatprep.subr.bf16.mxu1 %v3713_v20 }
 0xa79   :  { %2522 = vmatmul.mubr.msk.bf16.vlgmr.msra.gmra.mrb[24].mxu1 %vm315_vm2, %v1336_v22 }
 0xa7a   :  { %1497 = vmatpush1.bf16.msra.mxu1 %v3717_v33  ;;  %1528 = vmatprep.mubr.bf16.mxu1 %v4199_v15 }
 0xa7b   :  { %1498 = vmatprep.subr.bf16.mxu1 %v3721_v27 }
 0xa7e   :  { %1499 = vmatpush1.bf16.msra.mxu1 %v3724_v4 }
 0xa7f   :  { %1500 = vmatprep.subr.bf16.mxu1 %v3302_v46 }
 0xa82   :  { %1501 = vmatpush1.bf16.msra.mxu1 %v3306_v47 }
 0xa83   :  { %1502 = vmatprep.subr.bf16.mxu1 %v3309_v48 }
 0xa86   :  { %1503 = vmatpush1.bf16.msra.mxu1 %v3315_v50 }
 0xa87   :  { %1504 = vmatprep.subr.bf16.mxu1 %v3319_v51 }
 0xa8a   :  { %1505 = vmatpush1.bf16.msra.mxu1 %v3323_v52 }
 0xa8b   :  { %1506 = vmatprep.subr.bf16.mxu1 %v3326_v53 }
 0xa8e   :  { %1507 = vmatpush1.bf16.msra.mxu1 %v3332_v55 }
 0xa8f   :  { %1508 = vmatprep.subr.bf16.mxu1 %v3336_v56 }
 0xa92   :  { %1509 = vmatpush1.bf16.msra.mxu1 %v3340_v57  ;;  %v4208_v57 = vld [vmem:[#allocation16_spill] sm:$0xff] }
 0xa93   :  { %1510 = vmatprep.subr.bf16.mxu1 %v3343_v58  ;;  %v257_v58 = vadd.f32 %v4208_v57, %v4204_v62 }
 0xa96   :  { %1511 = vmatpush1.bf16.msra.mxu1 %v3347_v61  ;;  %v4209_v61 = vld [vmem:[#allocation17_spill] sm:$0xff] }
 0xa97   :  { %1650 = vmatprep.subr.bf16.mxu1 %v3431_v39  ;;  %v259_v39 = vadd.f32 %v4209_v61, %v4206_v19 }
 0xad8   :  { %v1261_v46 = vpop.permute.xlu1 %1260 }
 0xad9   :  { %v1263_v47 = vsel %vm315_vm2, %v1181_v16, %v1261_v46 }
 0xada   :  { %v1264_v48 = vpack.c.bf16 %v1263_v47, %v1263_v47 }
 0xadc   :  { %1298 = vmatmul.mubr.bf16.vlgmr.msra.gmra.mrb[32].mxu0 %v1264_v48 }
 0xadd   :  { %1420 = vmatpush1.bf16.msra.mxu0 %v3433_v44  ;;  %1451 = vmatprep.mubr.bf16.mxu0 %v4199_v15 }
 0xade   :  { %1421 = vmatprep.subr.bf16.mxu0 %v3435_v24 }
 0xae1   :  { %1422 = vmatpush1.bf16.msra.mxu0 %v3440_v26 }
 0xae2   :  { %1423 = vmatprep.subr.bf16.mxu0 %v3443_v31 }
 0xae5   :  { %1424 = vmatpush1.bf16.msra.mxu0 %v3446_v32 }
 0xae6   :  { %1425 = vmatprep.subr.bf16.mxu0 %v3449_v34 }
 0xae9   :  { %1426 = vmatpush1.bf16.msra.mxu0 %v3452_v37 }
 0xaea   :  { %1427 = vmatprep.subr.bf16.mxu0 %v3455_v38 }
 0xaed   :  { %1428 = vmatpush1.bf16.msra.mxu0 %v3458_v40 }
 0xaee   :  { %1429 = vmatprep.subr.bf16.mxu0 %v3461_v49 }
 0xaf1   :  { %1430 = vmatpush1.bf16.msra.mxu0 %v3464_v63 }
 0xaf2   :  { %1431 = vmatprep.subr.bf16.mxu0 %v3467_v3 }
 0xaf5   :  { %1432 = vmatpush1.bf16.msra.mxu0 %v3470_v35 }
 0xaf6   :  { %1433 = vmatprep.subr.bf16.mxu0 %v3473_v23 }
 0xaf9   :  { %1434 = vmatpush1.bf16.msra.mxu0 %v3481_v25 }
 0xafa   :  { %1571 = vmatprep.subr.bf16.mxu0 %v3631_v9 }
 0xb3c   :  { %v1222_v50 = vpop.f32.mrb[20].mxu1 }
 0xb3d   :  { %v1224_v51 = vpop.f32.mrb[21].mxu1  ;;  %v1223_v34 = vadd.f32 %v1222_v50, %v3555_v54 }
 0xb3e   :  { %v1225_v52 = vadd.f32 %v1224_v51, %v4203_v14  ;;  %v1226_v53 = vpop.f32.mrb[22].mxu1 }
 0xb3f   :  { %v1227_v55 = vpop.f32.mrb[23].mxu1  ;;  %v2518_v37 = vmul.f32 -1.442695, %v1223_v34 }
 0xb40   :  { %2767 = vtanh.f32 %v1225_v52  ;;  %v2519_v57 = vmul.f32 -1.442695, %v1225_v52 }
 0xb41   :  { %2769 = vpow2.f32 %v2518_v37 }
 0xb4a   :  { %v2768_v56 = vpop.eup %2767 }
 0xb4b   :  { %1244 = vrot.lane.b32.xlu0 %v2768_v56, %s3087_s3  ;;  %v2770_v38 = vpop.eup %2769 }
 0xb4c   :  { %v1374_v44 = vpop.f32.mrb[24].mxu1  ;;  %v1235_v40 = vadd.f32 1.0, %v2770_v38 }
 0xb4d   :  { %v1381_v25 = vadd.f32 %v1374_v44, %v257_v58  ;;  %v1376_v24 = vpop.f32.mrb[25].mxu1 }
 0xb4e   :  { %v3764_v26 = vadd.f32 %v1376_v24, %v259_v39  ;;  %v1378_v31 = vpop.f32.mrb[26].mxu1  ;;  %2771 = vrcp.f32 %v1235_v40 }
 0xb4f   :  { %v1379_v32 = vpop.f32.mrb[27].mxu1  ;;  %v2523_v5 = vmul.f32 -1.442695, %v1381_v25 }
 0xb58   :  { %v2772_v10 = vpop.eup %2771 }
 0xb59   :  { %v1242_v47 = vmul.f32 %v2772_v10, %v3650_v8 }
 0xbaf   :  { %v1299_v49 = vpop.f32.mrb[32].mxu0 }
 0xbb0   :  { %v1301_v63 = vpop.f32.mrb[33].mxu0  ;;  %v1300_v21 = vadd.f32 %v1299_v49, %v3426_v30 }
 0xbb1   :  { %v1302_v3 = vadd.f32 %v1301_v63, %v3410_v36  ;;  %v1303_v35 = vpop.f32.mrb[34].mxu0 }
 0xbb2   :  { %v1304_v23 = vpop.f32.mrb[35].mxu0  ;;  %v2520_v1 = vmul.f32 -1.442695, %v1300_v21 }
 0xbb3   :  { %2773 = vtanh.f32 %v1302_v3  ;;  %v2521_v38 = vmul.f32 -1.442695, %v1302_v3 }
 0xbb4   :  { %2775 = vtanh.f32 %v3764_v26 }
 0xbb5   :  { %2777 = vpow2.f32 %v2520_v1 }
 0xbb6   :  { %2779 = vpow2.f32 %v2523_v5  ;;  %v3808_v5 = vld [vmem:[#allocation5 + $0x24] ss:$8 sps:$4 sm:$0xff]  }
 0xbbd   :  { %v2774_v60 = vpop.eup %2773  ;;  %v1245_v17 = vpop.permute.xlu0 %1244 }
 0xbbe   :  { %v1247_v12 = vmul.f32 %v2772_v10, %v1245_v17  ;;  %1321 = vrot.lane.b32.xlu1 %v2774_v60, %s3087_s3  ;;  %v2776_v7 = vpop.eup %2775 }
 0xbbf   :  { %v2778_v6 = vpop.eup %2777 }
 0xbc0   :  { %1249 = vrot.lane.b32.xlu0 %v1247_v12, %s3087_s3  ;;  %v1312_v42 = vadd.f32 1.0, %v2778_v6  ;;  %v2780_v0 = vpop.eup %2779  ;;  %v3811_v6 = vld [vmem:[#allocation5 + $0x20] ss:$8 sps:$4 sm:$0xff]  }
 0xbc1   :  { %v1389_v13 = vadd.f32 1.0, %v2780_v0  ;;  %v3817_v0 = vld [vmem:[#allocation5 + $0x30] ss:$8 sps:$4 sm:$0xff]  }
 0xbc2   :  { %1398 = vrot.lane.b32.xlu1 %v2776_v7, %s3087_s3  ;;  %2781 = vrcp.f32 %v1312_v42  ;;  %v3814_v42 = vld [vmem:[#allocation5 + $0x34] ss:$8 sps:$4 sm:$0xff]  }
 0xbc3   :  { %2783 = vrcp.f32 %v1389_v13  ;;  %v3820_v13 = vld [vmem:[#allocation5 + $0x44] ss:$8 sps:$4 sm:$0xff]  }
 0xbcc   :  { %v2782_v16 = vpop.eup %2781 }
 0xbcd   :  { %v2784_v51 = vpop.eup %2783  ;;  %v1319_v8 = vmul.f32 %v2782_v16, %v3657_v11 }
 0xbce   :  { %v1396_v25 = vmul.f32 %v2784_v51, %v3661_v59  ;;  %v2524_v59 = vmul.f32 -1.442695, %v3764_v26 }
 0xc30   :  { %v1322_v22 = vpop.permute.xlu1 %1321 }
 0xc31   :  { %v1324_v46 = vmul.f32 %v2782_v16, %v1322_v22  ;;  %v3823_v16 = vld [vmem:[#allocation5 + $0x40] ss:$8 sps:$4 sm:$0xff]   ;;  %v3826_v22 = vld [vmem:[#allocation5 + $0x54] ss:$8 sps:$4 sm:$0xff]  }
 0xc32   :  { %v1250_v48 = vpop.permute.xlu0 %1249 }
 0xc33   :  { %v3774_v50 = vadd.f32 %v1250_v48, %v1242_v47  ;;  %1326 = vrot.lane.b32.xlu0 %v1324_v46, %s3087_s3  ;;  %v3829_v46 = vld [vmem:[#allocation5 + $0x50] ss:$8 sps:$4 sm:$0xff]   ;;  %v3832_v47 = vld [vmem:[#allocation5 + $0x64] ss:$8 sps:$4 sm:$0xff]   ;;  %v3835_v48 = vld [vmem:[#allocation5 + $0x60] ss:$8 sps:$4 sm:$0xff]  }
 0xc34   :  { %v1399_v53 = vpop.permute.xlu1 %1398 }
 0xc35   :  { %2785 = vtanh.f32 %v3774_v50  ;;  %v1401_v55 = vmul.f32 %v2784_v51, %v1399_v53  ;;  %v3838_v51 = vld [vmem:[#allocation5 + $0x74] ss:$8 sps:$4 sm:$0xff]   ;;  %v3841_v53 = vld [vmem:[#allocation5 + $0x70] ss:$8 sps:$4 sm:$0xff]  }
 0xc36   :  { %2787 = vpow2.f32 %v2519_v57 }
 0xc37   :  { %1403 = vrot.lane.b32.xlu0 %v1401_v55, %s3087_s3  ;;  %v3844_v55 = vld [vmem:[#allocation7 + $0x4] ss:$8 sps:$4 sm:$0xff]  }
 0xc38   :  { %4210 = vst [vmem:[#allocation14_spill] sm:$0xff] %v3844_v55 }
 0xc3f   :  { %v2786_v56 = vpop.eup %2785 }
 0xc40   :  { %1255 = vrot.lane.b32.xlu1 %v2786_v56, %s3087_s3  ;;  %v2788_v58 = vpop.eup %2787 }
 0xc41   :  { %v1236_v61 = vadd.f32 1.0, %v2788_v58 }
 0xc43   :  { %2789 = vrcp.f32 %v1236_v61  ;;  %v3848_v61 = vld [vmem:[#allocation7] ss:$8 sps:$4 sm:$0xff]  }
 0xc4d   :  { %v2790_v32 = vpop.eup %2789 }
 0xca5   :  { %v1327_v39 = vpop.permute.xlu0 %1326 }
 0xca6   :  { %v3781_v44 = vadd.f32 %v1327_v39, %v1319_v8  ;;  %v3852_v8 = vld [vmem:[#allocation7 + $0x14] ss:$8 sps:$4 sm:$0xff]   ;;  %v3855_v39 = vld [vmem:[#allocation7 + $0x10] ss:$8 sps:$4 sm:$0xff]  }
 0xca8   :  { %2791 = vtanh.f32 %v3781_v44 }
 0xca9   :  { %v1404_v24 = vpop.permute.xlu0 %1403 }
 0xcaa   :  { %v3785_v31 = vadd.f32 %v1404_v24, %v1396_v25  ;;  %v3858_v25 = vld [vmem:[#allocation7 + $0x24] ss:$8 sps:$4 sm:$0xff]   ;;  %v3861_v24 = vld [vmem:[#allocation7 + $0x20] ss:$8 sps:$4 sm:$0xff]  }
 0xcac   :  { %2793 = vtanh.f32 %v3785_v31 }
 0xcad   :  { %2795 = vpow2.f32 %v2521_v38  ;;  %v3879_v38 = vld [vmem:[#allocation7 + $0x50] ss:$8 sps:$4 sm:$0xff]  }
 0xcae   :  { %2797 = vpow2.f32 %v2524_v59  ;;  %v3885_v59 = vld [vmem:[#allocation7 + $0x60] ss:$8 sps:$4 sm:$0xff]  }
 0xcb2   :  { %v2792_v52 = vpop.eup %2791  ;;  %v1256_v34 = vpop.permute.xlu1 %1255 }
 0xcb3   :  { %v1258_v37 = vmul.f32 %v2790_v32, %v1256_v34  ;;  %1332 = vrot.lane.b32.xlu1 %v2792_v52, %s3087_s3  ;;  %v3864_v32 = vld [vmem:[#allocation7 + $0x34] ss:$8 sps:$4 sm:$0xff]   ;;  %v3867_v52 = vld [vmem:[#allocation7 + $0x30] ss:$8 sps:$4 sm:$0xff]   ;;  %v3870_v34 = vld [vmem:[#allocation7 + $0x44] ss:$8 sps:$4 sm:$0xff]  }
 0xcb5   :  { %1414 = vrot.lane.b32.xlu0 %v1258_v37, %s3087_s3  ;;  %v3873_v37 = vld [vmem:[#allocation7 + $0x40] ss:$8 sps:$4 sm:$0xff]  }
 0xcb6   :  { %v2794_v11 = vpop.eup %2793 }
 0xcb7   :  { %1409 = vrot.lane.b32.xlu1 %v2794_v11, %s3087_s3  ;;  %v2796_v40 = vpop.eup %2795  ;;  %v3876_v11 = vld [vmem:[#allocation7 + $0x54] ss:$8 sps:$4 sm:$0xff]  }
 0xcb8   :  { %v1313_v49 = vadd.f32 1.0, %v2796_v40  ;;  %v2798_v63 = vpop.eup %2797  ;;  %v3882_v40 = vld [vmem:[#allocation7 + $0x64] ss:$8 sps:$4 sm:$0xff]  }
 0xcb9   :  { %v1390_v10 = vadd.f32 1.0, %v2798_v63  ;;  %v3891_v63 = vld [vmem:[#allocation7 + $0x70] ss:$8 sps:$4 sm:$0xff]  }
 0xcba   :  { %2799 = vrcp.f32 %v1313_v49  ;;  %v3888_v49 = vld [vmem:[#allocation7 + $0x74] ss:$8 sps:$4 sm:$0xff]   ;;  %4212 = vst [vmem:[#allocation15_spill] sm:$0xff] %v3891_v63 }
 0xcbb   :  { %2801 = vrcp.f32 %v1390_v10  ;;  %4211 = vst [vmem:[#allocation13_spill] sm:$0xff] %v3888_v49 }
 0xcc4   :  { %v2800_v35 = vpop.eup %2799 }
 0xcc5   :  { %v2802_v3 = vpop.eup %2801 }
 0xd25   :  { %v1333_v23 = vpop.permute.xlu1 %1332 }
 0xd26   :  { %v1335_v60 = vmul.f32 %v2800_v35, %v1333_v23 }
 0xd27   :  { %v1415_v17 = vpop.permute.xlu0 %1414 }
 0xd28   :  { %v1417_v12 = vsel %vm315_vm2, %v1335_v60, %v1415_v17  ;;  %1491 = vrot.lane.b32.xlu0 %v1335_v60, %s3087_s3 }
 0xd29   :  { %v1418_v7 = vpack.c.bf16 %v1417_v12, %v1417_v12  ;;  %v1410_v26 = vpop.permute.xlu1 %1409 }
 0xd2a   :  { %v1412_v21 = vmul.f32 %v2802_v3, %v1410_v26  ;;  %v4214_v3 = vld [vmem:[#allocation19_spill] sm:$0xff] }
 0xd2b   :  { %1452 = vmatmul.mubr.bf16.vlgmr.msra.gmra.mrb[36].mxu0 %v1418_v7  ;;  %v4213_v7 = vld [vmem:[#allocation18_spill] sm:$0xff] }
 0xd2c   :  { %1572 = vmatpush1.bf16.msra.mxu0 %v3673_v18  ;;  %1603 = vmatprep.mubr.bf16.mxu0 %v4199_v15  ;;  %v1567_v1 = vpack.c.bf16 %v1412_v21, %v1412_v21  ;;  %v261_v26 = vadd.f32 %v4213_v7, %v4204_v62 }
 0xd2d   :  { %1573 = vmatprep.subr.bf16.mxu0 %v3680_v2 }
 0xd30   :  { %1574 = vmatpush1.bf16.msra.mxu0 %v3686_v43 }
 0xd31   :  { %1575 = vmatprep.subr.bf16.mxu0 %v3692_v45 }
 0xd34   :  { %1576 = vmatpush1.bf16.msra.mxu0 %v3698_v28 }
 0xd35   :  { %1577 = vmatprep.subr.bf16.mxu0 %v3704_v29 }
 0xd38   :  { %1578 = vmatpush1.bf16.msra.mxu0 %v3710_v41 }
 0xd39   :  { %1727 = vmatprep.subr.bf16.mxu0 %v3713_v20 }
 0xd3b   :  { %2529 = vmatmul.mubr.msk.bf16.vlgmr.msra.gmra.mrb[40].mxu0 %vm315_vm2, %v1567_v1 }
 0xd3c   :  { %1728 = vmatpush1.bf16.msra.mxu0 %v3717_v33  ;;  %1759 = vmatprep.mubr.bf16.mxu0 %v4199_v15 }
 0xd3d   :  { %1729 = vmatprep.subr.bf16.mxu0 %v3721_v27 }
 0xd40   :  { %1730 = vmatpush1.bf16.msra.mxu0 %v3724_v4 }
 0xd41   :  { %1731 = vmatprep.subr.bf16.mxu0 %v3808_v5 }
 0xd44   :  { %1732 = vmatpush1.bf16.msra.mxu0 %v3811_v6 }
 0xd45   :  { %1733 = vmatprep.subr.bf16.mxu0 %v3814_v42 }
 0xd48   :  { %1734 = vmatpush1.bf16.msra.mxu0 %v3817_v0 }
 0xd49   :  { %1735 = vmatprep.subr.bf16.mxu0 %v3820_v13 }
 0xd4c   :  { %1736 = vmatpush1.bf16.msra.mxu0 %v3823_v16 }
 0xd4d   :  { %1737 = vmatprep.subr.bf16.mxu0 %v3826_v22 }
 0xd50   :  { %1738 = vmatpush1.bf16.msra.mxu0 %v3829_v46 }
 0xd51   :  { %1739 = vmatprep.subr.bf16.mxu0 %v3832_v47 }
 0xd54   :  { %1740 = vmatpush1.bf16.msra.mxu0 %v3835_v48 }
 0xd55   :  { %1741 = vmatprep.subr.bf16.mxu0 %v3838_v51 }
 0xd58   :  { %1742 = vmatpush1.bf16.msra.mxu0 %v3841_v53 }
 0xd59   :  { %1881 = vmatprep.subr.bf16.mxu0 %v3844_v55 }
 0xd9a   :  { %v1492_v56 = vpop.permute.xlu0 %1491 }
 0xd9b   :  { %v1494_v57 = vsel %vm315_vm2, %v1412_v21, %v1492_v56  ;;  %v263_v21 = vadd.f32 %v4214_v3, %v4206_v19 }
 0xd9c   :  { %v1495_v58 = vpack.c.bf16 %v1494_v57, %v1494_v57 }
 0xd9e   :  { %1529 = vmatmul.mubr.bf16.vlgmr.msra.gmra.mrb[28].mxu1 %v1495_v58 }
 0xd9f   :  { %1651 = vmatpush1.bf16.msra.mxu1 %v3848_v61  ;;  %1682 = vmatprep.mubr.bf16.mxu1 %v4199_v15 }
 0xda0   :  { %1652 = vmatprep.subr.bf16.mxu1 %v3852_v8 }
 0xda3   :  { %1653 = vmatpush1.bf16.msra.mxu1 %v3855_v39 }
 0xda4   :  { %1654 = vmatprep.subr.bf16.mxu1 %v3858_v25 }
 0xda7   :  { %1655 = vmatpush1.bf16.msra.mxu1 %v3861_v24 }
 0xda8   :  { %1656 = vmatprep.subr.bf16.mxu1 %v3864_v32 }
 0xdab   :  { %1657 = vmatpush1.bf16.msra.mxu1 %v3867_v52 }
 0xdac   :  { %1658 = vmatprep.subr.bf16.mxu1 %v3870_v34 }
 0xdaf   :  { %1659 = vmatpush1.bf16.msra.mxu1 %v3873_v37 }
 0xdb0   :  { %1660 = vmatprep.subr.bf16.mxu1 %v3876_v11 }
 0xdb3   :  { %1661 = vmatpush1.bf16.msra.mxu1 %v3879_v38 }
 0xdb4   :  { %1662 = vmatprep.subr.bf16.mxu1 %v3882_v40 }
 0xdb7   :  { %1663 = vmatpush1.bf16.msra.mxu1 %v3885_v59 }
 0xdb8   :  { %1664 = vmatprep.subr.bf16.mxu1 %v3888_v49 }
 0xdbb   :  { %1665 = vmatpush1.bf16.msra.mxu1 %v3891_v63 }
 0xdbc   :  { %1802 = vmatprep.subr.bf16.mxu1 %v3631_v9 }
 0xdfe   :  { %v1453_v35 = vpop.f32.mrb[36].mxu0 }
 0xdff   :  { %v1455_v23 = vpop.f32.mrb[37].mxu0 }
 0xe00   :  { %v1456_v10 = vadd.f32 %v1455_v23, %v4203_v14  ;;  %v1457_v60 = vpop.f32.mrb[38].mxu0  ;;  %v1454_v23 = vadd.f32 %v1453_v35, %v3555_v54 }
 0xe01   :  { %v1458_v17 = vpop.f32.mrb[39].mxu0 }
 0xe02   :  { %2803 = vtanh.f32 %v1456_v10  ;;  %v2525_v60 = vmul.f32 -1.442695, %v1454_v23 }
 0xe04   :  { %2805 = vpow2.f32 %v2525_v60 }
 0xe0c   :  { %v2804_v12 = vpop.eup %2803 }
 0xe0d   :  { %1475 = vrot.lane.b32.xlu1 %v2804_v12, %s3087_s3 }
 0xe0e   :  { %v1605_v1 = vpop.f32.mrb[40].mxu0  ;;  %v2806_v17 = vpop.eup %2805 }
 0xe0f   :  { %v1612_v56 = vadd.f32 %v1605_v1, %v261_v26  ;;  %v1607_v57 = vpop.f32.mrb[41].mxu0  ;;  %v1466_v14 = vadd.f32 1.0, %v2806_v17 }
 0xe10   :  { %v3901_v58 = vadd.f32 %v1607_v57, %v263_v21  ;;  %v1609_v9 = vpop.f32.mrb[42].mxu0 }
 0xe11   :  { %v1610_v63 = vpop.f32.mrb[43].mxu0  ;;  %2807 = vrcp.f32 %v1466_v14 }
 0xe1b   :  { %v2808_v26 = vpop.eup %2807 }
 0xe71   :  { %v1530_v49 = vpop.f32.mrb[28].mxu1 }
 0xe72   :  { %v1532_v7 = vpop.f32.mrb[29].mxu1  ;;  %v1531_v1 = vadd.f32 %v1530_v49, %v3426_v30 }
 0xe73   :  { %v1533_v12 = vadd.f32 %v1532_v7, %v3410_v36  ;;  %v1534_v62 = vpop.f32.mrb[30].mxu1 }
 0xe74   :  { %v1535_v3 = vpop.f32.mrb[31].mxu1  ;;  %v2527_v57 = vmul.f32 -1.442695, %v1531_v1  ;;  %v2530_v62 = vmul.f32 -1.442695, %v1612_v56 }
 0xe75   :  { %2809 = vtanh.f32 %v1533_v12 }
 0xe76   :  { %2811 = vtanh.f32 %v3901_v58 }
 0xe77   :  { %2813 = vpow2.f32 %v2527_v57  ;;  %v2526_v57 = vmul.f32 -1.442695, %v1456_v10 }
 0xe78   :  { %2815 = vpow2.f32 %v2530_v62 }
 0xe7f   :  { %v2810_v21 = vpop.eup %2809  ;;  %v1476_v9 = vpop.permute.xlu1 %1475 }
 0xe80   :  { %v1478_v63 = vmul.f32 %v2808_v26, %v1476_v9  ;;  %1552 = vrot.lane.b32.xlu0 %v2810_v21, %s3087_s3  ;;  %v2812_v35 = vpop.eup %2811  ;;  %v1473_v9 = vmul.f32 %v2808_v26, %v3774_v50 }
 0xe81   :  { %v2814_v14 = vpop.eup %2813 }
 0xe82   :  { %1480 = vrot.lane.b32.xlu1 %v1478_v63, %s3087_s3  ;;  %v1543_v23 = vadd.f32 1.0, %v2814_v14  ;;  %v2816_v60 = vpop.eup %2815 }
 0xe83   :  { %v1620_v17 = vadd.f32 1.0, %v2816_v60 }
 0xe84   :  { %1629 = vrot.lane.b32.xlu0 %v2812_v35, %s3087_s3  ;;  %2817 = vrcp.f32 %v1543_v23 }
 0xe85   :  { %2819 = vrcp.f32 %v1620_v17 }
 0xe8e   :  { %v2818_v7 = vpop.eup %2817 }
 0xe8f   :  { %v2820_v49 = vpop.eup %2819  ;;  %v1550_v50 = vmul.f32 %v2818_v7, %v3781_v44 }
 0xe90   :  { %v1627_v60 = vmul.f32 %v2820_v49, %v3785_v31  ;;  %v2531_v31 = vmul.f32 -1.442695, %v3901_v58 }
 0xef2   :  { %v1553_v3 = vpop.permute.xlu0 %1552 }
 0xef3   :  { %v1555_v21 = vmul.f32 %v2818_v7, %v1553_v3  ;;  %v2528_v7 = vmul.f32 -1.442695, %v1533_v12 }
 0xef4   :  { %v1481_v63 = vpop.permute.xlu1 %1480 }
 0xef5   :  { %v3911_v36 = vadd.f32 %v1481_v63, %v1473_v9  ;;  %1557 = vrot.lane.b32.xlu1 %v1555_v21, %s3087_s3 }
 0xef6   :  { %v1630_v56 = vpop.permute.xlu0 %1629 }
 0xef7   :  { %2821 = vtanh.f32 %v3911_v36  ;;  %v1632_v35 = vmul.f32 %v2820_v49, %v1630_v56 }
 0xef8   :  { %2823 = vpow2.f32 %v2526_v57 }
 0xef9   :  { %1634 = vrot.lane.b32.xlu1 %v1632_v35, %s3087_s3 }
 0xf01   :  { %v2822_v1 = vpop.eup %2821 }
 0xf02   :  { %1486 = vrot.lane.b32.xlu0 %v2822_v1, %s3087_s3  ;;  %v2824_v62 = vpop.eup %2823 }
 0xf03   :  { %v1467_v14 = vadd.f32 1.0, %v2824_v62 }
 0xf05   :  { %2825 = vrcp.f32 %v1467_v14 }
 0xf0f   :  { %v2826_v21 = vpop.eup %2825 }
 0xf67   :  { %v1558_v26 = vpop.permute.xlu1 %1557 }
 0xf68   :  { %v3918_v23 = vadd.f32 %v1558_v26, %v1550_v50 }
 0xf6a   :  { %2827 = vtanh.f32 %v3918_v23 }
 0xf6b   :  { %v1635_v17 = vpop.permute.xlu1 %1634 }
 0xf6c   :  { %v3922_v3 = vadd.f32 %v1635_v17, %v1627_v60 }
 0xf6e   :  { %2829 = vtanh.f32 %v3922_v3 }
 0xf6f   :  { %2831 = vpow2.f32 %v2528_v7  ;;  %v4216_v7 = vld [vmem:[#allocation15_spill] sm:$0xff] }
 0xf70   :  { %2833 = vpow2.f32 %v2531_v31 }
 0xf74   :  { %v2828_v10 = vpop.eup %2827  ;;  %v1487_v9 = vpop.permute.xlu0 %1486 }
 0xf75   :  { %v1489_v63 = vmul.f32 %v2826_v21, %v1487_v9  ;;  %1563 = vrot.lane.b32.xlu0 %v2828_v10, %s3087_s3 }
 0xf77   :  { %1645 = vrot.lane.b32.xlu1 %v1489_v63, %s3087_s3 }
 0xf78   :  { %v2830_v44 = vpop.eup %2829 }
 0xf79   :  { %1640 = vrot.lane.b32.xlu0 %v2830_v44, %s3087_s3  ;;  %v2832_v56 = vpop.eup %2831  ;;  %v4215_v44 = vld [vmem:[#allocation13_spill] sm:$0xff] }
 0xf7a   :  { %v1544_v49 = vadd.f32 1.0, %v2832_v56  ;;  %v2834_v35 = vpop.eup %2833  ;;  %v4217_v56 = vld [vmem:[#allocation25_spill] sm:$0xff] }
 0xf7b   :  { %v1621_v62 = vadd.f32 1.0, %v2834_v35  ;;  %v4218_v35 = vld [vmem:[#allocation26_spill] sm:$0xff] }
 0xf7c   :  { %2835 = vrcp.f32 %v1544_v49 }
 0xf7d   :  { %2837 = vrcp.f32 %v1621_v62 }
 0xf86   :  { %v2836_v1 = vpop.eup %2835 }
 0xf87   :  { %v2838_v12 = vpop.eup %2837 }
 0xfe7   :  { %v1564_v57 = vpop.permute.xlu0 %1563 }
 0xfe8   :  { %v1566_v14 = vmul.f32 %v2836_v1, %v1564_v57 }
 0xfe9   :  { %v1646_v50 = vpop.permute.xlu1 %1645 }
 0xfea   :  { %v1648_v26 = vsel %vm315_vm2, %v1566_v14, %v1646_v50  ;;  %1722 = vrot.lane.b32.xlu1 %v1566_v14, %s3087_s3  ;;  %v4219_v50 = vld [vmem:[#allocation12_spill] sm:$0xff] }
 0xfeb   :  { %v1649_v60 = vpack.c.bf16 %v1648_v26, %v1648_v26  ;;  %v1641_v58 = vpop.permute.xlu0 %1640  ;;  %v4220_v26 = vld [vmem:[#allocation20_spill] sm:$0xff] }
 0xfec   :  { %v1643_v17 = vmul.f32 %v2838_v12, %v1641_v58  ;;  %v4221_v58 = vld [vmem:[#allocation21_spill] sm:$0xff] }
 0xfed   :  { %1683 = vmatmul.mubr.bf16.vlgmr.msra.gmra.mrb[32].mxu1 %v1649_v60  ;;  %v267_v60 = vadd.f32 %v4220_v26, %v4219_v50  ;;  %v269_v12 = vadd.f32 %v4221_v58, %v4206_v19  ;;  %v4222_v50 = vld [vmem:[#allocation24_spill] sm:$0xff] }
 0xfee   :  { %1803 = vmatpush1.bf16.msra.mxu1 %v3673_v18  ;;  %1834 = vmatprep.mubr.bf16.mxu1 %v4199_v15  ;;  %v1798_v21 = vpack.c.bf16 %v1643_v17, %v1643_v17 }
 0xfef   :  { %1804 = vmatprep.subr.bf16.mxu1 %v3680_v2 }
 0xff2   :  { %1805 = vmatpush1.bf16.msra.mxu1 %v3686_v43 }
 0xff3   :  { %1806 = vmatprep.subr.bf16.mxu1 %v3692_v45 }
 0xff6   :  { %1807 = vmatpush1.bf16.msra.mxu1 %v3698_v28 }
 0xff7   :  { %1808 = vmatprep.subr.bf16.mxu1 %v3704_v29 }
 0xffa   :  { %1809 = vmatpush1.bf16.msra.mxu1 %v3710_v41 }
 0xffb   :  { %1958 = vmatprep.subr.bf16.mxu1 %v3713_v20 }
 0xffd   :  { %2536 = vmatmul.mubr.msk.bf16.vlgmr.msra.gmra.mrb[36].mxu1 %vm315_vm2, %v1798_v21 }
 0xffe   :  { %1959 = vmatpush1.bf16.msra.mxu1 %v3717_v33  ;;  %1990 = vmatprep.mubr.bf16.mxu1 %v4199_v15 }
 0xfff   :  { %1960 = vmatprep.subr.bf16.mxu1 %v3721_v27 }
0x1002   :  { %1961 = vmatpush1.bf16.msra.mxu1 %v3724_v4 }
0x1003   :  { %1962 = vmatprep.subr.bf16.mxu1 %v3808_v5 }
0x1006   :  { %1963 = vmatpush1.bf16.msra.mxu1 %v3811_v6 }
0x1007   :  { %1964 = vmatprep.subr.bf16.mxu1 %v3814_v42 }
0x100a   :  { %1965 = vmatpush1.bf16.msra.mxu1 %v3817_v0 }
0x100b   :  { %1966 = vmatprep.subr.bf16.mxu1 %v3820_v13 }
0x100e   :  { %1967 = vmatpush1.bf16.msra.mxu1 %v3823_v16 }
0x100f   :  { %1968 = vmatprep.subr.bf16.mxu1 %v3826_v22 }
0x1012   :  { %1969 = vmatpush1.bf16.msra.mxu1 %v3829_v46 }
0x1013   :  { %1970 = vmatprep.subr.bf16.mxu1 %v3832_v47 }
0x1016   :  { %1971 = vmatpush1.bf16.msra.mxu1 %v3835_v48 }
0x1017   :  { %1972 = vmatprep.subr.bf16.mxu1 %v3838_v51 }
0x101a   :  { %1973 = vmatpush1.bf16.msra.mxu1 %v3841_v53 }
0x101b   :  { %2112 = vmatprep.subr.bf16.mxu1 %v3844_v55 }
0x105c   :  { %v1723_v10 = vpop.permute.xlu1 %1722 }
0x105d   :  { %v1725_v9 = vsel %vm315_vm2, %v1643_v17, %v1723_v10 }
0x105e   :  { %v1726_v63 = vpack.c.bf16 %v1725_v9, %v1725_v9 }
0x1060   :  { %1760 = vmatmul.mubr.bf16.vlgmr.msra.gmra.mrb[44].mxu0 %v1726_v63 }
0x1061   :  { %1882 = vmatpush1.bf16.msra.mxu0 %v3848_v61  ;;  %1913 = vmatprep.mubr.bf16.mxu0 %v4199_v15 }
0x1062   :  { %1883 = vmatprep.subr.bf16.mxu0 %v3852_v8 }
0x1065   :  { %1884 = vmatpush1.bf16.msra.mxu0 %v3855_v39 }
0x1066   :  { %1885 = vmatprep.subr.bf16.mxu0 %v3858_v25 }
0x1069   :  { %1886 = vmatpush1.bf16.msra.mxu0 %v3861_v24 }
0x106a   :  { %1887 = vmatprep.subr.bf16.mxu0 %v3864_v32 }
0x106d   :  { %1888 = vmatpush1.bf16.msra.mxu0 %v3867_v52 }
0x106e   :  { %1889 = vmatprep.subr.bf16.mxu0 %v3870_v34 }
0x1071   :  { %1890 = vmatpush1.bf16.msra.mxu0 %v3873_v37 }
0x1072   :  { %1891 = vmatprep.subr.bf16.mxu0 %v3876_v11 }
0x1075   :  { %1892 = vmatpush1.bf16.msra.mxu0 %v3879_v38 }
0x1076   :  { %1893 = vmatprep.subr.bf16.mxu0 %v3882_v40 }
0x1079   :  { %1894 = vmatpush1.bf16.msra.mxu0 %v3885_v59 }
0x107a   :  { %1895 = vmatprep.subr.bf16.mxu0 %v4215_v44 }
0x107d   :  { %1896 = vmatpush1.bf16.msra.mxu0 %v4216_v7 }
0x107e   :  { %2033 = vmatprep.subr.bf16.mxu0 %v4217_v56 }
0x10c0   :  { %v1684_v31 = vpop.f32.mrb[32].mxu1 }
0x10c1   :  { %v1686_v49 = vpop.f32.mrb[33].mxu1 }
0x10c2   :  { %v1687_v1 = vadd.f32 %v1686_v49, %v4218_v35  ;;  %v1688_v57 = vpop.f32.mrb[34].mxu1  ;;  %v1685_v49 = vadd.f32 %v1684_v31, %v3555_v54 }
0x10c3   :  { %v1689_v62 = vpop.f32.mrb[35].mxu1 }
0x10c4   :  { %2839 = vtanh.f32 %v1687_v1  ;;  %v2532_v57 = vmul.f32 -1.442695, %v1685_v49 }
0x10c6   :  { %2841 = vpow2.f32 %v2532_v57 }
0x10ce   :  { %v2840_v14 = vpop.eup %2839 }
0x10cf   :  { %1706 = vrot.lane.b32.xlu0 %v2840_v14, %s3087_s3 }
0x10d0   :  { %v1836_v17 = vpop.f32.mrb[36].mxu1  ;;  %v2842_v62 = vpop.eup %2841 }
0x10d1   :  { %v1843_v21 = vadd.f32 %v1836_v17, %v267_v60  ;;  %v1838_v10 = vpop.f32.mrb[37].mxu1  ;;  %v1697_v35 = vadd.f32 1.0, %v2842_v62 }
0x10d2   :  { %v3982_v9 = vadd.f32 %v1838_v10, %v269_v12  ;;  %v1840_v63 = vpop.f32.mrb[38].mxu1 }
0x10d3   :  { %v1841_v56 = vpop.f32.mrb[39].mxu1  ;;  %2843 = vrcp.f32 %v1697_v35 }
0x10dd   :  { %v2844_v60 = vpop.eup %2843 }
0x1133   :  { %v1761_v55 = vpop.f32.mrb[44].mxu0 }
0x1134   :  { %v1763_v26 = vpop.f32.mrb[45].mxu0  ;;  %v1762_v63 = vadd.f32 %v1761_v55, %v3426_v30 }
0x1135   :  { %v1764_v14 = vadd.f32 %v1763_v26, %v4222_v50  ;;  %v1765_v7 = vpop.f32.mrb[46].mxu0 }
0x1136   :  { %v1766_v58 = vpop.f32.mrb[47].mxu0  ;;  %v2534_v56 = vmul.f32 -1.442695, %v1762_v63  ;;  %v2537_v7 = vmul.f32 -1.442695, %v1843_v21 }
0x1137   :  { %2845 = vtanh.f32 %v1764_v14 }
0x1138   :  { %2847 = vtanh.f32 %v3982_v9 }
0x1139   :  { %2849 = vpow2.f32 %v2534_v56  ;;  %v2533_v56 = vmul.f32 -1.442695, %v1687_v1 }
0x113a   :  { %2851 = vpow2.f32 %v2537_v7 }
0x1141   :  { %v2846_v12 = vpop.eup %2845  ;;  %v1707_v17 = vpop.permute.xlu0 %1706 }
0x1142   :  { %v1709_v10 = vmul.f32 %v2844_v60, %v1707_v17  ;;  %1783 = vrot.lane.b32.xlu1 %v2846_v12, %s3087_s3  ;;  %v2848_v31 = vpop.eup %2847  ;;  %v1704_v17 = vmul.f32 %v2844_v60, %v3911_v36 }
0x1143   :  { %v2850_v35 = vpop.eup %2849 }
0x1144   :  { %1711 = vrot.lane.b32.xlu0 %v1709_v10, %s3087_s3  ;;  %v1774_v49 = vadd.f32 1.0, %v2850_v35  ;;  %v2852_v57 = vpop.eup %2851 }
0x1145   :  { %v1851_v62 = vadd.f32 1.0, %v2852_v57 }
0x1146   :  { %1860 = vrot.lane.b32.xlu1 %v2848_v31, %s3087_s3  ;;  %2853 = vrcp.f32 %v1774_v49 }
0x1147   :  { %2855 = vrcp.f32 %v1851_v62 }
0x1150   :  { %v2854_v26 = vpop.eup %2853 }
0x1151   :  { %v2856_v55 = vpop.eup %2855  ;;  %v1781_v36 = vmul.f32 %v2854_v26, %v3918_v23 }
0x1152   :  { %v1858_v57 = vmul.f32 %v2856_v55, %v3922_v3  ;;  %v2538_v3 = vmul.f32 -1.442695, %v3982_v9 }
0x11b4   :  { %v1784_v58 = vpop.permute.xlu1 %1783 }
0x11b5   :  { %v1786_v12 = vmul.f32 %v2854_v26, %v1784_v58  ;;  %v2535_v26 = vmul.f32 -1.442695, %v1764_v14 }
0x11b6   :  { %v1712_v10 = vpop.permute.xlu0 %1711 }
0x11b7   :  { %v3992_v50 = vadd.f32 %v1712_v10, %v1704_v17  ;;  %1788 = vrot.lane.b32.xlu0 %v1786_v12, %s3087_s3 }
0x11b8   :  { %v1861_v21 = vpop.permute.xlu1 %1860 }
0x11b9   :  { %2857 = vtanh.f32 %v3992_v50  ;;  %v1863_v31 = vmul.f32 %v2856_v55, %v1861_v21 }
0x11ba   :  { %2859 = vpow2.f32 %v2533_v56 }
0x11bb   :  { %1865 = vrot.lane.b32.xlu0 %v1863_v31, %s3087_s3 }
0x11c3   :  { %v2858_v63 = vpop.eup %2857 }
0x11c4   :  { %1717 = vrot.lane.b32.xlu1 %v2858_v63, %s3087_s3  ;;  %v2860_v7 = vpop.eup %2859 }
0x11c5   :  { %v1698_v35 = vadd.f32 1.0, %v2860_v7 }
0x11c7   :  { %2861 = vrcp.f32 %v1698_v35 }
0x11d1   :  { %v2862_v12 = vpop.eup %2861 }
0x1229   :  { %v1789_v60 = vpop.permute.xlu0 %1788 }
0x122a   :  { %v3999_v49 = vadd.f32 %v1789_v60, %v1781_v36 }
0x122c   :  { %2863 = vtanh.f32 %v3999_v49 }
0x122d   :  { %v1866_v62 = vpop.permute.xlu0 %1865 }
0x122e   :  { %v4003_v58 = vadd.f32 %v1866_v62, %v1858_v57 }
0x1230   :  { %2865 = vtanh.f32 %v4003_v58 }
0x1231   :  { %2867 = vpow2.f32 %v2535_v26 }
0x1232   :  { %2869 = vpow2.f32 %v2538_v3  ;;  %v4229_v3 = vld [vmem:[#allocation24_spill] sm:$0xff] }
0x1236   :  { %v2864_v1 = vpop.eup %2863  ;;  %v1718_v17 = vpop.permute.xlu1 %1717 }
0x1237   :  { %v1720_v10 = vmul.f32 %v2862_v12, %v1718_v17  ;;  %1794 = vrot.lane.b32.xlu1 %v2864_v1, %s3087_s3 }
0x1239   :  { %1876 = vrot.lane.b32.xlu0 %v1720_v10, %s3087_s3 }
0x123a   :  { %v2866_v23 = vpop.eup %2865 }
0x123b   :  { %1871 = vrot.lane.b32.xlu1 %v2866_v23, %s3087_s3  ;;  %v2868_v21 = vpop.eup %2867 }
0x123c   :  { %v1775_v55 = vadd.f32 1.0, %v2868_v21  ;;  %v2870_v31 = vpop.eup %2869 }
0x123d   :  { %v1852_v7 = vadd.f32 1.0, %v2870_v31 }
0x123e   :  { %2871 = vrcp.f32 %v1775_v55 }
0x123f   :  { %2873 = vrcp.f32 %v1852_v7 }
0x1248   :  { %v2872_v63 = vpop.eup %2871 }
0x1249   :  { %v2874_v14 = vpop.eup %2873 }
0x12a9   :  { %v1795_v56 = vpop.permute.xlu1 %1794 }
0x12aa   :  { %v1797_v35 = vmul.f32 %v2872_v63, %v1795_v56 }
0x12ab   :  { %v1877_v36 = vpop.permute.xlu0 %1876 }
0x12ac   :  { %v1879_v60 = vsel %vm315_vm2, %v1797_v35, %v1877_v36  ;;  %1953 = vrot.lane.b32.xlu0 %v1797_v35, %s3087_s3 }
0x12ad   :  { %v1880_v57 = vpack.c.bf16 %v1879_v60, %v1879_v60  ;;  %v1872_v9 = vpop.permute.xlu1 %1871 }
0x12ae   :  { %v1874_v62 = vmul.f32 %v2874_v14, %v1872_v9 }
0x12af   :  { %1914 = vmatmul.mubr.bf16.vlgmr.msra.gmra.mrb[48].mxu0 %v1880_v57 }
0x12b0   :  { %2034 = vmatpush1.bf16.msra.mxu0 %v3673_v18  ;;  %2065 = vmatprep.mubr.bf16.mxu0 %v4199_v15  ;;  %v2029_v12 = vpack.c.bf16 %v1874_v62, %v1874_v62 }
0x12b1   :  { %2035 = vmatprep.subr.bf16.mxu0 %v3680_v2 }
0x12b4   :  { %2036 = vmatpush1.bf16.msra.mxu0 %v3686_v43 }
0x12b5   :  { %2037 = vmatprep.subr.bf16.mxu0 %v3692_v45  ;;  %v4223_v45 = vld [vmem:[#allocation15_spill] sm:$0xff] }
0x12b8   :  { %2038 = vmatpush1.bf16.msra.mxu0 %v3698_v28  ;;  %v4224_v28 = vld [vmem:[#allocation14_spill] sm:$0xff] }
0x12b9   :  { %2039 = vmatprep.subr.bf16.mxu0 %v3704_v29 }
0x12bc   :  { %2040 = vmatpush1.bf16.msra.mxu0 %v3710_v41 }
0x12bd   :  { %2189 = vmatprep.subr.bf16.mxu0 %v3713_v20  ;;  %v4225_v20 = vld [vmem:[#allocation26_spill] sm:$0xff] }
0x12bf   :  { %2543 = vmatmul.mubr.msk.bf16.vlgmr.msra.gmra.mrb[52].mxu0 %vm315_vm2, %v2029_v12 }
0x12c0   :  { %2190 = vmatpush1.bf16.msra.mxu0 %v3717_v33  ;;  %2221 = vmatprep.mubr.bf16.mxu0 %v4199_v15 }
0x12c1   :  { %2191 = vmatprep.subr.bf16.mxu0 %v3721_v27 }
0x12c4   :  { %2192 = vmatpush1.bf16.msra.mxu0 %v3724_v4 }
0x12c5   :  { %2193 = vmatprep.subr.bf16.mxu0 %v3808_v5 }
0x12c8   :  { %2194 = vmatpush1.bf16.msra.mxu0 %v3811_v6  ;;  %v4226_v6 = vld [vmem:[#allocation12_spill] sm:$0xff] }
0x12c9   :  { %2195 = vmatprep.subr.bf16.mxu0 %v3814_v42  ;;  %v4227_v42 = vld [vmem:[#allocation22_spill] sm:$0xff] }
0x12cc   :  { %2196 = vmatpush1.bf16.msra.mxu0 %v3817_v0  ;;  %v271_v0 = vadd.f32 %v4227_v42, %v4226_v6 }
0x12cd   :  { %2197 = vmatprep.subr.bf16.mxu0 %v3820_v13  ;;  %v4228_v13 = vld [vmem:[#allocation23_spill] sm:$0xff] }
0x12d0   :  { %2198 = vmatpush1.bf16.msra.mxu0 %v3823_v16  ;;  %v273_v16 = vadd.f32 %v4228_v13, %v4206_v19 }
0x12d1   :  { %2199 = vmatprep.subr.bf16.mxu0 %v3826_v22 }
0x12d4   :  { %2200 = vmatpush1.bf16.msra.mxu0 %v3829_v46 }
0x12d5   :  { %2201 = vmatprep.subr.bf16.mxu0 %v3832_v47 }
0x12d8   :  { %2202 = vmatpush1.bf16.msra.mxu0 %v3835_v48 }
0x12d9   :  { %2203 = vmatprep.subr.bf16.mxu0 %v3838_v51 }
0x12dc   :  { %2204 = vmatpush1.bf16.msra.mxu0 %v3841_v53 }
0x131e   :  { %v1954_v18 = vpop.permute.xlu0 %1953 }
0x131f   :  { %v1956_v2 = vsel %vm315_vm2, %v1874_v62, %v1954_v18 }
0x1320   :  { %v1957_v43 = vpack.c.bf16 %v1956_v2, %v1956_v2 }
0x1322   :  { %1991 = vmatmul.mubr.bf16.vlgmr.msra.gmra.mrb[40].mxu1 %v1957_v43 }
0x1323   :  { %2113 = vmatpush1.bf16.msra.mxu1 %v3848_v61  ;;  %2144 = vmatprep.mubr.bf16.mxu1 %v4199_v15 }
0x1324   :  { %2114 = vmatprep.subr.bf16.mxu1 %v3852_v8 }
0x1327   :  { %2115 = vmatpush1.bf16.msra.mxu1 %v3855_v39 }
0x1328   :  { %2116 = vmatprep.subr.bf16.mxu1 %v3858_v25 }
0x132b   :  { %2117 = vmatpush1.bf16.msra.mxu1 %v3861_v24 }
0x132c   :  { %2118 = vmatprep.subr.bf16.mxu1 %v3864_v32 }
0x132f   :  { %2119 = vmatpush1.bf16.msra.mxu1 %v3867_v52 }
0x1330   :  { %2120 = vmatprep.subr.bf16.mxu1 %v3870_v34 }
0x1333   :  { %2121 = vmatpush1.bf16.msra.mxu1 %v3873_v37 }
0x1334   :  { %2122 = vmatprep.subr.bf16.mxu1 %v3876_v11 }
0x1337   :  { %2123 = vmatpush1.bf16.msra.mxu1 %v3879_v38 }
0x1338   :  { %2124 = vmatprep.subr.bf16.mxu1 %v3882_v40 }
0x133b   :  { %2125 = vmatpush1.bf16.msra.mxu1 %v3885_v59 }
0x133c   :  { %2126 = vmatprep.subr.bf16.mxu1 %v4215_v44 }
0x133f   :  { %2127 = vmatpush1.bf16.msra.mxu1 %v4223_v45 }
0x1340   :  { %2266 = vmatprep.subr.bf16.mxu1 %v4224_v28 }
0x1382   :  { %v1915_v29 = vpop.f32.mrb[48].mxu0 }
0x1383   :  { %v1917_v41 = vpop.f32.mrb[49].mxu0  ;;  %v1916_v1 = vadd.f32 %v1915_v29, %v3555_v54 }
0x1384   :  { %v1918_v33 = vadd.f32 %v1917_v41, %v4225_v20  ;;  %v1919_v27 = vpop.f32.mrb[50].mxu0 }
0x1385   :  { %v1920_v4 = vpop.f32.mrb[51].mxu0  ;;  %v2539_v17 = vmul.f32 -1.442695, %v1916_v1 }
0x1386   :  { %2875 = vtanh.f32 %v1918_v33 }
0x1387   :  { %2877 = vpow2.f32 %v2539_v17 }
0x1390   :  { %v2876_v5 = vpop.eup %2875 }
0x1391   :  { %1937 = vrot.lane.b32.xlu1 %v2876_v5, %s3087_s3  ;;  %v2878_v10 = vpop.eup %2877 }
0x1392   :  { %v2067_v22 = vpop.f32.mrb[52].mxu0  ;;  %v1928_v23 = vadd.f32 1.0, %v2878_v10 }
0x1393   :  { %v2074_v46 = vadd.f32 %v2067_v22, %v271_v0  ;;  %v2069_v47 = vpop.f32.mrb[53].mxu0  ;;  %v2540_v0 = vmul.f32 -1.442695, %v1918_v33 }
0x1394   :  { %v4062_v48 = vadd.f32 %v2069_v47, %v273_v16  ;;  %v2071_v51 = vpop.f32.mrb[54].mxu0  ;;  %2879 = vrcp.f32 %v1928_v23 }
0x1395   :  { %v2072_v53 = vpop.f32.mrb[55].mxu0  ;;  %v2544_v9 = vmul.f32 -1.442695, %v2074_v46 }
0x139e   :  { %v2880_v63 = vpop.eup %2879 }
0x139f   :  { %v1935_v29 = vmul.f32 %v2880_v63, %v3992_v50 }
0x13f5   :  { %v1992_v26 = vpop.f32.mrb[40].mxu1 }
0x13f6   :  { %v1994_v21 = vpop.f32.mrb[41].mxu1  ;;  %v1993_v60 = vadd.f32 %v1992_v26, %v3426_v30 }
0x13f7   :  { %v1995_v55 = vadd.f32 %v1994_v21, %v4229_v3  ;;  %v1996_v31 = vpop.f32.mrb[42].mxu1 }
0x13f8   :  { %v1997_v19 = vpop.f32.mrb[43].mxu1  ;;  %v2541_v57 = vmul.f32 -1.442695, %v1993_v60 }
0x13f9   :  { %2881 = vtanh.f32 %v1995_v55  ;;  %v2542_v23 = vmul.f32 -1.442695, %v1995_v55 }
0x13fa   :  { %2883 = vtanh.f32 %v4062_v48 }
0x13fb   :  { %2885 = vpow2.f32 %v2541_v57 }
0x13fc   :  { %2887 = vpow2.f32 %v2544_v9 }
0x1403   :  { %v2882_v56 = vpop.eup %2881  ;;  %v1938_v7 = vpop.permute.xlu1 %1937 }
0x1404   :  { %v1940_v35 = vmul.f32 %v2880_v63, %v1938_v7  ;;  %2014 = vrot.lane.b32.xlu0 %v2882_v56, %s3087_s3  ;;  %v2884_v36 = vpop.eup %2883 }
0x1405   :  { %v2886_v14 = vpop.eup %2885 }
0x1406   :  { %1942 = vrot.lane.b32.xlu1 %v1940_v35, %s3087_s3  ;;  %v2005_v62 = vadd.f32 1.0, %v2886_v14  ;;  %v2888_v12 = vpop.eup %2887 }
0x1407   :  { %v2082_v18 = vadd.f32 1.0, %v2888_v12 }
0x1408   :  { %2091 = vrot.lane.b32.xlu0 %v2884_v36, %s3087_s3  ;;  %2889 = vrcp.f32 %v2005_v62 }
0x1409   :  { %2891 = vrcp.f32 %v2082_v18 }
0x1412   :  { %v2890_v2 = vpop.eup %2889 }
0x1413   :  { %v2892_v4 = vpop.eup %2891  ;;  %v2012_v50 = vmul.f32 %v2890_v2, %v3999_v49 }
0x1414   :  { %v2089_v47 = vmul.f32 %v2892_v4, %v4003_v58 }
0x1476   :  { %v2015_v43 = vpop.permute.xlu0 %2014 }
0x1477   :  { %v2017_v28 = vmul.f32 %v2890_v2, %v2015_v43 }
0x1478   :  { %v1943_v41 = vpop.permute.xlu1 %1942 }
0x1479   :  { %v4072_v27 = vadd.f32 %v1943_v41, %v1935_v29  ;;  %2019 = vrot.lane.b32.xlu1 %v2017_v28, %s3087_s3 }
0x147a   :  { %v2092_v5 = vpop.permute.xlu0 %2091 }
0x147b   :  { %2893 = vtanh.f32 %v4072_v27  ;;  %v2094_v6 = vmul.f32 %v2892_v4, %v2092_v5 }
0x147c   :  { %2895 = vpow2.f32 %v2540_v0 }
0x147d   :  { %2096 = vrot.lane.b32.xlu1 %v2094_v6, %s3087_s3 }
0x1485   :  { %v2894_v42 = vpop.eup %2893 }
0x1486   :  { %1948 = vrot.lane.b32.xlu0 %v2894_v42, %s3087_s3  ;;  %v2896_v13 = vpop.eup %2895 }
0x1487   :  { %v1929_v16 = vadd.f32 1.0, %v2896_v13 }
0x1489   :  { %2897 = vrcp.f32 %v1929_v16 }
0x1493   :  { %v2898_v1 = vpop.eup %2897 }
0x14eb   :  { %v2020_v22 = vpop.permute.xlu1 %2019 }
0x14ec   :  { %v4079_v46 = vadd.f32 %v2020_v22, %v2012_v50 }
0x14ee   :  { %2899 = vtanh.f32 %v4079_v46 }
0x14ef   :  { %v2097_v51 = vpop.permute.xlu1 %2096 }
0x14f0   :  { %v2099_v53 = vadd.f32 %v2097_v51, %v2089_v47 }
0x14f2   :  { %2901 = vtanh.f32 %v2099_v53 }
0x14f3   :  { %2903 = vpow2.f32 %v2542_v23 }
0x14f8   :  { %v2900_v17 = vpop.eup %2899  ;;  %v1949_v10 = vpop.permute.xlu0 %1948 }
0x14f9   :  { %v1951_v33 = vmul.f32 %v2898_v1, %v1949_v10  ;;  %2025 = vrot.lane.b32.xlu0 %v2900_v17, %s3087_s3 }
0x14fb   :  { %2107 = vrot.lane.b32.xlu1 %v1951_v33, %s3087_s3 }
0x14fc   :  { %v2902_v49 = vpop.eup %2901 }
0x14fd   :  { %2102 = vrot.lane.b32.xlu0 %v2902_v49, %s3087_s3  ;;  %v2904_v26 = vpop.eup %2903 }
0x14fe   :  { %v2006_v21 = vadd.f32 1.0, %v2904_v26 }
0x1500   :  { %2905 = vrcp.f32 %v2006_v21 }
0x150a   :  { %v2906_v58 = vpop.eup %2905 }
0x156b   :  { %v2026_v31 = vpop.permute.xlu0 %2025 }
0x156c   :  { %v2028_v19 = vmul.f32 %v2906_v58, %v2026_v31 }
0x156d   :  { %v2108_v63 = vpop.permute.xlu1 %2107 }
0x156e   :  { %v2110_v56 = vsel %vm315_vm2, %v2028_v19, %v2108_v63  ;;  %2184 = vrot.lane.b32.xlu1 %v2028_v19, %s3087_s3 }
0x156f   :  { %v2111_v7 = vpack.c.bf16 %v2110_v56, %v2110_v56 }
0x1571   :  { %2145 = vmatmul.mubr.bf16.vlgmr.msra.gmra.mrb[44].mxu1 %v2111_v7 }
0x1572   :  { %2267 = vmatpush1.bf16.msra.mxu1 %v3848_v61  ;;  %2298 = vmatprep.mubr.bf16.mxu1 %v4199_v15  ;;  %v2545_v15 = vmul.f32 -1.442695, %v4062_v48 }
0x1573   :  { %2268 = vmatprep.subr.bf16.mxu1 %v3852_v8 }
0x1574   :  { %2907 = vpow2.f32 %v2545_v15 }
0x1576   :  { %2269 = vmatpush1.bf16.msra.mxu1 %v3855_v39  ;;  %v2103_v39 = vpop.permute.xlu0 %2102 }
0x1577   :  { %2270 = vmatprep.subr.bf16.mxu1 %v3858_v25 }
0x157a   :  { %2271 = vmatpush1.bf16.msra.mxu1 %v3861_v24 }
0x157b   :  { %2272 = vmatprep.subr.bf16.mxu1 %v3864_v32 }
0x157e   :  { %2273 = vmatpush1.bf16.msra.mxu1 %v3867_v52  ;;  %v2908_v61 = vpop.eup %2907 }
0x157f   :  { %2274 = vmatprep.subr.bf16.mxu1 %v3870_v34  ;;  %v2083_v8 = vadd.f32 1.0, %v2908_v61 }
0x1581   :  { %2909 = vrcp.f32 %v2083_v8 }
0x1582   :  { %2275 = vmatpush1.bf16.msra.mxu1 %v3873_v37 }
0x1583   :  { %2276 = vmatprep.subr.bf16.mxu1 %v3876_v11 }
0x1586   :  { %2277 = vmatpush1.bf16.msra.mxu1 %v3879_v38 }
0x1587   :  { %2278 = vmatprep.subr.bf16.mxu1 %v3882_v40 }
0x158a   :  { %2279 = vmatpush1.bf16.msra.mxu1 %v3885_v59 }
0x158b   :  { %2280 = vmatprep.subr.bf16.mxu1 %v4215_v44  ;;  %v2910_v25 = vpop.eup %2909 }
0x158c   :  { %v2105_v24 = vmul.f32 %v2910_v25, %v2103_v39 }
0x158e   :  { %2281 = vmatpush1.bf16.msra.mxu1 %v4223_v45 }
0x15e0   :  { %v2185_v32 = vpop.permute.xlu1 %2184 }
0x15e1   :  { %v2187_v52 = vsel %vm315_vm2, %v2105_v24, %v2185_v32 }
0x15e2   :  { %v2188_v34 = vpack.c.bf16 %v2187_v52, %v2187_v52 }
0x15e4   :  { %2222 = vmatmul.mubr.bf16.vlgmr.msra.gmra.mrb[56].mxu0 %v2188_v34 }
0x1644   :  { %v2146_v37 = vpop.f32.mrb[44].mxu1 }
0x1645   :  { %v2148_v11 = vpop.f32.mrb[45].mxu1  ;;  %v2147_v45 = vadd.f32 %v2146_v37, %v3555_v54  ;;  %v3088_v37 = vmov 0.0  }
0x1646   :  { %v2149_v38 = vadd.f32 %v2148_v11, %v4225_v20  ;;  %v2150_v40 = vpop.f32.mrb[46].mxu1  ;;  %2563 = vmatprep.subr.bf16.mxu0 %v3088_v37  ;;  %v2657_v11 = vld [vmem:[%s4161_s8 + $0x10] sm:$0xff]   ;;  %2571 = vmatprep.mubr.msk.bf16.mxu0 %vm3089_vm4, %v3088_v37 }
0x1647   :  { %v2151_v59 = vpop.f32.mrb[47].mxu1  ;;  %v2546_v48 = vmul.f32 -1.442695, %v2147_v45 }
0x1648   :  { %2911 = vtanh.f32 %v2149_v38  ;;  %v2547_v16 = vmul.f32 -1.442695, %v2149_v38 }
0x1649   :  { %2913 = vpow2.f32 %v2546_v48 }
0x1652   :  { %v2912_v44 = vpop.eup %2911 }
0x1653   :  { %2168 = vrot.lane.b32.xlu0 %v2912_v44, %s3087_s3  ;;  %v2914_v55 = vpop.eup %2913  ;;  %v2658_v44 = vld [vmem:[%s4161_s8 + $0x18] sm:$0xff]  }
0x1654   :  { %v2159_v35 = vadd.f32 1.0, %v2914_v55 }
0x1656   :  { %2915 = vrcp.f32 %v2159_v35 }
0x1660   :  { %v2916_v62 = vpop.eup %2915 }
0x1661   :  { %v2166_v6 = vmul.f32 %v2916_v62, %v4072_v27 }
0x16b7   :  { %v2223_v36 = vpop.f32.mrb[56].mxu0 }
0x16b8   :  { %v2225_v60 = vpop.f32.mrb[57].mxu0  ;;  %v2224_v43 = vadd.f32 %v2223_v36, %v3426_v30 }
0x16b9   :  { %v2226_v57 = vadd.f32 %v2225_v60, %v4229_v3  ;;  %v2227_v9 = vpop.f32.mrb[58].mxu0 }
0x16ba   :  { %v2228_v14 = vpop.f32.mrb[59].mxu0  ;;  %v2548_v28 = vmul.f32 -1.442695, %v2224_v43 }
0x16bb   :  { %2917 = vtanh.f32 %v2226_v57  ;;  %v2549_v10 = vmul.f32 -1.442695, %v2226_v57  ;;  %v2552_v14 = vld [vmem:[%s4162_s9] ss:$0 sm:$0xff] }
0x16bc   :  { %2919 = vpow2.f32 %v2548_v28 }
0x16c5   :  { %v2918_v12 = vpop.eup %2917  ;;  %v2169_v18 = vpop.permute.xlu0 %2168 }
0x16c6   :  { %v2171_v2 = vmul.f32 %v2916_v62, %v2169_v18  ;;  %2245 = vrot.lane.b32.xlu1 %v2918_v12, %s3087_s3  ;;  %v2920_v29 = vpop.eup %2919 }
0x16c7   :  { %v2236_v41 = vadd.f32 1.0, %v2920_v29 }
0x16c8   :  { %2173 = vrot.lane.b32.xlu0 %v2171_v2, %s3087_s3 }
0x16c9   :  { %2921 = vrcp.f32 %v2236_v41 }
0x16d3   :  { %v2922_v3 = vpop.eup %2921 }
0x16d4   :  { %v2243_v22 = vmul.f32 %v2922_v3, %v4079_v46 }
0x1738   :  { %v2246_v4 = vpop.permute.xlu1 %2245 }
0x1739   :  { %v2248_v5 = vmul.f32 %v2922_v3, %v2246_v4 }
0x173a   :  { %v2174_v42 = vpop.permute.xlu0 %2173 }
0x173b   :  { %v2176_v0 = vadd.f32 %v2174_v42, %v2166_v6  ;;  %2250 = vrot.lane.b32.xlu1 %v2248_v5, %s3087_s3 }
0x173d   :  { %2923 = vtanh.f32 %v2176_v0 }
0x173e   :  { %2925 = vpow2.f32 %v2547_v16 }
0x1747   :  { %v2924_v13 = vpop.eup %2923 }
0x1748   :  { %2179 = vrot.lane.b32.xlu0 %v2924_v13, %s3087_s3  ;;  %v2926_v30 = vpop.eup %2925 }
0x1749   :  { %v2160_v50 = vadd.f32 1.0, %v2926_v30 }
0x174b   :  { %2927 = vrcp.f32 %v2160_v50 }
0x1755   :  { %v2928_v53 = vpop.eup %2927 }
0x17ad   :  { %v2251_v47 = vpop.permute.xlu1 %2250 }
0x17ae   :  { %v2253_v51 = vadd.f32 %v2251_v47, %v2243_v22 }
0x17b0   :  { %2929 = vtanh.f32 %v2253_v51 }
0x17b1   :  { %2931 = vpow2.f32 %v2549_v10 }
0x17ba   :  { %v2930_v27 = vpop.eup %2929  ;;  %v2180_v1 = vpop.permute.xlu0 %2179 }
0x17bb   :  { %v2182_v17 = vmul.f32 %v2928_v53, %v2180_v1  ;;  %2256 = vrot.lane.b32.xlu1 %v2930_v27, %s3087_s3  ;;  %v2932_v33 = vpop.eup %2931 }
0x17bc   :  { %v2237_v49 = vadd.f32 1.0, %v2932_v33 }
0x17bd   :  { %2261 = vrot.lane.b32.xlu0 %v2182_v17, %s3087_s3 }
0x17be   :  { %2933 = vrcp.f32 %v2237_v49 }
0x17c8   :  { %v2934_v23 = vpop.eup %2933 }
0x182d   :  { %v2257_v26 = vpop.permute.xlu1 %2256 }
0x182e   :  { %v2259_v46 = vmul.f32 %v2934_v23, %v2257_v26 }
0x182f   :  { %v2262_v21 = vpop.permute.xlu0 %2261 }
0x1830   :  { %v2264_v58 = vsel %vm315_vm2, %v2259_v46, %v2262_v21 }
0x1831   :  { %v2265_v31 = vpack.c.bf16 %v2264_v58, %v2264_v58 }
0x1833   :  { %2299 = vmatmul.mubr.bf16.vlgmr.msra.gmra.mrb[48].mxu1 %v2265_v31 }
0x1906   :  { %v2300_v19 = vpop.f32.mrb[48].mxu1 }
0x1907   :  { %v2302_v63 = vpop.f32.mrb[49].mxu1  ;;  %v2301_v8 = vadd.f32 %v2300_v19, %v3555_v54  ;;  %v2656_v54 = vld [vmem:[%s4161_s8 + $0x8] sm:$0xff]  }
0x1908   :  { %v2303_v56 = vadd.f32 %v2302_v63, %v4225_v20  ;;  %v2304_v7 = vpop.f32.mrb[50].mxu1  ;;  %v2655_v20 = vld [vmem:[%s4161_s8] sm:$0xff]   ;;  %s3090_s8 = smov [#allocation8]  }
0x1909   :  { %v2305_v15 = vpop.f32.mrb[51].mxu1  ;;  %v2550_v39 = vmul.f32 -1.442695, %v2301_v8  ;;  %2564 = vmatpush3.bf16.msra.mxu0 %v2655_v20  ;;  %s2428_s6 = sshll.u32 %s3090_s8, 4  ;;  %s2429_s6 = int_to_ptr.vmem [resolvable:$true] %s2428_s6 }
0x190a   :  { %2935 = vtanh.f32 %v2303_v56  ;;  %2565 = vmatprep.subr.bf16.mxu0 %v3088_v37  ;;  %v2551_v48 = vmul.f32 -1.442695, %v2303_v56  ;;  %p3058_p11 = scmp.lt.s32.totalorder %s2429_s6, %s2429_s6 }
0x190b   :  { %2937 = vpow2.f32 %v2550_v39 }
0x190d   :  { %2566 = vmatpush3.bf16.msra.mxu0 %v2656_v54 }
0x190e   :  { %2567 = vmatprep.subr.bf16.mxu0 %v3088_v37 }
0x1911   :  { %2568 = vmatpush3.bf16.msra.mxu0 %v2657_v11 }
0x1912   :  { %2569 = vmatprep.subr.bf16.mxu0 %v3088_v37 }
0x1914   :  { %v2936_v61 = vpop.eup %2935 }
0x1915   :  { %2322 = vrot.lane.b32.xlu1 %v2936_v61, %s3087_s3  ;;  %v2938_v25 = vpop.eup %2937  ;;  %2570 = vmatpush3.bf16.msra.mxu0 %v2658_v44 }
0x1916   :  { %v2313_v24 = vadd.f32 1.0, %v2938_v25 }
0x1918   :  { %2939 = vrcp.f32 %v2313_v24 }
0x1922   :  { %v2940_v32 = vpop.eup %2939 }
0x1923   :  { %v2320_v38 = vmul.f32 %v2940_v32, %v2176_v0 }
0x1987   :  { %v2323_v52 = vpop.permute.xlu1 %2322 }
0x1988   :  { %v2325_v34 = vmul.f32 %v2940_v32, %v2323_v52 }
0x198a   :  { %2327 = vrot.lane.b32.xlu0 %v2325_v34, %s3087_s3 }
0x19fc   :  { %v2328_v40 = vpop.permute.xlu0 %2327 }
0x19fd   :  { %v2330_v59 = vadd.f32 %v2328_v40, %v2320_v38 }
0x19ff   :  { %2941 = vtanh.f32 %v2330_v59 }
0x1a00   :  { %2943 = vpow2.f32 %v2551_v48 }
0x1a09   :  { %v2942_v45 = vpop.eup %2941 }
0x1a0a   :  { %2333 = vrot.lane.b32.xlu1 %v2942_v45, %s3087_s3  ;;  %v2944_v55 = vpop.eup %2943  ;;  %s3053_s3 = scalar_lea.vmem %s2429_s6, 128 }
0x1a0b   :  { %v2314_v35 = vadd.f32 1.0, %v2944_v55  ;;  %p3054_p10 = scmp.ne.s32.totalorder %s2429_s6, %s3053_s3  ;;  %p3059_p12 = scmp.lt.s32.totalorder %s3053_s3, %s3053_s3 }
0x1a0d   :  { %2945 = vrcp.f32 %v2314_v35  ;;  %p3060_p13 = por %p3059_p12, %p3058_p11 }
0x1a0f   :  { %p3061_p0 = pnand %p3060_p13, %p3054_p10 }
0x1a17   :  { %v2946_v36 = vpop.eup %2945 }
0x1a7c   :  { %v2334_v60 = vpop.permute.xlu1 %2333 }
0x1a7d   :  { %v2336_v57 = vmul.f32 %v2946_v36, %v2334_v60 }
0x1a7f   :  { %v2337_v9 = vpack.c.bf16 %v2336_v57, %v2336_v57 }
0x1a81   :  { %2572 = vmatmul.mubr.msk.bf16.vlgmr.msra.gmra.mrb[60].mxu0 %vm315_vm2, %v2337_v9 }
0x1b54   :  { %v2414_v62 = vpop.f32.mrb[60].mxu0 }
0x1b55   :  { %v2415_v12 = vadd.f32 %v2552_v14, %v2414_v62  ;;  %v2573_v18 = vpop.f32.mrb[61].mxu0 }
0x1b56   :  { %v2417_v2 = vpop.f32.mrb[62].mxu0 }
0x1b57   :  { %v2574_v43 = vpop.f32.mrb[63].mxu0  ;;  %2421 = vst.msk [vmem:[#allocation8] sm:$0xff] %vm2420_vm5, %v2415_v12 }
0x1b58   :  { %3064 = shalt.err (!%p3061_p0)
}
0x1b59   :  { %s3065_s9 = scalar_lea.hbm %s4163_s10, 128 }
0x1b5a   :  { %p3066_p1 = scmp.ne.s32.totalorder %s4163_s10, %s3065_s9  ;;  %p3069_p2 = scmp.lt.u32.totalorder %s3065_s9, %s4163_s10 }
0x1b5c   :  { %p3071_p3 = pnand %p3069_p2, %p3066_p1 }
0x1b5e   :  { %3074 = shalt.err (!%p3071_p3)
}
0x1b5f   :  { %2431 = dma.vmem_to_hbm [thread:$0]  %s2429_s6, 128, %s4163_s10, [#allocation4]  }
0x1b60   :  { %3079 = dma.done.wait [#allocation4], 128  }
0x1b61   :  { %3080 = vsyncadd [#allocation4], 4294967168 }
0x1b62   :  { %2435 = vsyncpa [#allocation3], 1 }
0x1b63   :  { %2436 = vsyncpa [#allocation6], 1 }
0x1b64   :  { %2437 = vsyncpa [#allocation4], 1 }

</bundles_post_ra>
